<compile_context>
chip_gen: v7x
topology: tpu7x:2x2x1
jax: 0.10.0
libtpu: 0.0.40
codegen_flags: <defaults>
</compile_context>

<pallas_src>
import functools

import jax
import jax.numpy as jnp
from jax.experimental import pallas as pl
from jax.experimental.pallas import tpu as pltpu

# Fixed hidden sizes from the module definition (all already 128-multiples).
HIDDEN = (128, 256, 512, 256, 256)

_LANE = 128   # output feature dim padded to a multiple of this (lane-dense vst)


def _round_up(x, m):
    return ((x + m - 1) // m) * m


# -----------------------------------------------------------------------------
# Kernel: whole 6-layer MLP for one batch tile.
# -----------------------------------------------------------------------------
def _mlp_kernel(x_ref,
                w1, b1, w2, b2, w3, b3, w4, b4, w5, b5, w6, b6,
                o_ref):
    """bf16 MXU inputs, f32 accumulate / bias / ReLU."""

    def dense(h_bf16, w_ref, b_ref, relu):
        acc = jnp.dot(h_bf16, w_ref[...], preferred_element_type=jnp.float32)
        acc = acc + b_ref[...]
        if relu:
            acc = jnp.maximum(acc, 0.0)
        return acc

    h = x_ref[...].astype(jnp.bfloat16)                   # in-kernel cast, [tile, in]
    h = dense(h, w1, b1, True).astype(jnp.bfloat16)
    h = dense(h, w2, b2, True).astype(jnp.bfloat16)
    h = dense(h, w3, b3, True).astype(jnp.bfloat16)
    h = dense(h, w4, b4, True).astype(jnp.bfloat16)
    h = dense(h, w5, b5, False).astype(jnp.bfloat16)      # last encoder layer: no ReLU
    o_ref[...] = dense(h, w6, b6, False).astype(o_ref.dtype)   # decoder: no activation


# -----------------------------------------------------------------------------
# One-time parameter preparation (hoisted out of the forward pass).
# -----------------------------------------------------------------------------
def prepare_params(params):
    """params: list of (W[in,out] f32, b[1,out] f32) for the 6 linear layers.

    Returns (flat_params_tuple, input_dim, output_dim, padded_output_dim)
    with bf16 weights and f32 biases, the last layer zero-padded to a
    128-lane-multiple output so the kernel's store is lane-dense.
    """
    n_layers = len(params)
    input_dim = params[0][0].shape[0]
    output_dim = params[-1][0].shape[1]
    out_p = _round_up(output_dim, _LANE)

    flat = []
    for li, (w, b) in enumerate(params):
        fi, fo = w.shape
        fo_p = out_p if li == n_layers - 1 else fo
        w_p = jnp.zeros((fi, fo_p), jnp.bfloat16).at[:, :fo].set(
            w.astype(jnp.bfloat16))
        b_p = jnp.zeros((1, fo_p), jnp.float32).at[:, :fo].set(
            b.astype(jnp.float32))
        flat.extend([w_p, b_p])
    return tuple(flat), input_dim, output_dim, out_p


# -----------------------------------------------------------------------------
# Generation-aware batch tile policy.
# -----------------------------------------------------------------------------
def _tensorcores_per_chip():
    try:
        kind = jax.devices()[0].device_kind.lower()
    except Exception:  # pragma: no cover - defensive
        return 1
    if "v7" in kind or "tpu7" in kind:
        return 2      # v7x: 2 TensorCores per chip
    return 1          # v5e / v6e: 1 TensorCore per chip


def _choose_batch_tile(B, num_cores):
    if num_cores >= 2:
        # Want >= 2 balanced parallel grid steps so both TCs get work;
        # cap tiles at 512 rows.
        tile = min(_round_up(-(-B // 2), 128), 512)
    else:
        # Single TC: one big tile (up to 1024 rows) -> one grid step for
        # small/medium batches, full MXU M fill.
        tile = min(_round_up(B, 128), 1024)
    if B <= 64:
        # Tiny batches: avoid padding far past B.
        tile = max(_round_up(B, 8), 8)
    return tile


# -----------------------------------------------------------------------------
# Forward pass.
# -----------------------------------------------------------------------------
@functools.partial(jax.jit,
                   static_argnames=("batch_tile", "output_dim",
                                    "keep_padded_output"))
def _forward_impl(x, flat_params, *, batch_tile, output_dim,
                  keep_padded_output):
    B, input_dim = x.shape
    out_p = flat_params[-1].shape[1]          # padded output width (lane-dense)
    out_dtype = x.dtype

    B_p = _round_up(B, batch_tile)
    if B_p != B:
        x = jnp.pad(x, ((0, B_p - B), (0, 0)))

    # x / out tiled over the batch; every weight/bias is a full-array block
    # with a constant index_map, so it stays VMEM-resident across steps.
    in_specs = [pl.BlockSpec((batch_tile, input_dim), lambda i: (i, 0))]
    for a in flat_params:
        in_specs.append(pl.BlockSpec(a.shape, lambda i: (0, 0)))
    out_spec = pl.BlockSpec((batch_tile, out_p), lambda i: (i, 0))

    fn = pl.pallas_call(
        _mlp_kernel,
        out_shape=jax.ShapeDtypeStruct((B_p, out_p), out_dtype),
        grid_spec=pltpu.PrefetchScalarGridSpec(
            num_scalar_prefetch=0,
            grid=(B_p // batch_tile,),
            in_specs=in_specs,
            out_specs=out_spec,
        ),
        compiler_params=pltpu.CompilerParams(
            dimension_semantics=("parallel",),
        ),
    )
    out = fn(x, *flat_params)
    if keep_padded_output:
        return out
    return out[:B, :output_dim]


def autoencoder_forward(x, prepared, *, batch_tile=None,
                        keep_padded_output=False):
    """x: [B, input_dim] float32; prepared: result of prepare_params()."""
    flat_params, _, output_dim, _ = prepared
    if batch_tile is None:
        batch_tile = _choose_batch_tile(x.shape[0], _tensorcores_per_chip())
    return _forward_impl(x, flat_params, batch_tile=batch_tile,
                         output_dim=output_dim,
                         keep_padded_output=keep_padded_output)


# -----------------------------------------------------------------------------
# Parameter init (PyTorch-like) and pure-JAX reference.
# -----------------------------------------------------------------------------
def init_params(key, input_dim, output_dim):
    """Deterministic init mimicking PyTorch nn.Linear (U(-1/sqrt(fan_in), +))."""
    dims_in = (input_dim,) + HIDDEN          # inputs of the 6 linear layers
    dims_out = HIDDEN + (output_dim,)        # outputs of the 6 linear layers
    params = []
    for fan_in, fan_out in zip(dims_in, dims_out):
        key, kw, kb = jax.random.split(key, 3)
        bound = 1.0 / jnp.sqrt(jnp.float32(fan_in))
        w = jax.random.uniform(kw, (fan_in, fan_out), jnp.float32, -bound, bound)
        b = jax.random.uniform(kb, (1, fan_out), jnp.float32, -bound, bound)
        params.append((w, b))
    return params


def reference_forward(x, params):
    """Pure-JAX f32 reference for correctness checking."""
    h = x
    for i, (w, b) in enumerate(params):
        h = h @ w + b
        if i < 4:  # ReLU after the first four encoder layers only
            h = jnp.maximum(h, 0.0)
    return h


if __name__ == "__main__":
    INPUT_DIM = 64
    OUTPUT_DIM = 64
    BATCH = 256   # small; one 256-row step on v5e/v6e, two 128-row steps on v7x

    key = jax.random.PRNGKey(0)
    key, kx = jax.random.split(key)
    x = jax.random.normal(kx, (BATCH, INPUT_DIM), jnp.float32)
    params = init_params(key, INPUT_DIM, OUTPUT_DIM)

    # One-time prep (padding + bf16 cast), reused across every forward call.
    prepared = prepare_params(params)

    out = autoencoder_forward(x, prepared)
    out = jax.block_until_ready(out)

    ref = reference_forward(x, params)
    assert out.shape == (BATCH, OUTPUT_DIM)
    max_err = float(jnp.max(jnp.abs(out - ref)))
    # bf16 matmul inputs with f32 accumulation -> loose tolerance vs f32 reference.
    assert jnp.allclose(out, ref, atol=1e-2, rtol=5e-2), (
        f"mismatch vs reference, max abs err={max_err}")

    print("KERNEL_OK")
</pallas_src>

<mosaic_0001>
module attributes {stable_mosaic.version = 11 : i64} {
  func.func @_mlp_kernel(%arg0: i32, %arg1: memref<256x64xf32, #tpu.memory_space<vmem>>, %arg2: memref<64x128xbf16, #tpu.memory_space<vmem>>, %arg3: memref<1x128xf32, #tpu.memory_space<vmem>>, %arg4: memref<128x256xbf16, #tpu.memory_space<vmem>>, %arg5: memref<1x256xf32, #tpu.memory_space<vmem>>, %arg6: memref<256x512xbf16, #tpu.memory_space<vmem>>, %arg7: memref<1x512xf32, #tpu.memory_space<vmem>>, %arg8: memref<512x256xbf16, #tpu.memory_space<vmem>>, %arg9: memref<1x256xf32, #tpu.memory_space<vmem>>, %arg10: memref<256x256xbf16, #tpu.memory_space<vmem>>, %arg11: memref<1x256xf32, #tpu.memory_space<vmem>>, %arg12: memref<256x128xbf16, #tpu.memory_space<vmem>>, %arg13: memref<1x128xf32, #tpu.memory_space<vmem>>, %arg14: memref<256x128xf32, #tpu.memory_space<vmem>>) attributes {dimension_semantics = [#tpu.dimension_semantics<parallel>], iteration_bounds = array<i64: 1>, scalar_prefetch = 0 : i64, scratch_operands = 0 : i64, tpu.core_type = #tpu.core_type<tc>, window_params = [{transform_indices = @transform_0, window_bounds = array<i64: 256, 64>}, {pipeline_mode = #tpu.pipeline_mode<synchronous>, transform_indices = @transform_1, window_bounds = array<i64: 64, 128>}, {pipeline_mode = #tpu.pipeline_mode<synchronous>, transform_indices = @transform_2, window_bounds = array<i64: 1, 128>}, {pipeline_mode = #tpu.pipeline_mode<synchronous>, transform_indices = @transform_3, window_bounds = array<i64: 128, 256>}, {pipeline_mode = #tpu.pipeline_mode<synchronous>, transform_indices = @transform_4, window_bounds = array<i64: 1, 256>}, {pipeline_mode = #tpu.pipeline_mode<synchronous>, transform_indices = @transform_5, window_bounds = array<i64: 256, 512>}, {pipeline_mode = #tpu.pipeline_mode<synchronous>, transform_indices = @transform_6, window_bounds = array<i64: 1, 512>}, {pipeline_mode = #tpu.pipeline_mode<synchronous>, transform_indices = @transform_7, window_bounds = array<i64: 512, 256>}, {pipeline_mode = #tpu.pipeline_mode<synchronous>, transform_indices = @transform_8, window_bounds = array<i64: 1, 256>}, {pipeline_mode = #tpu.pipeline_mode<synchronous>, transform_indices = @transform_9, window_bounds = array<i64: 256, 256>}, {pipeline_mode = #tpu.pipeline_mode<synchronous>, transform_indices = @transform_10, window_bounds = array<i64: 1, 256>}, {pipeline_mode = #tpu.pipeline_mode<synchronous>, transform_indices = @transform_11, window_bounds = array<i64: 256, 128>}, {pipeline_mode = #tpu.pipeline_mode<synchronous>, transform_indices = @transform_12, window_bounds = array<i64: 1, 128>}, {transform_indices = @transform_13, window_bounds = array<i64: 256, 128>}]} {
    %c0 = arith.constant 0 : index
    %c0_0 = arith.constant 0 : index
    %0 = vector.load %arg1[%c0, %c0_0] : memref<256x64xf32, #tpu.memory_space<vmem>>, vector<256x64xf32>
    %1 = arith.truncf %0 : vector<256x64xf32> to vector<256x64xbf16>
    %c0_1 = arith.constant 0 : index
    %c0_2 = arith.constant 0 : index
    %2 = vector.load %arg2[%c0_1, %c0_2] : memref<64x128xbf16, #tpu.memory_space<vmem>>, vector<64x128xbf16>
    %cst = arith.constant dense<0.000000e+00> : vector<256x128xf32>
    %3 = tpu.matmul %1, %2, %cst {dimension_numbers = #tpu.dot_dimension_numbers<[1], [0], [0], [1], [0, 0, 1, 1], [], []>} : vector<256x64xbf16>, vector<64x128xbf16>, vector<256x128xf32> -> vector<256x128xf32>
    %c0_3 = arith.constant 0 : index
    %c0_4 = arith.constant 0 : index
    %4 = vector.load %arg3[%c0_3, %c0_4] : memref<1x128xf32, #tpu.memory_space<vmem>>, vector<1x128xf32>
    %5 = vector.broadcast %4 : vector<1x128xf32> to vector<256x128xf32>
    %6 = arith.addf %3, %5 : vector<256x128xf32>
    %cst_5 = arith.constant 0.000000e+00 : f32
    %7 = vector.broadcast %cst_5 : f32 to vector<256x128xf32>
    %8 = arith.maximumf %6, %7 : vector<256x128xf32>
    %9 = arith.truncf %8 : vector<256x128xf32> to vector<256x128xbf16>
    %c0_6 = arith.constant 0 : index
    %c0_7 = arith.constant 0 : index
    %10 = vector.load %arg4[%c0_6, %c0_7] : memref<128x256xbf16, #tpu.memory_space<vmem>>, vector<128x256xbf16>
    %cst_8 = arith.constant dense<0.000000e+00> : vector<256x256xf32>
    %11 = tpu.matmul %9, %10, %cst_8 {dimension_numbers = #tpu.dot_dimension_numbers<[1], [0], [0], [1], [0, 0, 1, 1], [], []>} : vector<256x128xbf16>, vector<128x256xbf16>, vector<256x256xf32> -> vector<256x256xf32>
    %c0_9 = arith.constant 0 : index
    %c0_10 = arith.constant 0 : index
    %12 = vector.load %arg5[%c0_9, %c0_10] : memref<1x256xf32, #tpu.memory_space<vmem>>, vector<1x256xf32>
    %13 = vector.broadcast %12 : vector<1x256xf32> to vector<256x256xf32>
    %14 = arith.addf %11, %13 : vector<256x256xf32>
    %cst_11 = arith.constant 0.000000e+00 : f32
    %15 = vector.broadcast %cst_11 : f32 to vector<256x256xf32>
    %16 = arith.maximumf %14, %15 : vector<256x256xf32>
    %17 = arith.truncf %16 : vector<256x256xf32> to vector<256x256xbf16>
    %c0_12 = arith.constant 0 : index
    %c0_13 = arith.constant 0 : index
    %18 = vector.load %arg6[%c0_12, %c0_13] : memref<256x512xbf16, #tpu.memory_space<vmem>>, vector<256x512xbf16>
    %cst_14 = arith.constant dense<0.000000e+00> : vector<256x512xf32>
    %19 = tpu.matmul %17, %18, %cst_14 {dimension_numbers = #tpu.dot_dimension_numbers<[1], [0], [0], [1], [0, 0, 1, 1], [], []>} : vector<256x256xbf16>, vector<256x512xbf16>, vector<256x512xf32> -> vector<256x512xf32>
    %c0_15 = arith.constant 0 : index
    %c0_16 = arith.constant 0 : index
    %20 = vector.load %arg7[%c0_15, %c0_16] : memref<1x512xf32, #tpu.memory_space<vmem>>, vector<1x512xf32>
    %21 = vector.broadcast %20 : vector<1x512xf32> to vector<256x512xf32>
    %22 = arith.addf %19, %21 : vector<256x512xf32>
    %cst_17 = arith.constant 0.000000e+00 : f32
    %23 = vector.broadcast %cst_17 : f32 to vector<256x512xf32>
    %24 = arith.maximumf %22, %23 : vector<256x512xf32>
    %25 = arith.truncf %24 : vector<256x512xf32> to vector<256x512xbf16>
    %c0_18 = arith.constant 0 : index
    %c0_19 = arith.constant 0 : index
    %26 = vector.load %arg8[%c0_18, %c0_19] : memref<512x256xbf16, #tpu.memory_space<vmem>>, vector<512x256xbf16>
    %cst_20 = arith.constant dense<0.000000e+00> : vector<256x256xf32>
    %27 = tpu.matmul %25, %26, %cst_20 {dimension_numbers = #tpu.dot_dimension_numbers<[1], [0], [0], [1], [0, 0, 1, 1], [], []>} : vector<256x512xbf16>, vector<512x256xbf16>, vector<256x256xf32> -> vector<256x256xf32>
    %c0_21 = arith.constant 0 : index
    %c0_22 = arith.constant 0 : index
    %28 = vector.load %arg9[%c0_21, %c0_22] : memref<1x256xf32, #tpu.memory_space<vmem>>, vector<1x256xf32>
    %29 = vector.broadcast %28 : vector<1x256xf32> to vector<256x256xf32>
    %30 = arith.addf %27, %29 : vector<256x256xf32>
    %cst_23 = arith.constant 0.000000e+00 : f32
    %31 = vector.broadcast %cst_23 : f32 to vector<256x256xf32>
    %32 = arith.maximumf %30, %31 : vector<256x256xf32>
    %33 = arith.truncf %32 : vector<256x256xf32> to vector<256x256xbf16>
    %c0_24 = arith.constant 0 : index
    %c0_25 = arith.constant 0 : index
    %34 = vector.load %arg10[%c0_24, %c0_25] : memref<256x256xbf16, #tpu.memory_space<vmem>>, vector<256x256xbf16>
    %cst_26 = arith.constant dense<0.000000e+00> : vector<256x256xf32>
    %35 = tpu.matmul %33, %34, %cst_26 {dimension_numbers = #tpu.dot_dimension_numbers<[1], [0], [0], [1], [0, 0, 1, 1], [], []>} : vector<256x256xbf16>, vector<256x256xbf16>, vector<256x256xf32> -> vector<256x256xf32>
    %c0_27 = arith.constant 0 : index
    %c0_28 = arith.constant 0 : index
    %36 = vector.load %arg11[%c0_27, %c0_28] : memref<1x256xf32, #tpu.memory_space<vmem>>, vector<1x256xf32>
    %37 = vector.broadcast %36 : vector<1x256xf32> to vector<256x256xf32>
    %38 = arith.addf %35, %37 : vector<256x256xf32>
    %39 = arith.truncf %38 : vector<256x256xf32> to vector<256x256xbf16>
    %c0_29 = arith.constant 0 : index
    %c0_30 = arith.constant 0 : index
    %40 = vector.load %arg12[%c0_29, %c0_30] : memref<256x128xbf16, #tpu.memory_space<vmem>>, vector<256x128xbf16>
    %cst_31 = arith.constant dense<0.000000e+00> : vector<256x128xf32>
    %41 = tpu.matmul %39, %40, %cst_31 {dimension_numbers = #tpu.dot_dimension_numbers<[1], [0], [0], [1], [0, 0, 1, 1], [], []>} : vector<256x256xbf16>, vector<256x128xbf16>, vector<256x128xf32> -> vector<256x128xf32>
    %c0_32 = arith.constant 0 : index
    %c0_33 = arith.constant 0 : index
    %42 = vector.load %arg13[%c0_32, %c0_33] : memref<1x128xf32, #tpu.memory_space<vmem>>, vector<1x128xf32>
    %43 = vector.broadcast %42 : vector<1x128xf32> to vector<256x128xf32>
    %44 = arith.addf %41, %43 : vector<256x128xf32>
    %c0_34 = arith.constant 0 : index
    %c0_35 = arith.constant 0 : index
    %45 = vector.load %arg14[%c0_34, %c0_35] : memref<256x128xf32, #tpu.memory_space<vmem>>, vector<256x128xf32>
    tpu.vector_store %arg14[%c0_34, %c0_35], %44 {strides = array<i32>} : memref<256x128xf32, #tpu.memory_space<vmem>>, vector<256x128xf32>,
    return
  }
  func.func @transform_0(%arg0: i32) -> (i32, i32) {
    %c0_i32 = arith.constant 0 : i32
    %c0_i32_0 = arith.constant 0 : i32
    return %arg0, %c0_i32 : i32, i32
  }
  func.func @transform_1(%arg0: i32) -> (i32, i32) {
    %c0_i32 = arith.constant 0 : i32
    %c0_i32_0 = arith.constant 0 : i32
    %c0_i32_1 = arith.constant 0 : i32
    return %c0_i32, %c0_i32_0 : i32, i32
  }
  func.func @transform_2(%arg0: i32) -> (i32, i32) {
    %c0_i32 = arith.constant 0 : i32
    %c0_i32_0 = arith.constant 0 : i32
    %c0_i32_1 = arith.constant 0 : i32
    return %c0_i32, %c0_i32_0 : i32, i32
  }
  func.func @transform_3(%arg0: i32) -> (i32, i32) {
    %c0_i32 = arith.constant 0 : i32
    %c0_i32_0 = arith.constant 0 : i32
    %c0_i32_1 = arith.constant 0 : i32
    return %c0_i32, %c0_i32_0 : i32, i32
  }
  func.func @transform_4(%arg0: i32) -> (i32, i32) {
    %c0_i32 = arith.constant 0 : i32
    %c0_i32_0 = arith.constant 0 : i32
    %c0_i32_1 = arith.constant 0 : i32
    return %c0_i32, %c0_i32_0 : i32, i32
  }
  func.func @transform_5(%arg0: i32) -> (i32, i32) {
    %c0_i32 = arith.constant 0 : i32
    %c0_i32_0 = arith.constant 0 : i32
    %c0_i32_1 = arith.constant 0 : i32
    return %c0_i32, %c0_i32_0 : i32, i32
  }
  func.func @transform_6(%arg0: i32) -> (i32, i32) {
    %c0_i32 = arith.constant 0 : i32
    %c0_i32_0 = arith.constant 0 : i32
    %c0_i32_1 = arith.constant 0 : i32
    return %c0_i32, %c0_i32_0 : i32, i32
  }
  func.func @transform_7(%arg0: i32) -> (i32, i32) {
    %c0_i32 = arith.constant 0 : i32
    %c0_i32_0 = arith.constant 0 : i32
    %c0_i32_1 = arith.constant 0 : i32
    return %c0_i32, %c0_i32_0 : i32, i32
  }
  func.func @transform_8(%arg0: i32) -> (i32, i32) {
    %c0_i32 = arith.constant 0 : i32
    %c0_i32_0 = arith.constant 0 : i32
    %c0_i32_1 = arith.constant 0 : i32
    return %c0_i32, %c0_i32_0 : i32, i32
  }
  func.func @transform_9(%arg0: i32) -> (i32, i32) {
    %c0_i32 = arith.constant 0 : i32
    %c0_i32_0 = arith.constant 0 : i32
    %c0_i32_1 = arith.constant 0 : i32
    return %c0_i32, %c0_i32_0 : i32, i32
  }
  func.func @transform_10(%arg0: i32) -> (i32, i32) {
    %c0_i32 = arith.constant 0 : i32
    %c0_i32_0 = arith.constant 0 : i32
    %c0_i32_1 = arith.constant 0 : i32
    return %c0_i32, %c0_i32_0 : i32, i32
  }
  func.func @transform_11(%arg0: i32) -> (i32, i32) {
    %c0_i32 = arith.constant 0 : i32
    %c0_i32_0 = arith.constant 0 : i32
    %c0_i32_1 = arith.constant 0 : i32
    return %c0_i32, %c0_i32_0 : i32, i32
  }
  func.func @transform_12(%arg0: i32) -> (i32, i32) {
    %c0_i32 = arith.constant 0 : i32
    %c0_i32_0 = arith.constant 0 : i32
    %c0_i32_1 = arith.constant 0 : i32
    return %c0_i32, %c0_i32_0 : i32, i32
  }
  func.func @transform_13(%arg0: i32) -> (i32, i32) {
    %c0_i32 = arith.constant 0 : i32
    %c0_i32_0 = arith.constant 0 : i32
    return %arg0, %c0_i32 : i32, i32
  }
}

</mosaic_0001>

<bundles_post_ra>
// kernel: _forward_impl.1
= control target key start
LH: loop header
LB: loop body
LE: loop exit
PB: predicated region body
PF: predicated region fallthrough
CT: control target
= control target key end

     0   :  { %18 = vsyncpa [#allocation3], 0  ;;  %s5590_s0 = inlined_call_operand.vmem [shape: f32[256,64], index: 0, kind: input, shape index: {}]   ;;  %s5591_s1 = inlined_call_operand.vmem [shape: bf16[64,128], index: 1, kind: input, shape index: {}]   ;;  %s5592_s2 = inlined_call_operand.hbm [shape: f32[1,128], index: 2, kind: input, shape index: {}]   ;;  %s5593_s3 = inlined_call_operand.vmem [shape: bf16[128,256], index: 3, kind: input, shape index: {}]   ;;  %s5594_s4 = inlined_call_operand.vmem [shape: f32[1,256], index: 4, kind: input, shape index: {}]   ;;  %s5595_s5 = inlined_call_operand.hbm [shape: bf16[256,512], index: 5, kind: input, shape index: {}]   ;;  %s5596_s6 = inlined_call_operand.hbm [shape: f32[1,512], index: 6, kind: input, shape index: {}]   ;;  %s5597_s7 = inlined_call_operand.hbm [shape: bf16[512,256], index: 7, kind: input, shape index: {}]   ;;  %s5598_s8 = inlined_call_operand.hbm [shape: f32[1,256], index: 8, kind: input, shape index: {}]   ;;  %s5599_s9 = inlined_call_operand.vmem [shape: bf16[256,256], index: 9, kind: input, shape index: {}]   ;;  %s5600_s10 = inlined_call_operand.vmem [shape: f32[1,256], index: 10, kind: input, shape index: {}]   ;;  %s5601_s11 = inlined_call_operand.hbm [shape: bf16[256,128], index: 11, kind: input, shape index: {}]   ;;  %s5602_s12 = inlined_call_operand.vmem [shape: f32[1,128], index: 12, kind: input, shape index: {}]   ;;  %s5603_s13 = inlined_call_operand.vmem [shape: f32[256,128], index: 13, kind: output, shape index: {}]  }
   0x1   :  { %19 = vsyncpa [#allocation5], 0 }
   0x2   :  { %20 = vsyncpa [#allocation8], 0 }
   0x3   :  { %21 = vsyncpa [#allocation11], 0  ;;  %s4473_s25 = smov [#allocation4]   ;;  %s4333_s29 = scalar_lea.hbm %s5595_s5, 8192 }
   0x4   :  { %s45_s26 = sshll.u32 %s4473_s25, 4  ;;  %p4334_p0 = scmp.ne.s32.totalorder %s5595_s5, %s4333_s29  ;;  %s46_s26 = int_to_ptr.vmem [resolvable:$true] %s45_s26 }
   0x5   :  { %p4337_p1 = scmp.lt.u32.totalorder %s4333_s29, %s5595_s5 }
   0x7   :  { %p4339_p2 = pnand %p4337_p1, %p4334_p0 }
   0x9   :  { %4342 = shalt.err (!%p4339_p2)
}
   0xa   :  { %s4343_s17 = scalar_lea.vmem %s46_s26, 8192  ;;  %p4348_p4 = scmp.lt.s32.totalorder %s46_s26, %s46_s26 }
   0xb   :  { %p4344_p3 = scmp.ne.s32.totalorder %s46_s26, %s4343_s17  ;;  %p4349_p5 = scmp.lt.s32.totalorder %s4343_s17, %s4343_s17 }
   0xd   :  { %p4350_p6 = por %p4349_p5, %p4348_p4 }
   0xf   :  { %p4351_p7 = pnand %p4350_p6, %p4344_p3 }
  0x11   :  { %4354 = shalt.err (!%p4351_p7)
}
  0x12   :  { %s4474_s18 = smov 256   ;;  %s4475_s19 = smov 16  }
  0x13   :  { %51 = dma.hbm_to_vmem [thread:$0]  %s5595_s5, 8192, %s46_s26, [#allocation5], %s4474_s18, %s4474_s18, %s4475_s19  }
  0x14   :  { %s4476_s22 = smov [#allocation7]   ;;  %s4355_s27 = scalar_lea.hbm %s5597_s7, 8192 }
  0x15   :  { %s67_s23 = sshll.u32 %s4476_s22, 4  ;;  %p4356_p8 = scmp.ne.s32.totalorder %s5597_s7, %s4355_s27  ;;  %s68_s23 = int_to_ptr.vmem [resolvable:$true] %s67_s23 }
  0x16   :  { %p4359_p9 = scmp.lt.u32.totalorder %s4355_s27, %s5597_s7 }
  0x18   :  { %p4361_p10 = pnand %p4359_p9, %p4356_p8 }
  0x1a   :  { %4364 = shalt.err (!%p4361_p10)
}
  0x1b   :  { %s4365_s15 = scalar_lea.vmem %s68_s23, 8192  ;;  %p4370_p12 = scmp.lt.s32.totalorder %s68_s23, %s68_s23 }
  0x1c   :  { %p4366_p11 = scmp.ne.s32.totalorder %s68_s23, %s4365_s15  ;;  %p4371_p13 = scmp.lt.s32.totalorder %s4365_s15, %s4365_s15 }
  0x1e   :  { %p4372_p0 = por %p4371_p13, %p4370_p12 }
  0x20   :  { %p4373_p1 = pnand %p4372_p0, %p4366_p11 }
  0x22   :  { %4376 = shalt.err (!%p4373_p1)
}
  0x23   :  { %s4477_s5 = smov 128   ;;  %s4478_s26 = smov 8  }
  0x24   :  { %73 = dma.hbm_to_vmem [thread:$0]  %s5597_s7, 8192, %s68_s23, [#allocation8], %s4477_s5, %s4477_s5, %s4478_s26  }
  0x25   :  { %s4479_s18 = smov [#allocation2]   ;;  %s4480_s20 = smov [#allocation6]  }
  0x26   :  { %s32_s19 = sshll.u32 %s4479_s18, 4  ;;  %s58_s21 = sshll.u32 %s4480_s20, 4  ;;  %s33_s19 = int_to_ptr.vmem [resolvable:$true] %s32_s19  ;;  %s59_s21 = int_to_ptr.vmem [resolvable:$true] %s58_s21 }
  0x27   :  { %s4377_s25 = scalar_lea.hbm %s5592_s2, 16 }
  0x28   :  { %p4378_p2 = scmp.ne.s32.totalorder %s5592_s2, %s4377_s25  ;;  %p4381_p3 = scmp.lt.u32.totalorder %s4377_s25, %s5592_s2 }
  0x2a   :  { %p4383_p4 = pnand %p4381_p3, %p4378_p2 }
  0x2c   :  { %4386 = shalt.err (!%p4383_p4)
}
  0x2d   :  { %s4387_s7 = scalar_lea.vmem %s33_s19, 16  ;;  %s4391_s23 = scalar_lea.vmem %s33_s19, 32 }
  0x2e   :  { %p4388_p5 = scmp.ne.s32.totalorder %s33_s19, %s4387_s7  ;;  %p4392_p6 = scmp.lt.s32.totalorder %s33_s19, %s33_s19 }
  0x2f   :  { %p4393_p7 = scmp.lt.s32.totalorder %s4391_s23, %s4387_s7 }
  0x31   :  { %p4394_p8 = por %p4393_p7, %p4392_p6 }
  0x33   :  { %p4395_p9 = pnand %p4394_p8, %p4388_p5 }
  0x35   :  { %4398 = shalt.err (!%p4395_p9)
}
  0x36   :  { %35 = dma.hbm_to_vmem [thread:$0]  %s5592_s2, 16, %s33_s19, [#allocation3]  }
  0x37   :  { %s4399_s16 = scalar_lea.hbm %s5596_s6, 64 }
  0x38   :  { %p4400_p10 = scmp.ne.s32.totalorder %s5596_s6, %s4399_s16  ;;  %p4403_p11 = scmp.lt.u32.totalorder %s4399_s16, %s5596_s6 }
  0x3a   :  { %p4405_p12 = pnand %p4403_p11, %p4400_p10 }
  0x3c   :  { %4408 = shalt.err (!%p4405_p12)
}
  0x3d   :  { %s4409_s24 = scalar_lea.vmem %s59_s21, 64  ;;  %p4414_p0 = scmp.lt.s32.totalorder %s59_s21, %s59_s21 }
  0x3e   :  { %p4410_p13 = scmp.ne.s32.totalorder %s59_s21, %s4409_s24  ;;  %p4415_p1 = scmp.lt.s32.totalorder %s4409_s24, %s4409_s24 }
  0x40   :  { %p4416_p2 = por %p4415_p1, %p4414_p0 }
  0x42   :  { %p4417_p3 = pnand %p4416_p2, %p4410_p13 }
  0x44   :  { %4420 = shalt.err (!%p4417_p3)
}
  0x45   :  { %61 = dma.hbm_to_vmem [thread:$0]  %s5596_s6, 64, %s59_s21, [#allocation5]  }
  0x46   :  { %s4481_s25 = smov [#allocation9]   ;;  %s4482_s28 = smov [#allocation10]  }
  0x47   :  { %s80_s27 = sshll.u32 %s4481_s25, 4  ;;  %s93_s29 = sshll.u32 %s4482_s28, 4  ;;  %s81_s27 = int_to_ptr.vmem [resolvable:$true] %s80_s27  ;;  %s4604_s29 = int_to_ptr.vmem [resolvable:$true] %s93_s29 }
  0x48   :  { %s4421_s23 = scalar_lea.hbm %s5598_s8, 32 }
  0x49   :  { %p4422_p4 = scmp.ne.s32.totalorder %s5598_s8, %s4421_s23  ;;  %p4425_p5 = scmp.lt.u32.totalorder %s4421_s23, %s5598_s8 }
  0x4b   :  { %p4427_p6 = pnand %p4425_p5, %p4422_p4 }
  0x4d   :  { %4430 = shalt.err (!%p4427_p6)
}
  0x4e   :  { %s4431_s6 = scalar_lea.vmem %s81_s27, 32  ;;  %p4436_p8 = scmp.lt.s32.totalorder %s81_s27, %s81_s27 }
  0x4f   :  { %p4432_p7 = scmp.ne.s32.totalorder %s81_s27, %s4431_s6  ;;  %p4437_p9 = scmp.lt.s32.totalorder %s4431_s6, %s4431_s6 }
  0x51   :  { %p4438_p10 = por %p4437_p9, %p4436_p8 }
  0x53   :  { %p4439_p11 = pnand %p4438_p10, %p4432_p7 }
  0x55   :  { %4442 = shalt.err (!%p4439_p11)
}
  0x56   :  { %83 = dma.hbm_to_vmem [thread:$0]  %s5598_s8, 32, %s81_s27, [#allocation8]  }
  0x57   :  { %s4443_s20 = scalar_lea.hbm %s5601_s11, 2048 }
  0x58   :  { %p4444_p12 = scmp.ne.s32.totalorder %s5601_s11, %s4443_s20  ;;  %p4447_p13 = scmp.lt.u32.totalorder %s4443_s20, %s5601_s11 }
  0x5a   :  { %p4449_p0 = pnand %p4447_p13, %p4444_p12 }
  0x5c   :  { %4452 = shalt.err (!%p4449_p0)
}
  0x5d   :  { %s4453_s25 = scalar_lea.vmem %s4604_s29, 2048  ;;  %p4458_p2 = scmp.lt.s32.totalorder %s4604_s29, %s4604_s29 }
  0x5e   :  { %p4454_p1 = scmp.ne.s32.totalorder %s4604_s29, %s4453_s25  ;;  %p4459_p3 = scmp.lt.s32.totalorder %s4453_s25, %s4453_s25 }
  0x60   :  { %p4460_p4 = por %p4459_p3, %p4458_p2 }
  0x62   :  { %p4461_p5 = pnand %p4460_p4, %p4454_p1 }
  0x64   :  { %4464 = shalt.err (!%p4461_p5)
}
  0x65   :  { %s4483_s8 = smov 64   ;;  %s4484_s27 = smov 4  }
  0x66   :  { %99 = dma.hbm_to_vmem [thread:$0]  %s5601_s11, 2048, %s4604_s29, [#allocation11], %s4483_s8, %s4483_s8, %s4484_s27  }
  0x67   :  { %4465 = dma.done.wait [#allocation3], 16  }
  0x68   :  { %4466 = vsyncadd [#allocation3], 4294967280 }
  0x69   :  { %4467 = dma.done.wait [#allocation5], 8256  }
  0x6a   :  { %4468 = vsyncadd [#allocation5], 4294959040 }
  0x6b   :  { %4469 = dma.done.wait [#allocation8], 8224  }
  0x6c   :  { %4470 = vsyncadd [#allocation8], 4294959072 }
  0x6d   :  { %4471 = dma.done.wait [#allocation11], 2048  }
  0x6e   :  { %4472 = vsyncadd [#allocation11], 4294965248  ;;  %v4049_v0 = vld [vmem:[%s5591_s1] sm:$0xff]   ;;  %v4050_v1 = vld [vmem:[%s5591_s1 + $0x8] sm:$0xff]   ;;  %vm208_vm0 = vcmask 523264  }
  0x6f   :  { %3836 = vmatprep.subr.bf16.mxu0 %v4049_v0  ;;  %v4051_v2 = vld [vmem:[%s5591_s1 + $0x10] sm:$0xff]   ;;  %v121_v3 = vld [vmem:[%s5590_s0] sm:$0xff]  ;;  %v122_v4 = vld [vmem:[%s5590_s0 + $0x8] sm:$0xff] }
  0x70   :  { %3837 = vmatpush3.bf16.msra.mxu0 %v4049_v0  ;;  %v153_v5 = vpack.c.bf16 %v122_v4, %v121_v3  ;;  %v4052_v6 = vld [vmem:[%s5591_s1 + $0x18] sm:$0xff]   ;;  %v123_v7 = vld [vmem:[%s5590_s0 + $0x10] sm:$0xff]  ;;  %v125_v9 = vld [vmem:[%s5590_s0 + $0x20] sm:$0xff]  ;;  %v4485_v4 = vmov 0  }
  0x71   :  { %3838 = vmatprep.subr.bf16.mxu0 %v4050_v1  ;;  %v124_v8 = vld [vmem:[%s5590_s0 + $0x18] sm:$0xff]  ;;  %v126_v10 = vld [vmem:[%s5590_s0 + $0x28] sm:$0xff]  ;;  %v127_v16 = vld [vmem:[%s5590_s0 + $0x30] sm:$0xff]  ;;  %606 = vmatprep.mubr.bf16.mxu1 %v4485_v4 }
  0x72   :  { %3844 = vmatprep.mubr.msk.bf16.mxu0 %vm208_vm0, %v153_v5  ;;  %v154_v11 = vpack.c.bf16 %v124_v8, %v123_v7  ;;  %v155_v12 = vpack.c.bf16 %v126_v10, %v125_v9  ;;  %v4053_v13 = vld [vmem:[%s5593_s3 + $0x4] ss:$8 sps:$4 sm:$0xff]   ;;  %v4055_v14 = vld [vmem:[%s5593_s3] ss:$8 sps:$4 sm:$0xff]   ;;  %v4056_v15 = vld [vmem:[%s5593_s3 + $0x14] ss:$8 sps:$4 sm:$0xff]  }
  0x73   :  { %574 = vmatprep.subr.bf16.mxu1 %v4053_v13  ;;  %v128_v17 = vld [vmem:[%s5590_s0 + $0x38] sm:$0xff]  ;;  %v129_v19 = vld [vmem:[%s5590_s0 + $0x40] sm:$0xff]  ;;  %v130_v21 = vld [vmem:[%s5590_s0 + $0x48] sm:$0xff] }
  0x74   :  { %3839 = vmatpush3.bf16.msra.mxu0 %v4050_v1  ;;  %575 = vmatpush1.bf16.msra.mxu1 %v4055_v14  ;;  %v4058_v18 = vld [vmem:[%s5593_s3 + $0x10] ss:$8 sps:$4 sm:$0xff]   ;;  %v4059_v20 = vld [vmem:[%s5593_s3 + $0x24] ss:$8 sps:$4 sm:$0xff]   ;;  %v156_v22 = vpack.c.bf16 %v128_v17, %v127_v16  ;;  %v4061_v23 = vld [vmem:[%s5593_s3 + $0x20] ss:$8 sps:$4 sm:$0xff]   ;;  %v157_v25 = vpack.c.bf16 %v130_v21, %v129_v19 }
  0x75   :  { %3840 = vmatprep.subr.bf16.mxu0 %v4051_v2  ;;  %576 = vmatprep.subr.bf16.mxu1 %v4056_v15  ;;  %v4062_v24 = vld [vmem:[%s5593_s3 + $0x34] ss:$8 sps:$4 sm:$0xff]   ;;  %v4064_v26 = vld [vmem:[%s5593_s3 + $0x30] ss:$8 sps:$4 sm:$0xff]   ;;  %v4065_v29 = vld [vmem:[%s5593_s3 + $0x44] ss:$8 sps:$4 sm:$0xff]  }
  0x76   :  { %v131_v27 = vld [vmem:[%s5590_s0 + $0x50] sm:$0xff]  ;;  %v132_v28 = vld [vmem:[%s5590_s0 + $0x58] sm:$0xff]  ;;  %v133_v30 = vld [vmem:[%s5590_s0 + $0x60] sm:$0xff] }
  0x77   :  { %v134_v31 = vld [vmem:[%s5590_s0 + $0x68] sm:$0xff]  ;;  %v4068_v33 = vld [vmem:[%s5593_s3 + $0x54] ss:$8 sps:$4 sm:$0xff]   ;;  %v158_v34 = vpack.c.bf16 %v132_v28, %v131_v27  ;;  %v4070_v36 = vld [vmem:[%s5593_s3 + $0x50] ss:$8 sps:$4 sm:$0xff]  }
  0x78   :  { %3841 = vmatpush3.bf16.msra.mxu0 %v4051_v2  ;;  %577 = vmatpush1.bf16.msra.mxu1 %v4058_v18  ;;  %v4067_v32 = vld [vmem:[%s5593_s3 + $0x40] ss:$8 sps:$4 sm:$0xff]   ;;  %v159_v35 = vpack.c.bf16 %v134_v31, %v133_v30  ;;  %v135_v37 = vld [vmem:[%s5590_s0 + $0x70] sm:$0xff]  ;;  %v136_v38 = vld [vmem:[%s5590_s0 + $0x78] sm:$0xff] }
  0x79   :  { %3842 = vmatprep.subr.bf16.mxu0 %v4052_v6  ;;  %578 = vmatprep.subr.bf16.mxu1 %v4059_v20  ;;  %v137_v39 = vld [vmem:[%s5590_s0 + $0x80] sm:$0xff]  ;;  %v138_v40 = vld [vmem:[%s5590_s0 + $0x88] sm:$0xff]  ;;  %v160_v41 = vpack.c.bf16 %v136_v38, %v135_v37  ;;  %v139_v43 = vld [vmem:[%s5590_s0 + $0x90] sm:$0xff] }
  0x7a   :  { %v161_v42 = vpack.c.bf16 %v138_v40, %v137_v39  ;;  %v140_v44 = vld [vmem:[%s5590_s0 + $0x98] sm:$0xff]  ;;  %v141_v45 = vld [vmem:[%s5590_s0 + $0xa0] sm:$0xff]  ;;  %v142_v46 = vld [vmem:[%s5590_s0 + $0xa8] sm:$0xff] }
  0x7b   :  { %v162_v47 = vpack.c.bf16 %v140_v44, %v139_v43  ;;  %v163_v48 = vpack.c.bf16 %v142_v46, %v141_v45  ;;  %v143_v49 = vld [vmem:[%s5590_s0 + $0xb0] sm:$0xff]  ;;  %v144_v50 = vld [vmem:[%s5590_s0 + $0xb8] sm:$0xff]  ;;  %v145_v51 = vld [vmem:[%s5590_s0 + $0xc0] sm:$0xff] }
  0x7c   :  { %3843 = vmatpush3.bf16.msra.mxu0 %v4052_v6  ;;  %579 = vmatpush1.bf16.msra.mxu1 %v4061_v23  ;;  %v146_v52 = vld [vmem:[%s5590_s0 + $0xc8] sm:$0xff]  ;;  %v164_v53 = vpack.c.bf16 %v144_v50, %v143_v49  ;;  %v147_v55 = vld [vmem:[%s5590_s0 + $0xd0] sm:$0xff]  ;;  %v148_v56 = vld [vmem:[%s5590_s0 + $0xd8] sm:$0xff] }
  0x7d   :  { %580 = vmatprep.subr.bf16.mxu1 %v4062_v24  ;;  %v165_v54 = vpack.c.bf16 %v146_v52, %v145_v51  ;;  %v149_v57 = vld [vmem:[%s5590_s0 + $0xe0] sm:$0xff]  ;;  %v150_v58 = vld [vmem:[%s5590_s0 + $0xe8] sm:$0xff]  ;;  %v166_v59 = vpack.c.bf16 %v148_v56, %v147_v55  ;;  %v151_v61 = vld [vmem:[%s5590_s0 + $0xf0] sm:$0xff] }
  0x7e   :  { %v167_v60 = vpack.c.bf16 %v150_v58, %v149_v57  ;;  %v152_v62 = vld [vmem:[%s5590_s0 + $0xf8] sm:$0xff]  ;;  %v4071_v0 = vld [vmem:[%s5593_s3 + $0x64] ss:$8 sps:$4 sm:$0xff]   ;;  %v4073_v1 = vld [vmem:[%s5593_s3 + $0x60] ss:$8 sps:$4 sm:$0xff]  }
  0x7f   :  { %3845 = vmatmul.mubr.msk.bf16.vlgmr.msra.gmra.mrb[0].mxu0 %vm208_vm0, %v154_v11  ;;  %v168_v63 = vpack.c.bf16 %v152_v62, %v151_v61  ;;  %v4074_v2 = vld [vmem:[%s5593_s3 + $0x74] ss:$8 sps:$4 sm:$0xff]   ;;  %v4076_v3 = vld [vmem:[%s5593_s3 + $0x70] ss:$8 sps:$4 sm:$0xff]   ;;  %v4808_v5 = vld [vmem:[#allocation2] ss:$0 sm:$0xff] }
  0x80   :  { %3848 = vmatprep.mubr.msk.bf16.mxu0 %vm208_vm0, %v155_v12  ;;  %581 = vmatpush1.bf16.msra.mxu1 %v4064_v26  ;;  %v4077_v11 = vld [vmem:[#allocation4] ss:$16 sps:$4 sm:$0xff]   ;;  %v4079_v12 = vld [vmem:[#allocation4 + $0x4] ss:$16 sps:$4 sm:$0xff]   ;;  %v4082_v15 = vld [vmem:[#allocation4 + $0xc] ss:$16 sps:$4 sm:$0xff]  }
  0x81   :  { %582 = vmatprep.subr.bf16.mxu1 %v4065_v29  ;;  %1269 = vmatprep.subr.bf16.mxu0 %v4079_v12  ;;  %v4085_v17 = vld [vmem:[#allocation4 + $0x24] ss:$16 sps:$4 sm:$0xff]   ;;  %v4083_v20 = vld [vmem:[#allocation4 + $0x20] ss:$16 sps:$4 sm:$0xff]   ;;  %v4088_v28 = vld [vmem:[#allocation4 + $0x2c] ss:$16 sps:$4 sm:$0xff]  }
  0x82   :  { %1270 = vmatpush1.bf16.msra.mxu0 %v4077_v11  ;;  %v4091_v23 = vld [vmem:[#allocation4 + $0x44] ss:$16 sps:$4 sm:$0xff]   ;;  %v4089_v31 = vld [vmem:[#allocation4 + $0x40] ss:$16 sps:$4 sm:$0xff]   ;;  %v4086_v38 = vld [vmem:[#allocation4 + $0x28] ss:$16 sps:$4 sm:$0xff]  }
  0x83   :  { %1271 = vmatprep.subr.bf16.mxu0 %v4085_v17  ;;  %v4095_v43 = vld [vmem:[#allocation4 + $0x60] ss:$16 sps:$4 sm:$0xff]   ;;  %v4103_v45 = vld [vmem:[#allocation4 + $0x84] ss:$16 sps:$4 sm:$0xff]   ;;  %v4100_v50 = vld [vmem:[#allocation4 + $0x6c] ss:$16 sps:$4 sm:$0xff]  }
  0x84   :  { %583 = vmatpush1.bf16.msra.mxu1 %v4067_v32  ;;  %v4109_v56 = vld [vmem:[#allocation4 + $0xa4] ss:$16 sps:$4 sm:$0xff]  }
  0x85   :  { %584 = vmatprep.subr.bf16.mxu1 %v4068_v33 }
  0x86   :  { %1272 = vmatpush1.bf16.msra.mxu0 %v4083_v20  ;;  %v4110_v20 = vld [vmem:[#allocation4 + $0xa8] ss:$16 sps:$4 sm:$0xff]  }
  0x87   :  { %3849 = vmatmul.mubr.msk.bf16.gmra.mrb[4].mxu0 %vm208_vm0, %v156_v22  ;;  %1273 = vmatprep.subr.bf16.mxu0 %v4091_v23  ;;  %v4118_v23 = vld [vmem:[#allocation4 + $0xcc] ss:$16 sps:$4 sm:$0xff]  }
  0x88   :  { %3852 = vmatprep.mubr.msk.bf16.mxu0 %vm208_vm0, %v157_v25  ;;  %585 = vmatpush1.bf16.msra.mxu1 %v4070_v36  ;;  %v4080_v25 = vld [vmem:[#allocation4 + $0x8] ss:$16 sps:$4 sm:$0xff]  }
  0x89   :  { %586 = vmatprep.subr.bf16.mxu1 %v4071_v0 }
  0x8a   :  { %1274 = vmatpush1.bf16.msra.mxu0 %v4089_v31 }
  0x8c   :  { %587 = vmatpush1.bf16.msra.mxu1 %v4073_v1  ;;  %v4107_v1 = vld [vmem:[#allocation4 + $0xa0] ss:$16 sps:$4 sm:$0xff]  }
  0x8d   :  { %588 = vmatprep.subr.bf16.mxu1 %v4074_v2 }
  0x8f   :  { %3853 = vmatmul.mubr.msk.bf16.gmra.mrb[8].mxu0 %vm208_vm0, %v158_v34  ;;  %v4097_v34 = vld [vmem:[#allocation4 + $0x64] ss:$16 sps:$4 sm:$0xff]  }
  0x90   :  { %3856 = vmatprep.mubr.msk.bf16.mxu0 %vm208_vm0, %v159_v35  ;;  %589 = vmatpush1.bf16.msra.mxu1 %v4076_v3  ;;  %v4115_v3 = vld [vmem:[#allocation4 + $0xc4] ss:$16 sps:$4 sm:$0xff]  }
  0x91   :  { %1462 = vmatprep.subr.bf16.mxu1 %v4082_v15  ;;  %1275 = vmatprep.subr.bf16.mxu0 %v4097_v34 }
  0x92   :  { %1276 = vmatpush1.bf16.msra.mxu0 %v4095_v43 }
  0x93   :  { %1277 = vmatprep.subr.bf16.mxu0 %v4103_v45  ;;  %v4130_v45 = vld [vmem:[#allocation4 + $0x10c] ss:$16 sps:$4 sm:$0xff]  }
  0x97   :  { %3857 = vmatmul.mubr.msk.bf16.gmra.mrb[12].mxu0 %vm208_vm0, %v160_v41  ;;  %v4094_v41 = vld [vmem:[#allocation4 + $0x4c] ss:$16 sps:$4 sm:$0xff]  }
  0x98   :  { %3860 = vmatprep.mubr.msk.bf16.mxu0 %vm208_vm0, %v161_v42 }
  0x9f   :  { %3861 = vmatmul.mubr.msk.bf16.gmra.mrb[16].mxu0 %vm208_vm0, %v162_v47  ;;  %v4092_v47 = vld [vmem:[#allocation4 + $0x48] ss:$16 sps:$4 sm:$0xff]  }
  0xa0   :  { %3864 = vmatprep.mubr.msk.bf16.mxu0 %vm208_vm0, %v163_v48 }
  0xa7   :  { %3865 = vmatmul.mubr.msk.bf16.gmra.mrb[20].mxu0 %vm208_vm0, %v164_v53  ;;  %v4101_v53 = vld [vmem:[#allocation4 + $0x80] ss:$16 sps:$4 sm:$0xff]  }
  0xa8   :  { %3868 = vmatprep.mubr.msk.bf16.mxu0 %vm208_vm0, %v165_v54  ;;  %1278 = vmatpush1.bf16.msra.mxu0 %v4101_v53 }
  0xa9   :  { %1279 = vmatprep.subr.bf16.mxu0 %v4109_v56 }
  0xac   :  { %1280 = vmatpush1.bf16.msra.mxu0 %v4107_v1 }
  0xad   :  { %1281 = vmatprep.subr.bf16.mxu0 %v4115_v3  ;;  %v4142_v3 = vld [vmem:[#allocation4 + $0x14c] ss:$16 sps:$4 sm:$0xff]  }
  0xaf   :  { %3869 = vmatmul.mubr.msk.bf16.gmra.mrb[24].mxu0 %vm208_vm0, %v166_v59 }
  0xb0   :  { %3872 = vmatprep.mubr.msk.bf16.mxu0 %vm208_vm0, %v167_v60  ;;  %v4098_v60 = vld [vmem:[#allocation4 + $0x68] ss:$16 sps:$4 sm:$0xff]  }
  0xb7   :  { %3873 = vmatmul.mubr.msk.bf16.gmra.mrb[28].mxu0 %vm208_vm0, %v168_v63  ;;  %v4106_v63 = vld [vmem:[#allocation4 + $0x8c] ss:$16 sps:$4 sm:$0xff]  }
 0x152   :  { %v3846_v6 = vpop.f32.mrb[0].mxu0 }
 0x153   :  { %v300_v7 = vadd.f32 %v3846_v6, %v4808_v5  ;;  %v291_v8 = vpop.f32.mrb[1].mxu0 }
 0x154   :  { %v292_v9 = vadd.f32 %v4808_v5, %v291_v8  ;;  %v3847_v10 = vpop.f32.mrb[2].mxu0 }
 0x155   :  { %v303_v13 = vadd.f32 %v3847_v10, %v4808_v5  ;;  %v294_v14 = vpop.f32.mrb[3].mxu0  ;;  %v420_v18 = vmax.f32 %v300_v7, 0.0  ;;  %v4104_v7 = vld [vmem:[#allocation4 + $0x88] ss:$16 sps:$4 sm:$0xff]   ;;  %v4112_v10 = vld [vmem:[#allocation4 + $0xac] ss:$16 sps:$4 sm:$0xff]  }
 0x156   :  { %v295_v16 = vadd.f32 %v4808_v5, %v294_v14  ;;  %v418_v21 = vmax.f32 %v292_v9, 0.0 }
 0x157   :  { %v421_v19 = vmax.f32 %v303_v13, 0.0  ;;  %v4113_v13 = vld [vmem:[#allocation4 + $0xc0] ss:$16 sps:$4 sm:$0xff]  }
 0x158   :  { %v419_v22 = vmax.f32 %v295_v16, 0.0  ;;  %v4121_v16 = vld [vmem:[#allocation4 + $0xe4] ss:$16 sps:$4 sm:$0xff]   ;;  %1282 = vmatpush1.bf16.msra.mxu0 %v4113_v13 }
 0x159   :  { %v451_v24 = vpack.c.bf16 %v421_v19, %v420_v18  ;;  %1283 = vmatprep.subr.bf16.mxu0 %v4121_v16 }
 0x15a   :  { %v450_v26 = vpack.c.bf16 %v419_v22, %v418_v21  ;;  %v3850_v27 = vpop.f32.mrb[4].mxu0 }
 0x15b   :  { %v316_v29 = vadd.f32 %v3850_v27, %v4808_v5  ;;  %v307_v30 = vpop.f32.mrb[5].mxu0  ;;  %v4127_v27 = vld [vmem:[#allocation4 + $0x104] ss:$16 sps:$4 sm:$0xff]  }
 0x15c   :  { %607 = vmatmul.mubr.bf16.vlgmr.msra.gmra.mrb[0].mxu1 %v450_v26  ;;  %v308_v32 = vadd.f32 %v4808_v5, %v307_v30  ;;  %v3851_v33 = vpop.f32.mrb[6].mxu0 }
 0x15d   :  { %v424_v35 = vmax.f32 %v316_v29, 0.0  ;;  %v319_v36 = vadd.f32 %v3851_v33, %v4808_v5  ;;  %v310_v37 = vpop.f32.mrb[7].mxu0  ;;  %616 = vmatprep.mubr.bf16.mxu1 %v4485_v4  ;;  %1463 = vmatpush1.bf16.msra.mxu1 %v4080_v25  ;;  %v4119_v25 = vld [vmem:[#allocation4 + $0xe0] ss:$16 sps:$4 sm:$0xff]   ;;  %v4116_v29 = vld [vmem:[#allocation4 + $0xc8] ss:$16 sps:$4 sm:$0xff]  }
 0x15e   :  { %v422_v39 = vmax.f32 %v308_v32, 0.0  ;;  %v311_v40 = vadd.f32 %v4808_v5, %v310_v37  ;;  %1464 = vmatprep.subr.bf16.mxu1 %v4088_v28  ;;  %v4124_v32 = vld [vmem:[#allocation4 + $0xec] ss:$16 sps:$4 sm:$0xff]   ;;  %1284 = vmatpush1.bf16.msra.mxu0 %v4119_v25  ;;  %v4146_v25 = vld [vmem:[#allocation4 + $0x168] ss:$16 sps:$4 sm:$0xff]  }
 0x15f   :  { %v425_v42 = vmax.f32 %v319_v36, 0.0  ;;  %1285 = vmatprep.subr.bf16.mxu0 %v4127_v27 }
 0x160   :  { %v423_v44 = vmax.f32 %v311_v40, 0.0 }
 0x161   :  { %v4819_v46 = vpack.c.bf16 %v425_v42, %v424_v35  ;;  %1465 = vmatpush1.bf16.msra.mxu1 %v4086_v38  ;;  %v4125_v35 = vld [vmem:[#allocation4 + $0x100] ss:$16 sps:$4 sm:$0xff]   ;;  %v4133_v38 = vld [vmem:[#allocation4 + $0x124] ss:$16 sps:$4 sm:$0xff]   ;;  %v4122_v42 = vld [vmem:[#allocation4 + $0xe8] ss:$16 sps:$4 sm:$0xff]  }
 0x162   :  { %v452_v48 = vpack.c.bf16 %v423_v44, %v422_v39  ;;  %v3854_v49 = vpop.f32.mrb[8].mxu0  ;;  %1466 = vmatprep.subr.bf16.mxu1 %v4094_v41  ;;  %1286 = vmatpush1.bf16.msra.mxu0 %v4125_v35 }
 0x163   :  { %v332_v51 = vadd.f32 %v3854_v49, %v4808_v5  ;;  %v323_v52 = vpop.f32.mrb[9].mxu0  ;;  %1287 = vmatprep.subr.bf16.mxu0 %v4133_v38  ;;  %v4139_v49 = vld [vmem:[#allocation4 + $0x144] ss:$16 sps:$4 sm:$0xff]  }
 0x164   :  { %617 = vmatmul.mubr.bf16.gmra.mrb[4].mxu1 %v451_v24  ;;  %v324_v54 = vadd.f32 %v4808_v5, %v323_v52  ;;  %v3855_v55 = vpop.f32.mrb[10].mxu0 }
 0x165   :  { %626 = vmatprep.mubr.bf16.mxu1 %v4485_v4  ;;  %v428_v57 = vmax.f32 %v332_v51, 0.0  ;;  %v335_v58 = vadd.f32 %v3855_v55, %v4808_v5  ;;  %v326_v59 = vpop.f32.mrb[11].mxu0  ;;  %1467 = vmatpush1.bf16.msra.mxu1 %v4092_v47  ;;  %v4128_v51 = vld [vmem:[#allocation4 + $0x108] ss:$16 sps:$4 sm:$0xff]  }
 0x166   :  { %v426_v61 = vmax.f32 %v324_v54, 0.0  ;;  %v327_v62 = vadd.f32 %v4808_v5, %v326_v59  ;;  %1468 = vmatprep.subr.bf16.mxu1 %v4100_v50  ;;  %v4136_v54 = vld [vmem:[#allocation4 + $0x12c] ss:$16 sps:$4 sm:$0xff]  }
 0x167   :  { %v429_v0 = vmax.f32 %v335_v58, 0.0 }
 0x168   :  { %v427_v2 = vmax.f32 %v327_v62, 0.0 }
 0x169   :  { %v4826_v6 = vpack.c.bf16 %v429_v0, %v428_v57  ;;  %1469 = vmatpush1.bf16.msra.mxu1 %v4098_v60  ;;  %v4137_v57 = vld [vmem:[#allocation4 + $0x140] ss:$16 sps:$4 sm:$0xff]   ;;  %v4145_v60 = vld [vmem:[#allocation4 + $0x164] ss:$16 sps:$4 sm:$0xff]   ;;  %v4134_v0 = vld [vmem:[#allocation4 + $0x128] ss:$16 sps:$4 sm:$0xff]  }
 0x16a   :  { %v4828_v8 = vpack.c.bf16 %v427_v2, %v426_v61  ;;  %v3858_v9 = vpop.f32.mrb[12].mxu0  ;;  %1470 = vmatprep.subr.bf16.mxu1 %v4106_v63 }
 0x16b   :  { %v348_v11 = vadd.f32 %v3858_v9, %v4808_v5  ;;  %v339_v12 = vpop.f32.mrb[13].mxu0 }
 0x16c   :  { %627 = vmatmul.mubr.bf16.gmra.mrb[8].mxu1 %v452_v48  ;;  %v340_v14 = vadd.f32 %v4808_v5, %v339_v12  ;;  %v3859_v15 = vpop.f32.mrb[14].mxu0  ;;  %v4140_v12 = vld [vmem:[#allocation4 + $0x148] ss:$16 sps:$4 sm:$0xff]  }
 0x16d   :  { %636 = vmatprep.mubr.bf16.mxu1 %v4485_v4  ;;  %v432_v17 = vmax.f32 %v348_v11, 0.0  ;;  %v351_v18 = vadd.f32 %v3859_v15, %v4808_v5  ;;  %v342_v19 = vpop.f32.mrb[15].mxu0  ;;  %1471 = vmatpush1.bf16.msra.mxu1 %v4104_v7  ;;  %v4148_v15 = vld [vmem:[#allocation4 + $0x16c] ss:$16 sps:$4 sm:$0xff]  }
 0x16e   :  { %v430_v21 = vmax.f32 %v340_v14, 0.0  ;;  %v343_v22 = vadd.f32 %v4808_v5, %v342_v19  ;;  %1472 = vmatprep.subr.bf16.mxu1 %v4112_v10  ;;  %v4151_v10 = vld [vmem:[#allocation4 + $0x184] ss:$16 sps:$4 sm:$0xff]  }
 0x16f   :  { %v433_v24 = vmax.f32 %v351_v18, 0.0  ;;  %v4149_v18 = vld [vmem:[#allocation4 + $0x180] ss:$16 sps:$4 sm:$0xff]  }
 0x170   :  { %v431_v26 = vmax.f32 %v343_v22, 0.0 }
 0x171   :  { %v4835_v28 = vpack.c.bf16 %v433_v24, %v432_v17  ;;  %1473 = vmatpush1.bf16.msra.mxu1 %v4110_v20 }
 0x172   :  { %v4837_v30 = vpack.c.bf16 %v431_v26, %v430_v21  ;;  %v3862_v31 = vpop.f32.mrb[16].mxu0  ;;  %1474 = vmatprep.subr.bf16.mxu1 %v4118_v23  ;;  %v4157_v21 = vld [vmem:[#allocation4 + $0x1a4] ss:$16 sps:$4 sm:$0xff]  }
 0x173   :  { %v364_v33 = vadd.f32 %v3862_v31, %v4808_v5  ;;  %v355_v34 = vpop.f32.mrb[17].mxu0 }
 0x174   :  { %637 = vmatmul.mubr.bf16.gmra.mrb[12].mxu1 %v4819_v46  ;;  %v356_v36 = vadd.f32 %v4808_v5, %v355_v34  ;;  %v3863_v37 = vpop.f32.mrb[18].mxu0  ;;  %v4131_v46 = vld [vmem:[#allocation4 + $0x120] ss:$16 sps:$4 sm:$0xff]   ;;  %v4152_v34 = vld [vmem:[#allocation4 + $0x188] ss:$16 sps:$4 sm:$0xff]  }
 0x175   :  { %646 = vmatprep.mubr.bf16.mxu1 %v4485_v4  ;;  %v436_v39 = vmax.f32 %v364_v33, 0.0  ;;  %v367_v40 = vadd.f32 %v3863_v37, %v4808_v5  ;;  %v358_v41 = vpop.f32.mrb[19].mxu0  ;;  %1475 = vmatpush1.bf16.msra.mxu1 %v4116_v29  ;;  %v4154_v29 = vld [vmem:[#allocation4 + $0x18c] ss:$16 sps:$4 sm:$0xff]  }
 0x176   :  { %v434_v43 = vmax.f32 %v356_v36, 0.0  ;;  %v359_v44 = vadd.f32 %v4808_v5, %v358_v41  ;;  %1476 = vmatprep.subr.bf16.mxu1 %v4124_v32  ;;  %1288 = vmatpush1.bf16.msra.mxu0 %v4131_v46  ;;  %v4160_v37 = vld [vmem:[#allocation4 + $0x1ac] ss:$16 sps:$4 sm:$0xff]  }
 0x177   :  { %v437_v47 = vmax.f32 %v367_v40, 0.0  ;;  %1289 = vmatprep.subr.bf16.mxu0 %v4139_v49 }
 0x178   :  { %v435_v48 = vmax.f32 %v359_v44, 0.0 }
 0x179   :  { %v4845_v50 = vpack.c.bf16 %v437_v47, %v436_v39  ;;  %1477 = vmatpush1.bf16.msra.mxu1 %v4122_v42 }
 0x17a   :  { %v4847_v52 = vpack.c.bf16 %v435_v48, %v434_v43  ;;  %v3866_v53 = vpop.f32.mrb[20].mxu0  ;;  %1478 = vmatprep.subr.bf16.mxu1 %v4130_v45  ;;  %1290 = vmatpush1.bf16.msra.mxu0 %v4137_v57  ;;  %v4158_v45 = vld [vmem:[#allocation4 + $0x1a8] ss:$16 sps:$4 sm:$0xff]  }
 0x17b   :  { %v380_v55 = vadd.f32 %v3866_v53, %v4808_v5  ;;  %v371_v56 = vpop.f32.mrb[21].mxu0  ;;  %1291 = vmatprep.subr.bf16.mxu0 %v4145_v60  ;;  %v4166_v53 = vld [vmem:[#allocation4 + $0x1cc] ss:$16 sps:$4 sm:$0xff]   ;;  %v4175_v57 = vld [vmem:[#allocation7 + $0x4] ss:$8 sps:$4 sm:$0xff]  }
 0x17c   :  { %647 = vmatmul.mubr.bf16.gmra.mrb[16].mxu1 %v4828_v8  ;;  %v372_v58 = vadd.f32 %v4808_v5, %v371_v56  ;;  %v3867_v59 = vpop.f32.mrb[22].mxu0  ;;  %v4143_v8 = vld [vmem:[#allocation4 + $0x160] ss:$16 sps:$4 sm:$0xff]   ;;  %v4170_v56 = vld [vmem:[#allocation4 + $0x1e8] ss:$16 sps:$4 sm:$0xff]  }
 0x17d   :  { %656 = vmatprep.mubr.bf16.mxu1 %v4485_v4  ;;  %v440_v61 = vmax.f32 %v380_v55, 0.0  ;;  %v383_v62 = vadd.f32 %v3867_v59, %v4808_v5  ;;  %v374_v63 = vpop.f32.mrb[23].mxu0  ;;  %1479 = vmatpush1.bf16.msra.mxu1 %v4128_v51  ;;  %v4164_v55 = vld [vmem:[#allocation4 + $0x1c8] ss:$16 sps:$4 sm:$0xff]  }
 0x17e   :  { %v438_v1 = vmax.f32 %v372_v58, 0.0  ;;  %v375_v2 = vadd.f32 %v4808_v5, %v374_v63  ;;  %1480 = vmatprep.subr.bf16.mxu1 %v4136_v54  ;;  %1292 = vmatpush1.bf16.msra.mxu0 %v4143_v8  ;;  %v4161_v54 = vld [vmem:[#allocation4 + $0x1c0] ss:$16 sps:$4 sm:$0xff]   ;;  %v484_v58 = vlaneseq }
 0x17f   :  { %v441_v7 = vmax.f32 %v383_v62, 0.0  ;;  %1293 = vmatprep.subr.bf16.mxu0 %v4151_v10 }
 0x180   :  { %v439_v9 = vmax.f32 %v375_v2, 0.0  ;;  %v4881_v59 = vshrl.u32 %v484_v58, 7 }
 0x181   :  { %v4855_v11 = vpack.c.bf16 %v441_v7, %v440_v61  ;;  %1481 = vmatpush1.bf16.msra.mxu1 %v4134_v0  ;;  %v482_v61 = vld [vmem:[%s5594_s4] sm:$0x3] }
 0x182   :  { %v460_v13 = vpack.c.bf16 %v439_v9, %v438_v1  ;;  %v3870_v14 = vpop.f32.mrb[24].mxu0  ;;  %1482 = vmatprep.subr.bf16.mxu1 %v4142_v3  ;;  %1294 = vmatpush1.bf16.msra.mxu0 %v4149_v18  ;;  %v4884_v60 = vsub.s32 0, %v4881_v59  ;;  %v4890_v62 = vsub.s32 1, %v4881_v59  ;;  %v4173_v18 = vld [vmem:[#allocation7] ss:$8 sps:$4 sm:$0xff]  }
 0x183   :  { %v396_v16 = vadd.f32 %v3870_v14, %v4808_v5  ;;  %v387_v17 = vpop.f32.mrb[25].mxu0  ;;  %1295 = vmatprep.subr.bf16.mxu0 %v4157_v21  ;;  %v4178_v21 = vld [vmem:[#allocation7 + $0x14] ss:$8 sps:$4 sm:$0xff]  }
 0x184   :  { %657 = vmatmul.mubr.bf16.gmra.mrb[20].mxu1 %v4826_v6  ;;  %v388_v19 = vadd.f32 %v4808_v5, %v387_v17  ;;  %v3871_v20 = vpop.f32.mrb[26].mxu0  ;;  %v4155_v6 = vld [vmem:[#allocation4 + $0x1a0] ss:$16 sps:$4 sm:$0xff]   ;;  %v4893_v63 = vrot.slane %v482_v61, %v4884_v60 }
 0x185   :  { %666 = vmatprep.mubr.bf16.mxu1 %v4485_v4  ;;  %v444_v22 = vmax.f32 %v396_v16, 0.0  ;;  %v399_v23 = vadd.f32 %v3871_v20, %v4808_v5  ;;  %v390_v24 = vpop.f32.mrb[27].mxu0  ;;  %1483 = vmatpush1.bf16.msra.mxu1 %v4140_v12 }
 0x186   :  { %v442_v26 = vmax.f32 %v388_v19, 0.0  ;;  %v391_v27 = vadd.f32 %v4808_v5, %v390_v24  ;;  %1484 = vmatprep.subr.bf16.mxu1 %v4148_v15  ;;  %1296 = vmatpush1.bf16.msra.mxu0 %v4155_v6  ;;  %v4181_v6 = vld [vmem:[#allocation7 + $0x24] ss:$8 sps:$4 sm:$0xff]  }
 0x187   :  { %v445_v31 = vmax.f32 %v399_v23, 0.0 }
 0x188   :  { %v443_v32 = vmax.f32 %v391_v27, 0.0  ;;  %v4176_v27 = vld [vmem:[#allocation7 + $0x10] ss:$8 sps:$4 sm:$0xff]  }
 0x189   :  { %v463_v33 = vpack.c.bf16 %v445_v31, %v444_v22  ;;  %1485 = vmatpush1.bf16.msra.mxu1 %v4146_v25 }
 0x18a   :  { %v462_v35 = vpack.c.bf16 %v443_v32, %v442_v26  ;;  %v3874_v36 = vpop.f32.mrb[28].mxu0  ;;  %1486 = vmatprep.subr.bf16.mxu1 %v4154_v29 }
 0x18b   :  { %v412_v38 = vadd.f32 %v3874_v36, %v4808_v5  ;;  %v403_v39 = vpop.f32.mrb[29].mxu0 }
 0x18c   :  { %667 = vmatmul.mubr.bf16.gmra.mrb[24].mxu1 %v4837_v30  ;;  %v404_v40 = vadd.f32 %v4808_v5, %v403_v39  ;;  %v3875_v41 = vpop.f32.mrb[30].mxu0 }
 0x18d   :  { %676 = vmatprep.mubr.bf16.mxu1 %v4485_v4  ;;  %v448_v42 = vmax.f32 %v412_v38, 0.0  ;;  %v415_v43 = vadd.f32 %v3875_v41, %v4808_v5  ;;  %v406_v44 = vpop.f32.mrb[31].mxu0  ;;  %1487 = vmatpush1.bf16.msra.mxu1 %v4152_v34 }
 0x18e   :  { %v446_v47 = vmax.f32 %v404_v40, 0.0  ;;  %v407_v46 = vadd.f32 %v4808_v5, %v406_v44  ;;  %1488 = vmatprep.subr.bf16.mxu1 %v4160_v37  ;;  %v4163_v5 = vld [vmem:[#allocation4 + $0x1c4] ss:$16 sps:$4 sm:$0xff]   ;;  %v4184_v40 = vld [vmem:[#allocation7 + $0x34] ss:$8 sps:$4 sm:$0xff]  }
 0x18f   :  { %v449_v48 = vmax.f32 %v415_v43, 0.0  ;;  %1297 = vmatprep.subr.bf16.mxu0 %v4163_v5  ;;  %v4179_v37 = vld [vmem:[#allocation7 + $0x20] ss:$8 sps:$4 sm:$0xff]  }
 0x190   :  { %v447_v49 = vmax.f32 %v407_v46, 0.0  ;;  %1298 = vmatpush1.bf16.msra.mxu0 %v4161_v54 }
 0x191   :  { %v465_v51 = vpack.c.bf16 %v449_v48, %v448_v42  ;;  %1489 = vmatpush1.bf16.msra.mxu1 %v4158_v45 }
 0x192   :  { %v464_v30 = vpack.c.bf16 %v447_v49, %v446_v47  ;;  %1490 = vmatprep.subr.bf16.mxu1 %v4166_v53  ;;  %v4182_v47 = vld [vmem:[#allocation7 + $0x30] ss:$8 sps:$4 sm:$0xff]   ;;  %v4187_v49 = vld [vmem:[#allocation7 + $0x44] ss:$8 sps:$4 sm:$0xff]  }
 0x194   :  { %677 = vmatmul.mubr.bf16.gmra.mrb[28].mxu1 %v4835_v28  ;;  %v4169_v28 = vld [vmem:[#allocation4 + $0x1e4] ss:$16 sps:$4 sm:$0xff]  }
 0x195   :  { %686 = vmatprep.mubr.bf16.mxu1 %v4485_v4  ;;  %1491 = vmatpush1.bf16.msra.mxu1 %v4164_v55  ;;  %v4185_v55 = vld [vmem:[#allocation7 + $0x40] ss:$8 sps:$4 sm:$0xff]  }
 0x196   :  { %1299 = vmatprep.subr.bf16.mxu0 %v4169_v28 }
 0x19c   :  { %687 = vmatmul.mubr.bf16.gmra.mrb[32].mxu1 %v4847_v52  ;;  %v4172_v52 = vld [vmem:[#allocation4 + $0x1ec] ss:$16 sps:$4 sm:$0xff]  }
 0x19d   :  { %696 = vmatprep.mubr.bf16.mxu1 %v4485_v4  ;;  %1492 = vmatprep.subr.bf16.mxu1 %v4172_v52 }
 0x19e   :  { %1493 = vmatpush1.bf16.msra.mxu1 %v4170_v56 }
 0x1a4   :  { %697 = vmatmul.mubr.bf16.gmra.mrb[36].mxu1 %v4845_v50  ;;  %v4167_v50 = vld [vmem:[#allocation4 + $0x1e0] ss:$16 sps:$4 sm:$0xff]  }
 0x1a5   :  { %706 = vmatprep.mubr.bf16.mxu1 %v4485_v4  ;;  %1300 = vmatpush1.bf16.msra.mxu0 %v4167_v50  ;;  %v4190_v50 = vld [vmem:[#allocation7 + $0x54] ss:$8 sps:$4 sm:$0xff]  }
 0x1a6   :  { %2243 = vmatprep.subr.bf16.mxu0 %v4175_v57 }
 0x1ac   :  { %707 = vmatmul.mubr.bf16.gmra.mrb[40].mxu1 %v460_v13 }
 0x1ad   :  { %716 = vmatprep.mubr.bf16.mxu1 %v4485_v4 }
 0x1b4   :  { %717 = vmatmul.mubr.bf16.gmra.mrb[44].mxu1 %v4855_v11 }
 0x1b5   :  { %726 = vmatprep.mubr.bf16.mxu1 %v4485_v4 }
 0x1bc   :  { %727 = vmatmul.mubr.bf16.gmra.mrb[48].mxu1 %v462_v35 }
 0x1bd   :  { %736 = vmatprep.mubr.bf16.mxu1 %v4485_v4 }
 0x1c4   :  { %737 = vmatmul.mubr.bf16.gmra.mrb[52].mxu1 %v463_v33 }
 0x1c5   :  { %746 = vmatprep.mubr.bf16.mxu1 %v4485_v4 }
 0x1cc   :  { %747 = vmatmul.mubr.bf16.gmra.mrb[56].mxu1 %v464_v30 }
 0x1cd   :  { %756 = vmatprep.mubr.bf16.mxu1 %v4485_v4  ;;  %v4896_v4 = vrot.slane %v482_v61, %v4890_v62 }
 0x1d4   :  { %757 = vmatmul.mubr.bf16.gmra.mrb[60].mxu1 %v465_v51 }
 0x22f   :  { %v608_v0 = vpop.f32.mrb[0].mxu1 }
 0x230   :  { %v609_v1 = vadd.f32 %v608_v0, %v4893_v63  ;;  %v610_v2 = vpop.f32.mrb[1].mxu1 }
 0x231   :  { %v611_v3 = vadd.f32 %v610_v2, %v4896_v4  ;;  %v612_v7 = vpop.f32.mrb[2].mxu1 }
 0x232   :  { %v613_v8 = vadd.f32 %v612_v7, %v4893_v63  ;;  %v614_v9 = vpop.f32.mrb[3].mxu1  ;;  %v767_v11 = vmax.f32 %v609_v1, 0.0  ;;  %v4188_v1 = vld [vmem:[#allocation7 + $0x50] ss:$8 sps:$4 sm:$0xff]   ;;  %v4193_v7 = vld [vmem:[#allocation7 + $0x64] ss:$8 sps:$4 sm:$0xff]  }
 0x233   :  { %v615_v10 = vadd.f32 %v614_v9, %v4896_v4  ;;  %v768_v13 = vmax.f32 %v611_v3, 0.0 }
 0x234   :  { %v769_v12 = vmax.f32 %v613_v8, 0.0 }
 0x235   :  { %v770_v14 = vmax.f32 %v615_v10, 0.0 }
 0x236   :  { %v831_v15 = vpack.c.bf16 %v769_v12, %v767_v11 }
 0x237   :  { %v832_v16 = vpack.c.bf16 %v770_v14, %v768_v13  ;;  %v618_v17 = vpop.f32.mrb[4].mxu1  ;;  %v4191_v13 = vld [vmem:[#allocation7 + $0x60] ss:$8 sps:$4 sm:$0xff]  }
 0x238   :  { %v619_v19 = vadd.f32 %v618_v17, %v4893_v63  ;;  %v620_v20 = vpop.f32.mrb[5].mxu1 }
 0x239   :  { %v621_v22 = vadd.f32 %v620_v20, %v4896_v4  ;;  %v622_v23 = vpop.f32.mrb[6].mxu1  ;;  %1301 = vmatprep.mubr.bf16.mxu0 %v832_v16  ;;  %1494 = vmatprep.mubr.bf16.mxu1 %v832_v16  ;;  %v4196_v16 = vld [vmem:[#allocation7 + $0x74] ss:$8 sps:$4 sm:$0xff]  }
 0x23a   :  { %v623_v24 = vadd.f32 %v622_v23, %v4893_v63  ;;  %v624_v25 = vpop.f32.mrb[7].mxu1  ;;  %1302 = vmatmul.mubr.bf16.vlgmr.msra.gmra.mrb[32].mxu0 %v831_v15  ;;  %1495 = vmatmul.mubr.bf16.vlgmr.msra.gmra.mrb[64].mxu1 %v831_v15  ;;  %v771_v29 = vmax.f32 %v619_v19, 0.0 }
 0x23b   :  { %v625_v26 = vadd.f32 %v624_v25, %v4896_v4  ;;  %2244 = vmatpush1.bf16.msra.mxu0 %v4173_v18  ;;  %v772_v32 = vmax.f32 %v621_v22, 0.0  ;;  %v4194_v22 = vld [vmem:[#allocation7 + $0x70] ss:$8 sps:$4 sm:$0xff]   ;;  %v4199_v25 = vld [vmem:[#allocation7 + $0x84] ss:$8 sps:$4 sm:$0xff]  }
 0x23c   :  { %v773_v31 = vmax.f32 %v623_v24, 0.0  ;;  %2245 = vmatprep.subr.bf16.mxu0 %v4178_v21 }
 0x23d   :  { %v774_v33 = vmax.f32 %v625_v26, 0.0 }
 0x23e   :  { %v833_v34 = vpack.c.bf16 %v773_v31, %v771_v29 }
 0x23f   :  { %v834_v35 = vpack.c.bf16 %v774_v33, %v772_v32  ;;  %v628_v36 = vpop.f32.mrb[8].mxu1  ;;  %2246 = vmatpush1.bf16.msra.mxu0 %v4176_v27  ;;  %v4197_v32 = vld [vmem:[#allocation7 + $0x80] ss:$8 sps:$4 sm:$0xff]  }
 0x240   :  { %v629_v38 = vadd.f32 %v628_v36, %v4893_v63  ;;  %v630_v39 = vpop.f32.mrb[9].mxu1  ;;  %2247 = vmatprep.subr.bf16.mxu0 %v4181_v6 }
 0x241   :  { %v631_v41 = vadd.f32 %v630_v39, %v4896_v4  ;;  %v632_v42 = vpop.f32.mrb[10].mxu1  ;;  %1311 = vmatprep.mubr.bf16.mxu0 %v834_v35  ;;  %1504 = vmatprep.mubr.bf16.mxu1 %v834_v35  ;;  %v4202_v35 = vld [vmem:[#allocation7 + $0x94] ss:$8 sps:$4 sm:$0xff]  }
 0x242   :  { %v633_v43 = vadd.f32 %v632_v42, %v4893_v63  ;;  %v634_v44 = vpop.f32.mrb[11].mxu1  ;;  %1312 = vmatmul.mubr.bf16.gmra.mrb[36].mxu0 %v833_v34  ;;  %1505 = vmatmul.mubr.bf16.gmra.mrb[68].mxu1 %v833_v34  ;;  %v775_v46 = vmax.f32 %v629_v38, 0.0 }
 0x243   :  { %v635_v45 = vadd.f32 %v634_v44, %v4896_v4  ;;  %2248 = vmatpush1.bf16.msra.mxu0 %v4179_v37  ;;  %v776_v51 = vmax.f32 %v631_v41, 0.0  ;;  %v4200_v41 = vld [vmem:[#allocation7 + $0x90] ss:$8 sps:$4 sm:$0xff]   ;;  %v4205_v44 = vld [vmem:[#allocation7 + $0xa4] ss:$8 sps:$4 sm:$0xff]  }
 0x244   :  { %v777_v48 = vmax.f32 %v633_v43, 0.0  ;;  %2249 = vmatprep.subr.bf16.mxu0 %v4184_v40 }
 0x245   :  { %v778_v30 = vmax.f32 %v635_v45, 0.0 }
 0x246   :  { %v835_v5 = vpack.c.bf16 %v777_v48, %v775_v46 }
 0x247   :  { %v836_v53 = vpack.c.bf16 %v778_v30, %v776_v51  ;;  %v638_v54 = vpop.f32.mrb[12].mxu1  ;;  %2250 = vmatpush1.bf16.msra.mxu0 %v4182_v47  ;;  %v4203_v51 = vld [vmem:[#allocation7 + $0xa0] ss:$8 sps:$4 sm:$0xff]  }
 0x248   :  { %v639_v28 = vadd.f32 %v638_v54, %v4893_v63  ;;  %v640_v52 = vpop.f32.mrb[13].mxu1  ;;  %2251 = vmatprep.subr.bf16.mxu0 %v4187_v49 }
 0x249   :  { %v641_v56 = vadd.f32 %v640_v52, %v4896_v4  ;;  %v642_v57 = vpop.f32.mrb[14].mxu1  ;;  %1321 = vmatprep.mubr.bf16.mxu0 %v836_v53  ;;  %1514 = vmatprep.mubr.bf16.mxu1 %v836_v53  ;;  %v4208_v53 = vld [vmem:[#allocation7 + $0xb4] ss:$8 sps:$4 sm:$0xff]  }
 0x24a   :  { %v643_v58 = vadd.f32 %v642_v57, %v4893_v63  ;;  %v644_v61 = vpop.f32.mrb[15].mxu1  ;;  %1322 = vmatmul.mubr.bf16.gmra.mrb[40].mxu0 %v835_v5  ;;  %1515 = vmatmul.mubr.bf16.gmra.mrb[72].mxu1 %v835_v5  ;;  %v779_v2 = vmax.f32 %v639_v28, 0.0 }
 0x24b   :  { %v645_v0 = vadd.f32 %v644_v61, %v4896_v4  ;;  %2252 = vmatpush1.bf16.msra.mxu0 %v4185_v55  ;;  %v780_v8 = vmax.f32 %v641_v56, 0.0  ;;  %v4206_v56 = vld [vmem:[#allocation7 + $0xb0] ss:$8 sps:$4 sm:$0xff]   ;;  %v4211_v61 = vld [vmem:[#allocation7 + $0xc4] ss:$8 sps:$4 sm:$0xff]  }
 0x24c   :  { %v781_v3 = vmax.f32 %v643_v58, 0.0  ;;  %2253 = vmatprep.subr.bf16.mxu0 %v4190_v50 }
 0x24d   :  { %v782_v9 = vmax.f32 %v645_v0, 0.0 }
 0x24e   :  { %v837_v10 = vpack.c.bf16 %v781_v3, %v779_v2 }
 0x24f   :  { %v838_v11 = vpack.c.bf16 %v782_v9, %v780_v8  ;;  %v648_v12 = vpop.f32.mrb[16].mxu1  ;;  %2254 = vmatpush1.bf16.msra.mxu0 %v4188_v1  ;;  %v4209_v8 = vld [vmem:[#allocation7 + $0xc0] ss:$8 sps:$4 sm:$0xff]  }
 0x250   :  { %v649_v14 = vadd.f32 %v648_v12, %v4893_v63  ;;  %v650_v15 = vpop.f32.mrb[17].mxu1  ;;  %2255 = vmatprep.subr.bf16.mxu0 %v4193_v7 }
 0x251   :  { %v651_v17 = vadd.f32 %v650_v15, %v4896_v4  ;;  %v652_v18 = vpop.f32.mrb[18].mxu1  ;;  %1331 = vmatprep.mubr.bf16.mxu0 %v838_v11  ;;  %1524 = vmatprep.mubr.bf16.mxu1 %v838_v11  ;;  %v4214_v11 = vld [vmem:[#allocation7 + $0xd4] ss:$8 sps:$4 sm:$0xff]  }
 0x252   :  { %v653_v19 = vadd.f32 %v652_v18, %v4893_v63  ;;  %v654_v20 = vpop.f32.mrb[19].mxu1  ;;  %1332 = vmatmul.mubr.bf16.gmra.mrb[44].mxu0 %v837_v10  ;;  %1525 = vmatmul.mubr.bf16.gmra.mrb[76].mxu1 %v837_v10  ;;  %v783_v23 = vmax.f32 %v649_v14, 0.0 }
 0x253   :  { %v655_v21 = vadd.f32 %v654_v20, %v4896_v4  ;;  %2256 = vmatpush1.bf16.msra.mxu0 %v4191_v13  ;;  %v784_v26 = vmax.f32 %v651_v17, 0.0  ;;  %v4212_v17 = vld [vmem:[#allocation7 + $0xd0] ss:$8 sps:$4 sm:$0xff]   ;;  %v4217_v20 = vld [vmem:[#allocation7 + $0xe4] ss:$8 sps:$4 sm:$0xff]  }
 0x254   :  { %v785_v24 = vmax.f32 %v653_v19, 0.0  ;;  %2257 = vmatprep.subr.bf16.mxu0 %v4196_v16 }
 0x255   :  { %v786_v27 = vmax.f32 %v655_v21, 0.0 }
 0x256   :  { %v839_v29 = vpack.c.bf16 %v785_v24, %v783_v23 }
 0x257   :  { %v840_v31 = vpack.c.bf16 %v786_v27, %v784_v26  ;;  %v658_v6 = vpop.f32.mrb[20].mxu1  ;;  %2258 = vmatpush1.bf16.msra.mxu0 %v4194_v22  ;;  %v4215_v26 = vld [vmem:[#allocation7 + $0xe0] ss:$8 sps:$4 sm:$0xff]  }
 0x258   :  { %v659_v33 = vadd.f32 %v658_v6, %v4893_v63  ;;  %v660_v34 = vpop.f32.mrb[21].mxu1  ;;  %2259 = vmatprep.subr.bf16.mxu0 %v4199_v25 }
 0x259   :  { %v661_v36 = vadd.f32 %v660_v34, %v4896_v4  ;;  %v662_v37 = vpop.f32.mrb[22].mxu1  ;;  %1341 = vmatprep.mubr.bf16.mxu0 %v840_v31  ;;  %1534 = vmatprep.mubr.bf16.mxu1 %v840_v31 }
 0x25a   :  { %v663_v38 = vadd.f32 %v662_v37, %v4893_v63  ;;  %v664_v39 = vpop.f32.mrb[23].mxu1  ;;  %1342 = vmatmul.mubr.bf16.gmra.mrb[48].mxu0 %v839_v29  ;;  %1535 = vmatmul.mubr.bf16.gmra.mrb[80].mxu1 %v839_v29  ;;  %v787_v42 = vmax.f32 %v659_v33, 0.0 }
 0x25b   :  { %v665_v40 = vadd.f32 %v664_v39, %v4896_v4  ;;  %2260 = vmatpush1.bf16.msra.mxu0 %v4197_v32  ;;  %v788_v45 = vmax.f32 %v661_v36, 0.0 }
 0x25c   :  { %v789_v43 = vmax.f32 %v663_v38, 0.0  ;;  %2261 = vmatprep.subr.bf16.mxu0 %v4202_v35 }
 0x25d   :  { %v790_v47 = vmax.f32 %v665_v40, 0.0 }
 0x25e   :  { %v841_v46 = vpack.c.bf16 %v789_v43, %v787_v42 }
 0x25f   :  { %v842_v48 = vpack.c.bf16 %v790_v47, %v788_v45  ;;  %v668_v49 = vpop.f32.mrb[24].mxu1  ;;  %2262 = vmatpush1.bf16.msra.mxu0 %v4200_v41 }
 0x260   :  { %v669_v30 = vadd.f32 %v668_v49, %v4893_v63  ;;  %v670_v5 = vpop.f32.mrb[25].mxu1  ;;  %2263 = vmatprep.subr.bf16.mxu0 %v4205_v44 }
 0x261   :  { %v671_v54 = vadd.f32 %v670_v5, %v4896_v4  ;;  %v672_v55 = vpop.f32.mrb[26].mxu1  ;;  %1351 = vmatprep.mubr.bf16.mxu0 %v842_v48  ;;  %1544 = vmatprep.mubr.bf16.mxu1 %v842_v48 }
 0x262   :  { %v673_v28 = vadd.f32 %v672_v55, %v4893_v63  ;;  %v674_v52 = vpop.f32.mrb[27].mxu1  ;;  %1352 = vmatmul.mubr.bf16.gmra.mrb[52].mxu0 %v841_v46  ;;  %1545 = vmatmul.mubr.bf16.gmra.mrb[84].mxu1 %v841_v46  ;;  %v791_v57 = vmax.f32 %v669_v30, 0.0 }
 0x263   :  { %v675_v50 = vadd.f32 %v674_v52, %v4896_v4  ;;  %2264 = vmatpush1.bf16.msra.mxu0 %v4203_v51  ;;  %v792_v0 = vmax.f32 %v671_v54, 0.0 }
 0x264   :  { %v793_v58 = vmax.f32 %v673_v28, 0.0  ;;  %2265 = vmatprep.subr.bf16.mxu0 %v4208_v53 }
 0x265   :  { %v794_v1 = vmax.f32 %v675_v50, 0.0 }
 0x266   :  { %v843_v2 = vpack.c.bf16 %v793_v58, %v791_v57 }
 0x267   :  { %v844_v3 = vpack.c.bf16 %v794_v1, %v792_v0  ;;  %v678_v7 = vpop.f32.mrb[28].mxu1  ;;  %2266 = vmatpush1.bf16.msra.mxu0 %v4206_v56 }
 0x268   :  { %v679_v9 = vadd.f32 %v678_v7, %v4893_v63  ;;  %v680_v10 = vpop.f32.mrb[29].mxu1  ;;  %2267 = vmatprep.subr.bf16.mxu0 %v4211_v61 }
 0x269   :  { %v681_v12 = vadd.f32 %v680_v10, %v4896_v4  ;;  %v682_v13 = vpop.f32.mrb[30].mxu1  ;;  %1361 = vmatprep.mubr.bf16.mxu0 %v844_v3  ;;  %1554 = vmatprep.mubr.bf16.mxu1 %v844_v3 }
 0x26a   :  { %v683_v14 = vadd.f32 %v682_v13, %v4893_v63  ;;  %v684_v15 = vpop.f32.mrb[31].mxu1  ;;  %1362 = vmatmul.mubr.bf16.gmra.mrb[56].mxu0 %v843_v2  ;;  %1555 = vmatmul.mubr.bf16.gmra.mrb[88].mxu1 %v843_v2  ;;  %v795_v18 = vmax.f32 %v679_v9, 0.0 }
 0x26b   :  { %v685_v16 = vadd.f32 %v684_v15, %v4896_v4  ;;  %2268 = vmatpush1.bf16.msra.mxu0 %v4209_v8  ;;  %v796_v21 = vmax.f32 %v681_v12, 0.0 }
 0x26c   :  { %v797_v19 = vmax.f32 %v683_v14, 0.0  ;;  %2269 = vmatprep.subr.bf16.mxu0 %v4214_v11 }
 0x26d   :  { %v798_v22 = vmax.f32 %v685_v16, 0.0 }
 0x26e   :  { %v845_v23 = vpack.c.bf16 %v797_v19, %v795_v18 }
 0x26f   :  { %v846_v24 = vpack.c.bf16 %v798_v22, %v796_v21  ;;  %v688_v25 = vpop.f32.mrb[32].mxu1  ;;  %2270 = vmatpush1.bf16.msra.mxu0 %v4212_v17 }
 0x270   :  { %v689_v27 = vadd.f32 %v688_v25, %v4893_v63  ;;  %v690_v29 = vpop.f32.mrb[33].mxu1  ;;  %2271 = vmatprep.subr.bf16.mxu0 %v4217_v20 }
 0x271   :  { %v691_v31 = vadd.f32 %v690_v29, %v4896_v4  ;;  %v692_v6 = vpop.f32.mrb[34].mxu1  ;;  %1371 = vmatprep.mubr.bf16.mxu0 %v846_v24  ;;  %1564 = vmatprep.mubr.bf16.mxu1 %v846_v24 }
 0x272   :  { %v693_v32 = vadd.f32 %v692_v6, %v4893_v63  ;;  %v694_v33 = vpop.f32.mrb[35].mxu1  ;;  %1372 = vmatmul.mubr.bf16.gmra.mrb[60].mxu0 %v845_v23  ;;  %1565 = vmatmul.mubr.bf16.gmra.mrb[92].mxu1 %v845_v23  ;;  %v799_v35 = vmax.f32 %v689_v27, 0.0  ;;  %v4220_v6 = vld [vmem:[#allocation7 + $0xf4] ss:$8 sps:$4 sm:$0xff]  }
 0x273   :  { %v695_v34 = vadd.f32 %v694_v33, %v4896_v4  ;;  %2272 = vmatpush1.bf16.msra.mxu0 %v4215_v26  ;;  %v800_v37 = vmax.f32 %v691_v31, 0.0  ;;  %v4218_v33 = vld [vmem:[#allocation7 + $0xf0] ss:$8 sps:$4 sm:$0xff]  }
 0x274   :  { %v801_v36 = vmax.f32 %v693_v32, 0.0  ;;  %2273 = vmatprep.subr.bf16.mxu0 %v4220_v6 }
 0x275   :  { %v802_v38 = vmax.f32 %v695_v34, 0.0 }
 0x276   :  { %v847_v39 = vpack.c.bf16 %v801_v36, %v799_v35 }
 0x277   :  { %v848_v40 = vpack.c.bf16 %v802_v38, %v800_v37  ;;  %v698_v41 = vpop.f32.mrb[36].mxu1  ;;  %2274 = vmatpush1.bf16.msra.mxu0 %v4218_v33 }
 0x278   :  { %v699_v42 = vadd.f32 %v698_v41, %v4893_v63  ;;  %v700_v43 = vpop.f32.mrb[37].mxu1 }
 0x279   :  { %v701_v44 = vadd.f32 %v700_v43, %v4896_v4  ;;  %v702_v45 = vpop.f32.mrb[38].mxu1  ;;  %1381 = vmatprep.mubr.bf16.mxu0 %v848_v40  ;;  %1574 = vmatprep.mubr.bf16.mxu1 %v848_v40 }
 0x27a   :  { %v703_v47 = vadd.f32 %v702_v45, %v4893_v63  ;;  %v704_v46 = vpop.f32.mrb[39].mxu1  ;;  %1382 = vmatmul.mubr.bf16.gmra.mrb[64].mxu0 %v847_v39  ;;  %1575 = vmatmul.mubr.bf16.gmra.mrb[96].mxu1 %v847_v39  ;;  %v803_v49 = vmax.f32 %v699_v42, 0.0 }
 0x27b   :  { %v705_v48 = vadd.f32 %v704_v46, %v4896_v4  ;;  %v804_v30 = vmax.f32 %v701_v44, 0.0 }
 0x27c   :  { %v805_v51 = vmax.f32 %v703_v47, 0.0 }
 0x27d   :  { %v806_v5 = vmax.f32 %v705_v48, 0.0 }
 0x27e   :  { %v849_v53 = vpack.c.bf16 %v805_v51, %v803_v49  ;;  %v4223_v51 = vld [vmem:[#allocation7 + $0x104] ss:$8 sps:$4 sm:$0xff]  }
 0x27f   :  { %v850_v54 = vpack.c.bf16 %v806_v5, %v804_v30  ;;  %v708_v55 = vpop.f32.mrb[40].mxu1  ;;  %2436 = vmatprep.subr.bf16.mxu0 %v4223_v51 }
 0x280   :  { %v709_v28 = vadd.f32 %v708_v55, %v4893_v63  ;;  %v710_v52 = vpop.f32.mrb[41].mxu1 }
 0x281   :  { %v711_v50 = vadd.f32 %v710_v52, %v4896_v4  ;;  %v712_v56 = vpop.f32.mrb[42].mxu1  ;;  %1391 = vmatprep.mubr.bf16.mxu0 %v850_v54  ;;  %1584 = vmatprep.mubr.bf16.mxu1 %v850_v54 }
 0x282   :  { %v713_v57 = vadd.f32 %v712_v56, %v4893_v63  ;;  %v714_v58 = vpop.f32.mrb[43].mxu1  ;;  %1392 = vmatmul.mubr.bf16.gmra.mrb[68].mxu0 %v849_v53  ;;  %1585 = vmatmul.mubr.bf16.gmra.mrb[100].mxu1 %v849_v53  ;;  %v807_v0 = vmax.f32 %v709_v28, 0.0 }
 0x283   :  { %v715_v61 = vadd.f32 %v714_v58, %v4896_v4  ;;  %v808_v2 = vmax.f32 %v711_v50, 0.0 }
 0x284   :  { %v809_v1 = vmax.f32 %v713_v57, 0.0 }
 0x285   :  { %v810_v3 = vmax.f32 %v715_v61, 0.0 }
 0x286   :  { %v851_v7 = vpack.c.bf16 %v809_v1, %v807_v0 }
 0x287   :  { %v852_v8 = vpack.c.bf16 %v810_v3, %v808_v2  ;;  %v718_v9 = vpop.f32.mrb[44].mxu1 }
 0x288   :  { %v719_v10 = vadd.f32 %v718_v9, %v4893_v63  ;;  %v720_v11 = vpop.f32.mrb[45].mxu1 }
 0x289   :  { %v721_v12 = vadd.f32 %v720_v11, %v4896_v4  ;;  %v722_v13 = vpop.f32.mrb[46].mxu1  ;;  %1401 = vmatprep.mubr.bf16.mxu0 %v852_v8  ;;  %1594 = vmatprep.mubr.bf16.mxu1 %v852_v8 }
 0x28a   :  { %v723_v14 = vadd.f32 %v722_v13, %v4893_v63  ;;  %v724_v15 = vpop.f32.mrb[47].mxu1  ;;  %1402 = vmatmul.mubr.bf16.gmra.mrb[72].mxu0 %v851_v7  ;;  %1595 = vmatmul.mubr.bf16.gmra.mrb[104].mxu1 %v851_v7  ;;  %v811_v17 = vmax.f32 %v719_v10, 0.0 }
 0x28b   :  { %v725_v16 = vadd.f32 %v724_v15, %v4896_v4  ;;  %v812_v19 = vmax.f32 %v721_v12, 0.0 }
 0x28c   :  { %v813_v18 = vmax.f32 %v723_v14, 0.0 }
 0x28d   :  { %v814_v20 = vmax.f32 %v725_v16, 0.0 }
 0x28e   :  { %v853_v21 = vpack.c.bf16 %v813_v18, %v811_v17 }
 0x28f   :  { %v854_v22 = vpack.c.bf16 %v814_v20, %v812_v19  ;;  %v728_v23 = vpop.f32.mrb[48].mxu1 }
 0x290   :  { %v729_v24 = vadd.f32 %v728_v23, %v4893_v63  ;;  %v730_v25 = vpop.f32.mrb[49].mxu1  ;;  %v939_v23 = vsub.s32 2, %v4881_v59 }
 0x291   :  { %v731_v26 = vadd.f32 %v730_v25, %v4896_v4  ;;  %v732_v27 = vpop.f32.mrb[50].mxu1  ;;  %1411 = vmatprep.mubr.bf16.mxu0 %v854_v22  ;;  %1604 = vmatprep.mubr.bf16.mxu1 %v854_v22 }
 0x292   :  { %v733_v29 = vadd.f32 %v732_v27, %v4893_v63  ;;  %v734_v31 = vpop.f32.mrb[51].mxu1  ;;  %1412 = vmatmul.mubr.bf16.gmra.mrb[76].mxu0 %v853_v21  ;;  %1605 = vmatmul.mubr.bf16.gmra.mrb[108].mxu1 %v853_v21  ;;  %v815_v34 = vmax.f32 %v729_v24, 0.0  ;;  %v927_v24 = vld [vmem:[#allocation6] sm:$0xf] }
 0x293   :  { %v735_v32 = vadd.f32 %v734_v31, %v4896_v4  ;;  %v816_v36 = vmax.f32 %v731_v26, 0.0  ;;  %v4965_v25 = vrot.slane %v927_v24, %v4884_v60  ;;  %v4967_v26 = vrot.slane %v927_v24, %v939_v23 }
 0x294   :  { %v817_v35 = vmax.f32 %v733_v29, 0.0 }
 0x295   :  { %v818_v37 = vmax.f32 %v735_v32, 0.0 }
 0x296   :  { %v855_v38 = vpack.c.bf16 %v817_v35, %v815_v34 }
 0x297   :  { %v856_v39 = vpack.c.bf16 %v818_v37, %v816_v36  ;;  %v738_v40 = vpop.f32.mrb[52].mxu1 }
 0x298   :  { %v739_v41 = vadd.f32 %v738_v40, %v4893_v63  ;;  %v740_v42 = vpop.f32.mrb[53].mxu1 }
 0x299   :  { %v741_v43 = vadd.f32 %v740_v42, %v4896_v4  ;;  %v742_v44 = vpop.f32.mrb[54].mxu1  ;;  %1421 = vmatprep.mubr.bf16.mxu0 %v856_v39  ;;  %1614 = vmatprep.mubr.bf16.mxu1 %v856_v39 }
 0x29a   :  { %v743_v45 = vadd.f32 %v742_v44, %v4893_v63  ;;  %v744_v47 = vpop.f32.mrb[55].mxu1  ;;  %1422 = vmatmul.mubr.bf16.gmra.mrb[80].mxu0 %v855_v38  ;;  %1615 = vmatmul.mubr.bf16.gmra.mrb[112].mxu1 %v855_v38  ;;  %v819_v48 = vmax.f32 %v739_v41, 0.0 }
 0x29b   :  { %v745_v46 = vadd.f32 %v744_v47, %v4896_v4  ;;  %v820_v30 = vmax.f32 %v741_v43, 0.0 }
 0x29c   :  { %v821_v49 = vmax.f32 %v743_v45, 0.0 }
 0x29d   :  { %v822_v5 = vmax.f32 %v745_v46, 0.0 }
 0x29e   :  { %v857_v53 = vpack.c.bf16 %v821_v49, %v819_v48 }
 0x29f   :  { %v858_v54 = vpack.c.bf16 %v822_v5, %v820_v30  ;;  %v748_v55 = vpop.f32.mrb[56].mxu1 }
 0x2a0   :  { %v749_v28 = vadd.f32 %v748_v55, %v4893_v63  ;;  %v750_v52 = vpop.f32.mrb[57].mxu1 }
 0x2a1   :  { %v751_v50 = vadd.f32 %v750_v52, %v4896_v4  ;;  %v752_v56 = vpop.f32.mrb[58].mxu1  ;;  %1431 = vmatprep.mubr.bf16.mxu0 %v858_v54  ;;  %1624 = vmatprep.mubr.bf16.mxu1 %v858_v54 }
 0x2a2   :  { %v753_v57 = vadd.f32 %v752_v56, %v4893_v63  ;;  %v754_v58 = vpop.f32.mrb[59].mxu1  ;;  %1432 = vmatmul.mubr.bf16.gmra.mrb[84].mxu0 %v857_v53  ;;  %1625 = vmatmul.mubr.bf16.gmra.mrb[116].mxu1 %v857_v53  ;;  %v823_v0 = vmax.f32 %v749_v28, 0.0 }
 0x2a3   :  { %v755_v61 = vadd.f32 %v754_v58, %v4896_v4  ;;  %v824_v2 = vmax.f32 %v751_v50, 0.0  ;;  %v4221_v50 = vld [vmem:[#allocation7 + $0x100] ss:$8 sps:$4 sm:$0xff]  }
 0x2a4   :  { %v825_v1 = vmax.f32 %v753_v57, 0.0 }
 0x2a5   :  { %v826_v3 = vmax.f32 %v755_v61, 0.0 }
 0x2a6   :  { %v859_v7 = vpack.c.bf16 %v825_v1, %v823_v0  ;;  %v4226_v0 = vld [vmem:[#allocation7 + $0x114] ss:$8 sps:$4 sm:$0xff]  }
 0x2a7   :  { %v860_v8 = vpack.c.bf16 %v826_v3, %v824_v2  ;;  %v758_v9 = vpop.f32.mrb[60].mxu1 }
 0x2a8   :  { %v759_v10 = vadd.f32 %v758_v9, %v4893_v63  ;;  %v760_v11 = vpop.f32.mrb[61].mxu1 }
 0x2a9   :  { %v761_v12 = vadd.f32 %v760_v11, %v4896_v4  ;;  %v762_v13 = vpop.f32.mrb[62].mxu1  ;;  %1441 = vmatprep.mubr.bf16.mxu0 %v860_v8  ;;  %1634 = vmatprep.mubr.bf16.mxu1 %v860_v8 }
 0x2aa   :  { %v763_v14 = vadd.f32 %v762_v13, %v4893_v63  ;;  %v764_v15 = vpop.f32.mrb[63].mxu1  ;;  %1442 = vmatmul.mubr.bf16.gmra.mrb[88].mxu0 %v859_v7  ;;  %1635 = vmatmul.mubr.bf16.gmra.mrb[120].mxu1 %v859_v7  ;;  %v827_v17 = vmax.f32 %v759_v10, 0.0  ;;  %v943_v63 = vsub.s32 3, %v4881_v59 }
 0x2ab   :  { %v765_v16 = vadd.f32 %v764_v15, %v4896_v4  ;;  %v828_v19 = vmax.f32 %v761_v12, 0.0  ;;  %v4970_v4 = vrot.slane %v927_v24, %v4890_v62 }
 0x2ac   :  { %v829_v18 = vmax.f32 %v763_v14, 0.0  ;;  %v4972_v27 = vrot.slane %v927_v24, %v943_v63  ;;  %v4224_v14 = vld [vmem:[#allocation7 + $0x110] ss:$8 sps:$4 sm:$0xff]  }
 0x2ad   :  { %v830_v20 = vmax.f32 %v765_v16, 0.0 }
 0x2ae   :  { %v861_v21 = vpack.c.bf16 %v829_v18, %v827_v17 }
 0x2af   :  { %v862_v22 = vpack.c.bf16 %v830_v20, %v828_v19  ;;  %v4229_v19 = vld [vmem:[#allocation7 + $0x124] ss:$8 sps:$4 sm:$0xff]  }
 0x2b1   :  { %1451 = vmatprep.mubr.bf16.mxu0 %v862_v22  ;;  %1644 = vmatprep.mubr.bf16.mxu1 %v862_v22 }
 0x2b2   :  { %1452 = vmatmul.mubr.bf16.gmra.mrb[92].mxu0 %v861_v21  ;;  %1645 = vmatmul.mubr.bf16.gmra.mrb[124].mxu1 %v861_v21 }
 0x30d   :  { %v1303_v29 = vpop.f32.mrb[32].mxu0  ;;  %v1496_v31 = vpop.f32.mrb[64].mxu1 }
 0x30e   :  { %v1304_v6 = vadd.f32 %v1303_v29, %v4965_v25  ;;  %v1497_v32 = vadd.f32 %v1496_v31, %v4967_v26  ;;  %v1305_v33 = vpop.f32.mrb[33].mxu0  ;;  %v1498_v34 = vpop.f32.mrb[65].mxu1 }
 0x30f   :  { %v1306_v59 = vadd.f32 %v1305_v33, %v4970_v4  ;;  %v1499_v35 = vadd.f32 %v1498_v34, %v4972_v27  ;;  %v1307_v36 = vpop.f32.mrb[34].mxu0  ;;  %v1500_v37 = vpop.f32.mrb[66].mxu1  ;;  %v4227_v33 = vld [vmem:[#allocation7 + $0x120] ss:$8 sps:$4 sm:$0xff]  }
 0x310   :  { %v1308_v38 = vadd.f32 %v1307_v36, %v4965_v25  ;;  %v1501_v39 = vadd.f32 %v1500_v37, %v4967_v26  ;;  %v1309_v40 = vpop.f32.mrb[35].mxu0  ;;  %v1502_v41 = vpop.f32.mrb[67].mxu1  ;;  %v1655_v44 = vmax.f32 %v1304_v6, 0.0  ;;  %v1657_v45 = vmax.f32 %v1497_v32, 0.0  ;;  %v4232_v37 = vld [vmem:[#allocation7 + $0x134] ss:$8 sps:$4 sm:$0xff]  }
 0x311   :  { %v1310_v42 = vadd.f32 %v1309_v40, %v4970_v4  ;;  %v1503_v43 = vadd.f32 %v1502_v41, %v4972_v27  ;;  %v1656_v48 = vmax.f32 %v1306_v59, 0.0  ;;  %v1658_v49 = vmax.f32 %v1499_v35, 0.0 }
 0x312   :  { %v1659_v47 = vmax.f32 %v1308_v38, 0.0  ;;  %v1661_v46 = vmax.f32 %v1501_v39, 0.0 }
 0x313   :  { %v1660_v51 = vmax.f32 %v1310_v42, 0.0  ;;  %v1662_v30 = vmax.f32 %v1503_v43, 0.0 }
 0x314   :  { %v1783_v5 = vpack.c.bf16 %v1659_v47, %v1655_v44  ;;  %v4982_v53 = vpack.c.bf16 %v1661_v46, %v1657_v45 }
 0x315   :  { %v1784_v54 = vpack.c.bf16 %v1660_v51, %v1656_v48  ;;  %v4984_v55 = vpack.c.bf16 %v1662_v30, %v1658_v49  ;;  %v1313_v28 = vpop.f32.mrb[36].mxu0  ;;  %v1506_v52 = vpop.f32.mrb[68].mxu1  ;;  %v4230_v48 = vld [vmem:[#allocation7 + $0x130] ss:$8 sps:$4 sm:$0xff]  }
 0x316   :  { %v1314_v56 = vadd.f32 %v1313_v28, %v4965_v25  ;;  %v1507_v57 = vadd.f32 %v1506_v52, %v4967_v26  ;;  %v1315_v58 = vpop.f32.mrb[37].mxu0  ;;  %v1508_v61 = vpop.f32.mrb[69].mxu1 }
 0x317   :  { %v1316_v1 = vadd.f32 %v1315_v58, %v4970_v4  ;;  %v1509_v2 = vadd.f32 %v1508_v61, %v4972_v27  ;;  %v1317_v3 = vpop.f32.mrb[38].mxu0  ;;  %v1510_v7 = vpop.f32.mrb[70].mxu1  ;;  %2275 = vmatprep.mubr.bf16.mxu0 %v1784_v54  ;;  %v4235_v54 = vld [vmem:[#allocation7 + $0x144] ss:$8 sps:$4 sm:$0xff]  }
 0x318   :  { %v1318_v8 = vadd.f32 %v1317_v3, %v4965_v25  ;;  %v1511_v9 = vadd.f32 %v1510_v7, %v4967_v26  ;;  %v1319_v10 = vpop.f32.mrb[39].mxu0  ;;  %v1512_v11 = vpop.f32.mrb[71].mxu1  ;;  %2276 = vmatmul.mubr.bf16.vlgmr.msra.gmra.mrb[96].mxu0 %v1783_v5  ;;  %v1663_v15 = vmax.f32 %v1314_v56, 0.0  ;;  %v1665_v16 = vmax.f32 %v1507_v57, 0.0  ;;  %v4233_v3 = vld [vmem:[#allocation7 + $0x140] ss:$8 sps:$4 sm:$0xff]  }
 0x319   :  { %v1320_v12 = vadd.f32 %v1319_v10, %v4970_v4  ;;  %v1513_v13 = vadd.f32 %v1512_v11, %v4972_v27  ;;  %2437 = vmatpush1.bf16.msra.mxu0 %v4221_v50  ;;  %v1664_v20 = vmax.f32 %v1316_v1, 0.0  ;;  %v1666_v21 = vmax.f32 %v1509_v2, 0.0  ;;  %v4238_v11 = vld [vmem:[#allocation7 + $0x154] ss:$8 sps:$4 sm:$0xff]  }
 0x31a   :  { %v1667_v17 = vmax.f32 %v1318_v8, 0.0  ;;  %v1669_v18 = vmax.f32 %v1511_v9, 0.0  ;;  %2438 = vmatprep.subr.bf16.mxu0 %v4226_v0 }
 0x31b   :  { %v1668_v22 = vmax.f32 %v1320_v12, 0.0  ;;  %v1670_v23 = vmax.f32 %v1513_v13, 0.0 }
 0x31c   :  { %v1787_v24 = vpack.c.bf16 %v1667_v17, %v1663_v15  ;;  %v4994_v63 = vpack.c.bf16 %v1669_v18, %v1665_v16 }
 0x31d   :  { %v1788_v29 = vpack.c.bf16 %v1668_v22, %v1664_v20  ;;  %v4996_v31 = vpack.c.bf16 %v1670_v23, %v1666_v21  ;;  %v1323_v6 = vpop.f32.mrb[40].mxu0  ;;  %v1516_v32 = vpop.f32.mrb[72].mxu1  ;;  %2439 = vmatpush1.bf16.msra.mxu0 %v4224_v14  ;;  %v4236_v22 = vld [vmem:[#allocation7 + $0x150] ss:$8 sps:$4 sm:$0xff]  }
 0x31e   :  { %v1324_v34 = vadd.f32 %v1323_v6, %v4965_v25  ;;  %v1517_v59 = vadd.f32 %v1516_v32, %v4967_v26  ;;  %v1325_v35 = vpop.f32.mrb[41].mxu0  ;;  %v1518_v36 = vpop.f32.mrb[73].mxu1  ;;  %2440 = vmatprep.subr.bf16.mxu0 %v4229_v19  ;;  %v4241_v32 = vld [vmem:[#allocation7 + $0x164] ss:$8 sps:$4 sm:$0xff]  }
 0x31f   :  { %v1326_v38 = vadd.f32 %v1325_v35, %v4970_v4  ;;  %v1519_v39 = vadd.f32 %v1518_v36, %v4972_v27  ;;  %v1327_v40 = vpop.f32.mrb[42].mxu0  ;;  %v1520_v41 = vpop.f32.mrb[74].mxu1  ;;  %2285 = vmatprep.mubr.bf16.mxu0 %v1788_v29 }
 0x320   :  { %v1328_v42 = vadd.f32 %v1327_v40, %v4965_v25  ;;  %v1521_v43 = vadd.f32 %v1520_v41, %v4967_v26  ;;  %v1329_v44 = vpop.f32.mrb[43].mxu0  ;;  %v1522_v45 = vpop.f32.mrb[75].mxu1  ;;  %2286 = vmatmul.mubr.bf16.gmra.mrb[100].mxu0 %v1787_v24  ;;  %v1671_v49 = vmax.f32 %v1324_v34, 0.0  ;;  %v1673_v51 = vmax.f32 %v1517_v59, 0.0 }
 0x321   :  { %v1330_v47 = vadd.f32 %v1329_v44, %v4970_v4  ;;  %v1523_v46 = vadd.f32 %v1522_v45, %v4972_v27  ;;  %2441 = vmatpush1.bf16.msra.mxu0 %v4227_v33  ;;  %v1672_v28 = vmax.f32 %v1326_v38, 0.0  ;;  %v1674_v52 = vmax.f32 %v1519_v39, 0.0 }
 0x322   :  { %v1675_v30 = vmax.f32 %v1328_v42, 0.0  ;;  %v1677_v5 = vmax.f32 %v1521_v43, 0.0  ;;  %2442 = vmatprep.subr.bf16.mxu0 %v4232_v37  ;;  %v4239_v42 = vld [vmem:[#allocation7 + $0x160] ss:$8 sps:$4 sm:$0xff]  }
 0x323   :  { %v1676_v50 = vmax.f32 %v1330_v47, 0.0  ;;  %v1678_v56 = vmax.f32 %v1523_v46, 0.0  ;;  %v4244_v46 = vld [vmem:[#allocation7 + $0x174] ss:$8 sps:$4 sm:$0xff]  }
 0x324   :  { %v1791_v57 = vpack.c.bf16 %v1675_v30, %v1671_v49  ;;  %v5006_v58 = vpack.c.bf16 %v1677_v5, %v1673_v51 }
 0x325   :  { %v1792_v61 = vpack.c.bf16 %v1676_v50, %v1672_v28  ;;  %v5008_v0 = vpack.c.bf16 %v1678_v56, %v1674_v52  ;;  %v1333_v1 = vpop.f32.mrb[44].mxu0  ;;  %v1526_v2 = vpop.f32.mrb[76].mxu1  ;;  %2443 = vmatpush1.bf16.msra.mxu0 %v4230_v48 }
 0x326   :  { %v1334_v7 = vadd.f32 %v1333_v1, %v4965_v25  ;;  %v1527_v8 = vadd.f32 %v1526_v2, %v4967_v26  ;;  %v1335_v9 = vpop.f32.mrb[45].mxu0  ;;  %v1528_v10 = vpop.f32.mrb[77].mxu1  ;;  %2444 = vmatprep.subr.bf16.mxu0 %v4235_v54 }
 0x327   :  { %v1336_v12 = vadd.f32 %v1335_v9, %v4970_v4  ;;  %v1529_v13 = vadd.f32 %v1528_v10, %v4972_v27  ;;  %v1337_v14 = vpop.f32.mrb[46].mxu0  ;;  %v1530_v15 = vpop.f32.mrb[78].mxu1  ;;  %2295 = vmatprep.mubr.bf16.mxu0 %v1792_v61 }
 0x328   :  { %v1338_v16 = vadd.f32 %v1337_v14, %v4965_v25  ;;  %v1531_v17 = vadd.f32 %v1530_v15, %v4967_v26  ;;  %v1339_v18 = vpop.f32.mrb[47].mxu0  ;;  %v1532_v19 = vpop.f32.mrb[79].mxu1  ;;  %2296 = vmatmul.mubr.bf16.gmra.mrb[104].mxu0 %v1791_v57  ;;  %v1679_v23 = vmax.f32 %v1334_v7, 0.0  ;;  %v1681_v24 = vmax.f32 %v1527_v8, 0.0  ;;  %v4242_v57 = vld [vmem:[#allocation7 + $0x170] ss:$8 sps:$4 sm:$0xff]  }
 0x329   :  { %v1340_v20 = vadd.f32 %v1339_v18, %v4970_v4  ;;  %v1533_v21 = vadd.f32 %v1532_v19, %v4972_v27  ;;  %2445 = vmatpush1.bf16.msra.mxu0 %v4233_v3  ;;  %v1680_v33 = vmax.f32 %v1336_v12, 0.0  ;;  %v1682_v34 = vmax.f32 %v1529_v13, 0.0  ;;  %v4247_v7 = vld [vmem:[#allocation7 + $0x184] ss:$8 sps:$4 sm:$0xff]   ;;  %v4245_v18 = vld [vmem:[#allocation7 + $0x180] ss:$8 sps:$4 sm:$0xff]  }
 0x32a   :  { %v1683_v29 = vmax.f32 %v1338_v16, 0.0  ;;  %v1685_v6 = vmax.f32 %v1531_v17, 0.0  ;;  %2446 = vmatprep.subr.bf16.mxu0 %v4238_v11 }
 0x32b   :  { %v1684_v59 = vmax.f32 %v1340_v20, 0.0  ;;  %v1686_v35 = vmax.f32 %v1533_v21, 0.0 }
 0x32c   :  { %v1795_v36 = vpack.c.bf16 %v1683_v29, %v1679_v23  ;;  %v5018_v37 = vpack.c.bf16 %v1685_v6, %v1681_v24  ;;  %v4250_v23 = vld [vmem:[#allocation7 + $0x194] ss:$8 sps:$4 sm:$0xff]  }
 0x32d   :  { %v1796_v38 = vpack.c.bf16 %v1684_v59, %v1680_v33  ;;  %v5020_v39 = vpack.c.bf16 %v1686_v35, %v1682_v34  ;;  %v1343_v40 = vpop.f32.mrb[48].mxu0  ;;  %v1536_v41 = vpop.f32.mrb[80].mxu1  ;;  %2447 = vmatpush1.bf16.msra.mxu0 %v4236_v22 }
 0x32e   :  { %v1344_v43 = vadd.f32 %v1343_v40, %v4965_v25  ;;  %v1537_v44 = vadd.f32 %v1536_v41, %v4967_v26  ;;  %v1345_v45 = vpop.f32.mrb[49].mxu0  ;;  %v1538_v47 = vpop.f32.mrb[81].mxu1  ;;  %2448 = vmatprep.subr.bf16.mxu0 %v4241_v32  ;;  %v4248_v40 = vld [vmem:[#allocation7 + $0x190] ss:$8 sps:$4 sm:$0xff]  }
 0x32f   :  { %v1346_v48 = vadd.f32 %v1345_v45, %v4970_v4  ;;  %v1539_v49 = vadd.f32 %v1538_v47, %v4972_v27  ;;  %v1347_v51 = vpop.f32.mrb[50].mxu0  ;;  %v1540_v30 = vpop.f32.mrb[82].mxu1  ;;  %2305 = vmatprep.mubr.bf16.mxu0 %v1796_v38  ;;  %v4253_v45 = vld [vmem:[#allocation7 + $0x1a4] ss:$8 sps:$4 sm:$0xff]  }
 0x330   :  { %v1348_v5 = vadd.f32 %v1347_v51, %v4965_v25  ;;  %v1541_v54 = vadd.f32 %v1540_v30, %v4967_v26  ;;  %v1349_v28 = vpop.f32.mrb[51].mxu0  ;;  %v1542_v52 = vpop.f32.mrb[83].mxu1  ;;  %2306 = vmatmul.mubr.bf16.gmra.mrb[108].mxu0 %v1795_v36  ;;  %v1687_v61 = vmax.f32 %v1344_v43, 0.0  ;;  %v1689_v1 = vmax.f32 %v1537_v44, 0.0 }
 0x331   :  { %v1350_v50 = vadd.f32 %v1349_v28, %v4970_v4  ;;  %v1543_v56 = vadd.f32 %v1542_v52, %v4972_v27  ;;  %2449 = vmatpush1.bf16.msra.mxu0 %v4239_v42  ;;  %v1688_v8 = vmax.f32 %v1346_v48, 0.0  ;;  %v1690_v9 = vmax.f32 %v1539_v49, 0.0 }
 0x332   :  { %v1691_v2 = vmax.f32 %v1348_v5, 0.0  ;;  %v1693_v3 = vmax.f32 %v1541_v54, 0.0  ;;  %2450 = vmatprep.subr.bf16.mxu0 %v4244_v46 }
 0x333   :  { %v1692_v10 = vmax.f32 %v1350_v50, 0.0  ;;  %v1694_v11 = vmax.f32 %v1543_v56, 0.0  ;;  %v4251_v50 = vld [vmem:[#allocation7 + $0x1a0] ss:$8 sps:$4 sm:$0xff]  }
 0x334   :  { %v1799_v12 = vpack.c.bf16 %v1691_v2, %v1687_v61  ;;  %v5030_v13 = vpack.c.bf16 %v1693_v3, %v1689_v1  ;;  %v4256_v2 = vld [vmem:[#allocation7 + $0x1b4] ss:$8 sps:$4 sm:$0xff]  }
 0x335   :  { %v1800_v14 = vpack.c.bf16 %v1692_v10, %v1688_v8  ;;  %v5032_v15 = vpack.c.bf16 %v1694_v11, %v1690_v9  ;;  %v1353_v16 = vpop.f32.mrb[52].mxu0  ;;  %v1546_v17 = vpop.f32.mrb[84].mxu1  ;;  %2451 = vmatpush1.bf16.msra.mxu0 %v4242_v57 }
 0x336   :  { %v1354_v19 = vadd.f32 %v1353_v16, %v4965_v25  ;;  %v1547_v20 = vadd.f32 %v1546_v17, %v4967_v26  ;;  %v1355_v21 = vpop.f32.mrb[53].mxu0  ;;  %v1548_v22 = vpop.f32.mrb[85].mxu1  ;;  %2452 = vmatprep.subr.bf16.mxu0 %v4247_v7 }
 0x337   :  { %v1356_v24 = vadd.f32 %v1355_v21, %v4970_v4  ;;  %v1549_v29 = vadd.f32 %v1548_v22, %v4972_v27  ;;  %v1357_v6 = vpop.f32.mrb[54].mxu0  ;;  %v1550_v32 = vpop.f32.mrb[86].mxu1  ;;  %2315 = vmatprep.mubr.bf16.mxu0 %v1800_v14 }
 0x338   :  { %v1358_v33 = vadd.f32 %v1357_v6, %v4965_v25  ;;  %v1551_v34 = vadd.f32 %v1550_v32, %v4967_v26  ;;  %v1359_v59 = vpop.f32.mrb[55].mxu0  ;;  %v1552_v35 = vpop.f32.mrb[87].mxu1  ;;  %2316 = vmatmul.mubr.bf16.gmra.mrb[112].mxu0 %v1799_v12  ;;  %v1695_v41 = vmax.f32 %v1354_v19, 0.0  ;;  %v1697_v42 = vmax.f32 %v1547_v20, 0.0 }
 0x339   :  { %v1360_v36 = vadd.f32 %v1359_v59, %v4970_v4  ;;  %v1553_v38 = vadd.f32 %v1552_v35, %v4972_v27  ;;  %2453 = vmatpush1.bf16.msra.mxu0 %v4245_v18  ;;  %v1696_v47 = vmax.f32 %v1356_v24, 0.0  ;;  %v1698_v46 = vmax.f32 %v1549_v29, 0.0  ;;  %v4254_v18 = vld [vmem:[#allocation7 + $0x1b0] ss:$8 sps:$4 sm:$0xff]  }
 0x33a   :  { %v1699_v43 = vmax.f32 %v1358_v33, 0.0  ;;  %v1701_v44 = vmax.f32 %v1551_v34, 0.0  ;;  %2454 = vmatprep.subr.bf16.mxu0 %v4250_v23  ;;  %v4259_v23 = vld [vmem:[#allocation7 + $0x1c4] ss:$8 sps:$4 sm:$0xff]  }
 0x33b   :  { %v1700_v48 = vmax.f32 %v1360_v36, 0.0  ;;  %v1702_v49 = vmax.f32 %v1553_v38, 0.0 }
 0x33c   :  { %v1803_v51 = vpack.c.bf16 %v1699_v43, %v1695_v41  ;;  %v5042_v30 = vpack.c.bf16 %v1701_v44, %v1697_v42 }
 0x33d   :  { %v1804_v5 = vpack.c.bf16 %v1700_v48, %v1696_v47  ;;  %v5044_v54 = vpack.c.bf16 %v1702_v49, %v1698_v46  ;;  %v1363_v28 = vpop.f32.mrb[56].mxu0  ;;  %v1556_v52 = vpop.f32.mrb[88].mxu1  ;;  %2455 = vmatpush1.bf16.msra.mxu0 %v4248_v40  ;;  %v4257_v40 = vld [vmem:[#allocation7 + $0x1c0] ss:$8 sps:$4 sm:$0xff]  }
 0x33e   :  { %v1364_v56 = vadd.f32 %v1363_v28, %v4965_v25  ;;  %v1557_v57 = vadd.f32 %v1556_v52, %v4967_v26  ;;  %v1365_v61 = vpop.f32.mrb[57].mxu0  ;;  %v1558_v1 = vpop.f32.mrb[89].mxu1  ;;  %2456 = vmatprep.subr.bf16.mxu0 %v4253_v45  ;;  %v4262_v45 = vld [vmem:[#allocation7 + $0x1d4] ss:$8 sps:$4 sm:$0xff]  }
 0x33f   :  { %v1366_v3 = vadd.f32 %v1365_v61, %v4970_v4  ;;  %v1559_v7 = vadd.f32 %v1558_v1, %v4972_v27  ;;  %v1367_v8 = vpop.f32.mrb[58].mxu0  ;;  %v1560_v9 = vpop.f32.mrb[90].mxu1  ;;  %2325 = vmatprep.mubr.bf16.mxu0 %v1804_v5 }
 0x340   :  { %v1368_v10 = vadd.f32 %v1367_v8, %v4965_v25  ;;  %v1561_v11 = vadd.f32 %v1560_v9, %v4967_v26  ;;  %v1369_v12 = vpop.f32.mrb[59].mxu0  ;;  %v1562_v14 = vpop.f32.mrb[91].mxu1  ;;  %2326 = vmatmul.mubr.bf16.gmra.mrb[116].mxu0 %v1803_v51  ;;  %v1703_v19 = vmax.f32 %v1364_v56, 0.0  ;;  %v1705_v20 = vmax.f32 %v1557_v57, 0.0  ;;  %v4260_v57 = vld [vmem:[#allocation7 + $0x1d0] ss:$8 sps:$4 sm:$0xff]  }
 0x341   :  { %v1370_v16 = vadd.f32 %v1369_v12, %v4970_v4  ;;  %v1563_v17 = vadd.f32 %v1562_v14, %v4972_v27  ;;  %2457 = vmatpush1.bf16.msra.mxu0 %v4251_v50  ;;  %v1704_v24 = vmax.f32 %v1366_v3, 0.0  ;;  %v1706_v29 = vmax.f32 %v1559_v7, 0.0  ;;  %v4265_v7 = vld [vmem:[#allocation7 + $0x1e4] ss:$8 sps:$4 sm:$0xff]  }
 0x342   :  { %v1707_v21 = vmax.f32 %v1368_v10, 0.0  ;;  %v1709_v22 = vmax.f32 %v1561_v11, 0.0  ;;  %2458 = vmatprep.subr.bf16.mxu0 %v4256_v2 }
 0x343   :  { %v1708_v6 = vmax.f32 %v1370_v16, 0.0  ;;  %v1710_v32 = vmax.f32 %v1563_v17, 0.0 }
 0x344   :  { %v1807_v33 = vpack.c.bf16 %v1707_v21, %v1703_v19  ;;  %v5054_v34 = vpack.c.bf16 %v1709_v22, %v1705_v20  ;;  %v4263_v20 = vld [vmem:[#allocation7 + $0x1e0] ss:$8 sps:$4 sm:$0xff]  }
 0x345   :  { %v1808_v59 = vpack.c.bf16 %v1708_v6, %v1704_v24  ;;  %v5056_v35 = vpack.c.bf16 %v1710_v32, %v1706_v29  ;;  %v1373_v36 = vpop.f32.mrb[60].mxu0  ;;  %v1566_v38 = vpop.f32.mrb[92].mxu1  ;;  %2459 = vmatpush1.bf16.msra.mxu0 %v4254_v18  ;;  %v4268_v29 = vld [vmem:[#allocation7 + $0x1f4] ss:$8 sps:$4 sm:$0xff]  }
 0x346   :  { %v1374_v41 = vadd.f32 %v1373_v36, %v4965_v25  ;;  %v1567_v42 = vadd.f32 %v1566_v38, %v4967_v26  ;;  %v1375_v43 = vpop.f32.mrb[61].mxu0  ;;  %v1568_v44 = vpop.f32.mrb[93].mxu1  ;;  %2460 = vmatprep.subr.bf16.mxu0 %v4259_v23 }
 0x347   :  { %v1376_v47 = vadd.f32 %v1375_v43, %v4970_v4  ;;  %v1569_v46 = vadd.f32 %v1568_v44, %v4972_v27  ;;  %v1377_v48 = vpop.f32.mrb[62].mxu0  ;;  %v1570_v49 = vpop.f32.mrb[94].mxu1  ;;  %2335 = vmatprep.mubr.bf16.mxu0 %v1808_v59  ;;  %v4266_v44 = vld [vmem:[#allocation7 + $0x1f0] ss:$8 sps:$4 sm:$0xff]  }
 0x348   :  { %v1378_v51 = vadd.f32 %v1377_v48, %v4965_v25  ;;  %v1571_v5 = vadd.f32 %v1570_v49, %v4967_v26  ;;  %v1379_v28 = vpop.f32.mrb[63].mxu0  ;;  %v1572_v52 = vpop.f32.mrb[95].mxu1  ;;  %2336 = vmatmul.mubr.bf16.gmra.mrb[120].mxu0 %v1807_v33  ;;  %v1711_v61 = vmax.f32 %v1374_v41, 0.0  ;;  %v1713_v1 = vmax.f32 %v1567_v42, 0.0 }
 0x349   :  { %v1380_v50 = vadd.f32 %v1379_v28, %v4970_v4  ;;  %v1573_v56 = vadd.f32 %v1572_v52, %v4972_v27  ;;  %2461 = vmatpush1.bf16.msra.mxu0 %v4257_v40  ;;  %v1712_v8 = vmax.f32 %v1376_v47, 0.0  ;;  %v1714_v9 = vmax.f32 %v1569_v46, 0.0 }
 0x34a   :  { %v1715_v2 = vmax.f32 %v1378_v51, 0.0  ;;  %v1717_v3 = vmax.f32 %v1571_v5, 0.0  ;;  %2462 = vmatprep.subr.bf16.mxu0 %v4262_v45 }
 0x34b   :  { %v1716_v10 = vmax.f32 %v1380_v50, 0.0  ;;  %v1718_v11 = vmax.f32 %v1573_v56, 0.0 }
 0x34c   :  { %v1811_v12 = vpack.c.bf16 %v1715_v2, %v1711_v61  ;;  %v5066_v14 = vpack.c.bf16 %v1717_v3, %v1713_v1 }
 0x34d   :  { %v1812_v16 = vpack.c.bf16 %v1716_v10, %v1712_v8  ;;  %v5068_v17 = vpack.c.bf16 %v1718_v11, %v1714_v9  ;;  %v1383_v18 = vpop.f32.mrb[64].mxu0  ;;  %v1576_v19 = vpop.f32.mrb[96].mxu1  ;;  %2463 = vmatpush1.bf16.msra.mxu0 %v4260_v57 }
 0x34e   :  { %v1384_v21 = vadd.f32 %v1383_v18, %v4965_v25  ;;  %v1577_v22 = vadd.f32 %v1576_v19, %v4967_v26  ;;  %v1385_v23 = vpop.f32.mrb[65].mxu0  ;;  %v1578_v24 = vpop.f32.mrb[97].mxu1  ;;  %2464 = vmatprep.subr.bf16.mxu0 %v4265_v7 }
 0x34f   :  { %v1386_v6 = vadd.f32 %v1385_v23, %v4970_v4  ;;  %v1579_v32 = vadd.f32 %v1578_v24, %v4972_v27  ;;  %v1387_v33 = vpop.f32.mrb[66].mxu0  ;;  %v1580_v59 = vpop.f32.mrb[98].mxu1  ;;  %2345 = vmatprep.mubr.bf16.mxu0 %v1812_v16 }
 0x350   :  { %v1388_v36 = vadd.f32 %v1387_v33, %v4965_v25  ;;  %v1581_v38 = vadd.f32 %v1580_v59, %v4967_v26  ;;  %v1389_v40 = vpop.f32.mrb[67].mxu0  ;;  %v1582_v41 = vpop.f32.mrb[99].mxu1  ;;  %2346 = vmatmul.mubr.bf16.gmra.mrb[124].mxu0 %v1811_v12  ;;  %v1719_v45 = vmax.f32 %v1384_v21, 0.0  ;;  %v1721_v47 = vmax.f32 %v1577_v22, 0.0 }
 0x351   :  { %v1390_v42 = vadd.f32 %v1389_v40, %v4970_v4  ;;  %v1583_v43 = vadd.f32 %v1582_v41, %v4972_v27  ;;  %2465 = vmatpush1.bf16.msra.mxu0 %v4263_v20  ;;  %v1720_v49 = vmax.f32 %v1386_v6, 0.0  ;;  %v1722_v51 = vmax.f32 %v1579_v32, 0.0 }
 0x352   :  { %v1723_v46 = vmax.f32 %v1388_v36, 0.0  ;;  %v1725_v48 = vmax.f32 %v1581_v38, 0.0  ;;  %2466 = vmatprep.subr.bf16.mxu0 %v4268_v29 }
 0x353   :  { %v1724_v5 = vmax.f32 %v1390_v42, 0.0  ;;  %v1726_v28 = vmax.f32 %v1583_v43, 0.0 }
 0x354   :  { %v1815_v52 = vpack.c.bf16 %v1723_v46, %v1719_v45  ;;  %v5078_v50 = vpack.c.bf16 %v1725_v48, %v1721_v47 }
 0x355   :  { %v1816_v56 = vpack.c.bf16 %v1724_v5, %v1720_v49  ;;  %v5080_v57 = vpack.c.bf16 %v1726_v28, %v1722_v51  ;;  %v1393_v61 = vpop.f32.mrb[68].mxu0  ;;  %v1586_v1 = vpop.f32.mrb[100].mxu1  ;;  %2467 = vmatpush1.bf16.msra.mxu0 %v4266_v44 }
 0x356   :  { %v1394_v2 = vadd.f32 %v1393_v61, %v4965_v25  ;;  %v1587_v3 = vadd.f32 %v1586_v1, %v4967_v26  ;;  %v1395_v7 = vpop.f32.mrb[69].mxu0  ;;  %v1588_v8 = vpop.f32.mrb[101].mxu1 }
 0x357   :  { %v1396_v9 = vadd.f32 %v1395_v7, %v4970_v4  ;;  %v1589_v10 = vadd.f32 %v1588_v8, %v4972_v27  ;;  %v1397_v11 = vpop.f32.mrb[70].mxu0  ;;  %v1590_v12 = vpop.f32.mrb[102].mxu1  ;;  %2355 = vmatprep.mubr.bf16.mxu0 %v1816_v56 }
 0x358   :  { %v1398_v16 = vadd.f32 %v1397_v11, %v4965_v25  ;;  %v1591_v18 = vadd.f32 %v1590_v12, %v4967_v26  ;;  %v1399_v19 = vpop.f32.mrb[71].mxu0  ;;  %v1592_v20 = vpop.f32.mrb[103].mxu1  ;;  %2356 = vmatmul.mubr.bf16.gmra.mrb[128].mxu0 %v1815_v52  ;;  %v1727_v23 = vmax.f32 %v1394_v2, 0.0  ;;  %v1729_v24 = vmax.f32 %v1587_v3, 0.0 }
 0x359   :  { %v1400_v21 = vadd.f32 %v1399_v19, %v4970_v4  ;;  %v1593_v22 = vadd.f32 %v1592_v20, %v4972_v27  ;;  %v1728_v32 = vmax.f32 %v1396_v9, 0.0  ;;  %v1730_v33 = vmax.f32 %v1589_v10, 0.0 }
 0x35a   :  { %v1731_v29 = vmax.f32 %v1398_v16, 0.0  ;;  %v1733_v6 = vmax.f32 %v1591_v18, 0.0 }
 0x35b   :  { %v1732_v59 = vmax.f32 %v1400_v21, 0.0  ;;  %v1734_v36 = vmax.f32 %v1593_v22, 0.0 }
 0x35c   :  { %v1819_v38 = vpack.c.bf16 %v1731_v29, %v1727_v23  ;;  %v5090_v40 = vpack.c.bf16 %v1733_v6, %v1729_v24 }
 0x35d   :  { %v1820_v41 = vpack.c.bf16 %v1732_v59, %v1728_v32  ;;  %v5092_v42 = vpack.c.bf16 %v1734_v36, %v1730_v33  ;;  %v1403_v43 = vpop.f32.mrb[72].mxu0  ;;  %v1596_v44 = vpop.f32.mrb[104].mxu1 }
 0x35e   :  { %v1404_v45 = vadd.f32 %v1403_v43, %v4965_v25  ;;  %v1597_v47 = vadd.f32 %v1596_v44, %v4967_v26  ;;  %v1405_v46 = vpop.f32.mrb[73].mxu0  ;;  %v1598_v48 = vpop.f32.mrb[105].mxu1 }
 0x35f   :  { %v1406_v49 = vadd.f32 %v1405_v46, %v4970_v4  ;;  %v1599_v51 = vadd.f32 %v1598_v48, %v4972_v27  ;;  %v1407_v5 = vpop.f32.mrb[74].mxu0  ;;  %v1600_v28 = vpop.f32.mrb[106].mxu1  ;;  %2365 = vmatprep.mubr.bf16.mxu0 %v1820_v41 }
 0x360   :  { %v1408_v52 = vadd.f32 %v1407_v5, %v4965_v25  ;;  %v1601_v56 = vadd.f32 %v1600_v28, %v4967_v26  ;;  %v1409_v61 = vpop.f32.mrb[75].mxu0  ;;  %v1602_v1 = vpop.f32.mrb[107].mxu1  ;;  %2366 = vmatmul.mubr.bf16.gmra.mrb[132].mxu0 %v1819_v38  ;;  %v1735_v7 = vmax.f32 %v1404_v45, 0.0  ;;  %v1737_v8 = vmax.f32 %v1597_v47, 0.0 }
 0x361   :  { %v1410_v2 = vadd.f32 %v1409_v61, %v4970_v4  ;;  %v1603_v3 = vadd.f32 %v1602_v1, %v4972_v27  ;;  %v1736_v11 = vmax.f32 %v1406_v49, 0.0  ;;  %v1738_v12 = vmax.f32 %v1599_v51, 0.0 }
 0x362   :  { %v1739_v9 = vmax.f32 %v1408_v52, 0.0  ;;  %v1741_v10 = vmax.f32 %v1601_v56, 0.0 }
 0x363   :  { %v1740_v16 = vmax.f32 %v1410_v2, 0.0  ;;  %v1742_v18 = vmax.f32 %v1603_v3, 0.0 }
 0x364   :  { %v1823_v19 = vpack.c.bf16 %v1739_v9, %v1735_v7  ;;  %v5102_v20 = vpack.c.bf16 %v1741_v10, %v1737_v8 }
 0x365   :  { %v1824_v21 = vpack.c.bf16 %v1740_v16, %v1736_v11  ;;  %v5104_v22 = vpack.c.bf16 %v1742_v18, %v1738_v12  ;;  %v1413_v23 = vpop.f32.mrb[76].mxu0  ;;  %v1606_v24 = vpop.f32.mrb[108].mxu1 }
 0x366   :  { %v1414_v29 = vadd.f32 %v1413_v23, %v4965_v25  ;;  %v1607_v6 = vadd.f32 %v1606_v24, %v4967_v26  ;;  %v1415_v32 = vpop.f32.mrb[77].mxu0  ;;  %v1608_v33 = vpop.f32.mrb[109].mxu1 }
 0x367   :  { %v1416_v59 = vadd.f32 %v1415_v32, %v4970_v4  ;;  %v1609_v36 = vadd.f32 %v1608_v33, %v4972_v27  ;;  %v1417_v38 = vpop.f32.mrb[78].mxu0  ;;  %v1610_v41 = vpop.f32.mrb[110].mxu1  ;;  %2375 = vmatprep.mubr.bf16.mxu0 %v1824_v21 }
 0x368   :  { %v1418_v43 = vadd.f32 %v1417_v38, %v4965_v25  ;;  %v1611_v44 = vadd.f32 %v1610_v41, %v4967_v26  ;;  %v1419_v45 = vpop.f32.mrb[79].mxu0  ;;  %v1612_v47 = vpop.f32.mrb[111].mxu1  ;;  %2376 = vmatmul.mubr.bf16.gmra.mrb[136].mxu0 %v1823_v19  ;;  %v1743_v49 = vmax.f32 %v1414_v29, 0.0  ;;  %v1745_v51 = vmax.f32 %v1607_v6, 0.0  ;;  %v4271_v38 = vld [vmem:[%s5599_s9 + $0x4] ss:$8 sps:$4 sm:$0xff]  }
 0x369   :  { %v1420_v46 = vadd.f32 %v1419_v45, %v4970_v4  ;;  %v1613_v48 = vadd.f32 %v1612_v47, %v4972_v27  ;;  %v1744_v52 = vmax.f32 %v1416_v59, 0.0  ;;  %v1746_v56 = vmax.f32 %v1609_v36, 0.0  ;;  %v5132_v47 = vld [vmem:[%s5599_s9] ss:$8 sps:$4 sm:$0xff]   ;;  %2929 = vmatprep.subr.bf16.mxu0 %v4271_v38  ;;  %3876 = vmatprep.subr.bf16.mxu1 %v4271_v38 }
 0x36a   :  { %v1747_v5 = vmax.f32 %v1418_v43, 0.0  ;;  %v1749_v28 = vmax.f32 %v1611_v44, 0.0  ;;  %3892 = vmatpush1.bf16.msra.mxu1 %v5132_v47 }
 0x36b   :  { %v1748_v61 = vmax.f32 %v1420_v46, 0.0  ;;  %v1750_v1 = vmax.f32 %v1613_v48, 0.0 }
 0x36c   :  { %v1827_v2 = vpack.c.bf16 %v1747_v5, %v1743_v49  ;;  %v5114_v3 = vpack.c.bf16 %v1749_v28, %v1745_v51 }
 0x36d   :  { %v1828_v7 = vpack.c.bf16 %v1748_v61, %v1744_v52  ;;  %v5116_v8 = vpack.c.bf16 %v1750_v1, %v1746_v56  ;;  %v1423_v9 = vpop.f32.mrb[80].mxu0  ;;  %v1616_v10 = vpop.f32.mrb[112].mxu1 }
 0x36e   :  { %v1424_v11 = vadd.f32 %v1423_v9, %v4965_v25  ;;  %v1617_v12 = vadd.f32 %v1616_v10, %v4967_v26  ;;  %v1425_v16 = vpop.f32.mrb[81].mxu0  ;;  %v1618_v18 = vpop.f32.mrb[113].mxu1 }
 0x36f   :  { %v1426_v19 = vadd.f32 %v1425_v16, %v4970_v4  ;;  %v1619_v21 = vadd.f32 %v1618_v18, %v4972_v27  ;;  %v1427_v23 = vpop.f32.mrb[82].mxu0  ;;  %v1620_v24 = vpop.f32.mrb[114].mxu1  ;;  %2385 = vmatprep.mubr.bf16.mxu0 %v1828_v7 }
 0x370   :  { %v1428_v29 = vadd.f32 %v1427_v23, %v4965_v25  ;;  %v1621_v6 = vadd.f32 %v1620_v24, %v4967_v26  ;;  %v1429_v32 = vpop.f32.mrb[83].mxu0  ;;  %v1622_v33 = vpop.f32.mrb[115].mxu1  ;;  %2386 = vmatmul.mubr.bf16.gmra.mrb[140].mxu0 %v1827_v2  ;;  %v1751_v41 = vmax.f32 %v1424_v11, 0.0  ;;  %v1753_v43 = vmax.f32 %v1617_v12, 0.0 }
 0x371   :  { %v1430_v59 = vadd.f32 %v1429_v32, %v4970_v4  ;;  %v1623_v36 = vadd.f32 %v1622_v33, %v4972_v27  ;;  %v1752_v46 = vmax.f32 %v1426_v19, 0.0  ;;  %v1754_v48 = vmax.f32 %v1619_v21, 0.0  ;;  %v5150_v32 = vld [vmem:[%s5599_s9 + $0x14] ss:$8 sps:$4 sm:$0xff]  }
 0x372   :  { %v1755_v44 = vmax.f32 %v1428_v29, 0.0  ;;  %v1757_v45 = vmax.f32 %v1621_v6, 0.0  ;;  %3877 = vmatprep.subr.bf16.mxu1 %v5150_v32 }
 0x373   :  { %v1756_v49 = vmax.f32 %v1430_v59, 0.0  ;;  %v1758_v51 = vmax.f32 %v1623_v36, 0.0 }
 0x374   :  { %v1831_v5 = vpack.c.bf16 %v1755_v44, %v1751_v41  ;;  %v5134_v28 = vpack.c.bf16 %v1757_v45, %v1753_v43  ;;  %v5155_v41 = vld [vmem:[%s5599_s9 + $0x10] ss:$8 sps:$4 sm:$0xff]  }
 0x375   :  { %v1832_v52 = vpack.c.bf16 %v1756_v49, %v1752_v46  ;;  %v5137_v56 = vpack.c.bf16 %v1758_v51, %v1754_v48  ;;  %v1433_v61 = vpop.f32.mrb[84].mxu0  ;;  %v1626_v1 = vpop.f32.mrb[116].mxu1  ;;  %3893 = vmatpush1.bf16.msra.mxu1 %v5155_v41 }
 0x376   :  { %v1434_v2 = vadd.f32 %v1433_v61, %v4965_v25  ;;  %v1627_v7 = vadd.f32 %v1626_v1, %v4967_v26  ;;  %v1435_v9 = vpop.f32.mrb[85].mxu0  ;;  %v1628_v10 = vpop.f32.mrb[117].mxu1 }
 0x377   :  { %v1436_v11 = vadd.f32 %v1435_v9, %v4970_v4  ;;  %v1629_v12 = vadd.f32 %v1628_v10, %v4972_v27  ;;  %v1437_v16 = vpop.f32.mrb[86].mxu0  ;;  %v1630_v18 = vpop.f32.mrb[118].mxu1  ;;  %2395 = vmatprep.mubr.bf16.mxu0 %v1832_v52 }
 0x378   :  { %v1438_v19 = vadd.f32 %v1437_v16, %v4965_v25  ;;  %v1631_v21 = vadd.f32 %v1630_v18, %v4967_v26  ;;  %v1439_v23 = vpop.f32.mrb[87].mxu0  ;;  %v1632_v24 = vpop.f32.mrb[119].mxu1  ;;  %2396 = vmatmul.mubr.bf16.gmra.mrb[144].mxu0 %v1831_v5  ;;  %v1759_v33 = vmax.f32 %v1434_v2, 0.0  ;;  %v1761_v59 = vmax.f32 %v1627_v7, 0.0 }
 0x379   :  { %v1440_v29 = vadd.f32 %v1439_v23, %v4970_v4  ;;  %v1633_v6 = vadd.f32 %v1632_v24, %v4972_v27  ;;  %v1760_v43 = vmax.f32 %v1436_v11, 0.0  ;;  %v1762_v44 = vmax.f32 %v1629_v12, 0.0 }
 0x37a   :  { %v1763_v36 = vmax.f32 %v1438_v19, 0.0  ;;  %v1765_v38 = vmax.f32 %v1631_v21, 0.0 }
 0x37b   :  { %v1764_v45 = vmax.f32 %v1440_v29, 0.0  ;;  %v1766_v46 = vmax.f32 %v1633_v6, 0.0  ;;  %v5174_v6 = vld [vmem:[%s5599_s9 + $0x24] ss:$8 sps:$4 sm:$0xff]  }
 0x37c   :  { %v1835_v48 = vpack.c.bf16 %v1763_v36, %v1759_v33  ;;  %v5158_v49 = vpack.c.bf16 %v1765_v38, %v1761_v59  ;;  %3878 = vmatprep.subr.bf16.mxu1 %v5174_v6 }
 0x37d   :  { %v1836_v51 = vpack.c.bf16 %v1764_v45, %v1760_v43  ;;  %v5161_v5 = vpack.c.bf16 %v1766_v46, %v1762_v44  ;;  %v1443_v52 = vpop.f32.mrb[88].mxu0  ;;  %v1636_v61 = vpop.f32.mrb[120].mxu1  ;;  %v5179_v43 = vld [vmem:[%s5599_s9 + $0x20] ss:$8 sps:$4 sm:$0xff]  }
 0x37e   :  { %v1444_v1 = vadd.f32 %v1443_v52, %v4965_v25  ;;  %v1637_v2 = vadd.f32 %v1636_v61, %v4967_v26  ;;  %v1445_v7 = vpop.f32.mrb[89].mxu0  ;;  %v1638_v9 = vpop.f32.mrb[121].mxu1  ;;  %3894 = vmatpush1.bf16.msra.mxu1 %v5179_v43 }
 0x37f   :  { %v1446_v10 = vadd.f32 %v1445_v7, %v4970_v4  ;;  %v1639_v11 = vadd.f32 %v1638_v9, %v4972_v27  ;;  %v1447_v12 = vpop.f32.mrb[90].mxu0  ;;  %v1640_v16 = vpop.f32.mrb[122].mxu1  ;;  %2405 = vmatprep.mubr.bf16.mxu0 %v1836_v51 }
 0x380   :  { %v1448_v18 = vadd.f32 %v1447_v12, %v4965_v25  ;;  %v1641_v19 = vadd.f32 %v1640_v16, %v4967_v26  ;;  %v1449_v21 = vpop.f32.mrb[91].mxu0  ;;  %v1642_v23 = vpop.f32.mrb[123].mxu1  ;;  %2406 = vmatmul.mubr.bf16.gmra.mrb[148].mxu0 %v1835_v48  ;;  %v1767_v33 = vmax.f32 %v1444_v1, 0.0  ;;  %v1769_v59 = vmax.f32 %v1637_v2, 0.0 }
 0x381   :  { %v1450_v24 = vadd.f32 %v1449_v21, %v4970_v4  ;;  %v1643_v29 = vadd.f32 %v1642_v23, %v4972_v27  ;;  %v1768_v44 = vmax.f32 %v1446_v10, 0.0  ;;  %v1770_v45 = vmax.f32 %v1639_v11, 0.0 }
 0x382   :  { %v1771_v36 = vmax.f32 %v1448_v18, 0.0  ;;  %v1773_v38 = vmax.f32 %v1641_v19, 0.0 }
 0x383   :  { %v1772_v46 = vmax.f32 %v1450_v24, 0.0  ;;  %v1774_v48 = vmax.f32 %v1643_v29, 0.0 }
 0x384   :  { %v1839_v51 = vpack.c.bf16 %v1771_v36, %v1767_v33  ;;  %v5182_v52 = vpack.c.bf16 %v1773_v38, %v1769_v59  ;;  %v4280_v38 = vld [vmem:[%s5599_s9 + $0x34] ss:$8 sps:$4 sm:$0xff]  }
 0x385   :  { %v1840_v61 = vpack.c.bf16 %v1772_v46, %v1768_v44  ;;  %v5185_v1 = vpack.c.bf16 %v1774_v48, %v1770_v45  ;;  %v1453_v2 = vpop.f32.mrb[92].mxu0  ;;  %v1646_v7 = vpop.f32.mrb[124].mxu1  ;;  %3879 = vmatprep.subr.bf16.mxu1 %v4280_v38 }
 0x386   :  { %v1454_v9 = vadd.f32 %v1453_v2, %v4965_v25  ;;  %v1647_v12 = vadd.f32 %v1646_v7, %v4967_v26  ;;  %v1455_v10 = vpop.f32.mrb[93].mxu0  ;;  %v1648_v11 = vpop.f32.mrb[125].mxu1 }
 0x387   :  { %v1456_v16 = vadd.f32 %v1455_v10, %v4970_v4  ;;  %v1649_v18 = vadd.f32 %v1648_v11, %v4972_v27  ;;  %v1457_v19 = vpop.f32.mrb[94].mxu0  ;;  %v1650_v21 = vpop.f32.mrb[126].mxu1  ;;  %2415 = vmatprep.mubr.bf16.mxu0 %v1840_v61  ;;  %v4286_v11 = vld [vmem:[%s5599_s9 + $0x54] ss:$8 sps:$4 sm:$0xff]  }
 0x388   :  { %v1458_v23 = vadd.f32 %v1457_v19, %v4965_v25  ;;  %v1651_v24 = vadd.f32 %v1650_v21, %v4967_v26  ;;  %v1459_v29 = vpop.f32.mrb[95].mxu0  ;;  %v1652_v33 = vpop.f32.mrb[127].mxu1  ;;  %2416 = vmatmul.mubr.bf16.gmra.mrb[152].mxu0 %v1839_v51  ;;  %v1775_v44 = vmax.f32 %v1454_v9, 0.0  ;;  %v1777_v45 = vmax.f32 %v1647_v12, 0.0  ;;  %v4278_v25 = vld [vmem:[%s5599_s9 + $0x30] ss:$8 sps:$4 sm:$0xff]  }
 0x389   :  { %v1460_v59 = vadd.f32 %v1459_v29, %v4970_v4  ;;  %v1653_v36 = vadd.f32 %v1652_v33, %v4972_v27  ;;  %v1776_v26 = vmax.f32 %v1456_v16, 0.0  ;;  %v1778_v61 = vmax.f32 %v1649_v18, 0.0  ;;  %3895 = vmatpush1.bf16.msra.mxu1 %v4278_v25  ;;  %v4283_v9 = vld [vmem:[%s5599_s9 + $0x44] ss:$8 sps:$4 sm:$0xff]   ;;  %v4281_v12 = vld [vmem:[%s5599_s9 + $0x40] ss:$8 sps:$4 sm:$0xff]  }
 0x38a   :  { %v1779_v46 = vmax.f32 %v1458_v23, 0.0  ;;  %v1781_v48 = vmax.f32 %v1651_v24, 0.0  ;;  %3880 = vmatprep.subr.bf16.mxu1 %v4283_v9  ;;  %v4284_v16 = vld [vmem:[%s5599_s9 + $0x50] ss:$8 sps:$4 sm:$0xff]   ;;  %v4289_v18 = vld [vmem:[%s5599_s9 + $0x64] ss:$8 sps:$4 sm:$0xff]  }
 0x38b   :  { %v1780_v2 = vmax.f32 %v1460_v59, 0.0  ;;  %v1782_v51 = vmax.f32 %v1653_v36, 0.0  ;;  %v4292_v19 = vld [vmem:[%s5599_s9 + $0x74] ss:$8 sps:$4 sm:$0xff]   ;;  %v4311_v23 = vld [vmem:[%s5599_s9 + $0xe0] ss:$8 sps:$4 sm:$0xff]  }
 0x38c   :  { %v1843_v4 = vpack.c.bf16 %v1779_v46, %v1775_v44  ;;  %v5201_v7 = vpack.c.bf16 %v1781_v48, %v1777_v45  ;;  %v4310_v21 = vld [vmem:[%s5599_s9 + $0xd4] ss:$8 sps:$4 sm:$0xff]  }
 0x38d   :  { %v1844_v27 = vpack.c.bf16 %v1780_v2, %v1776_v26  ;;  %v5203_v10 = vpack.c.bf16 %v1782_v51, %v1778_v61  ;;  %3896 = vmatpush1.bf16.msra.mxu1 %v4281_v12 }
 0x38e   :  { %3881 = vmatprep.subr.bf16.mxu1 %v4286_v11 }
 0x38f   :  { %2425 = vmatprep.mubr.bf16.mxu0 %v1844_v27 }
 0x390   :  { %2426 = vmatmul.mubr.bf16.gmra.mrb[156].mxu0 %v1843_v4 }
 0x391   :  { %2468 = vmatprep.mubr.bf16.mxu0 %v4984_v55  ;;  %3897 = vmatpush1.bf16.msra.mxu1 %v4284_v16  ;;  %v4287_v55 = vld [vmem:[%s5599_s9 + $0x60] ss:$8 sps:$4 sm:$0xff]  }
 0x392   :  { %3882 = vmatprep.subr.bf16.mxu1 %v4289_v18 }
 0x395   :  { %3898 = vmatpush1.bf16.msra.mxu1 %v4287_v55 }
 0x396   :  { %3883 = vmatprep.subr.bf16.mxu1 %v4292_v19 }
 0x398   :  { %2469 = vmatmul.mubr.bf16.vlgmr.msra.gmra.mrb[96].mxu0 %v4982_v53  ;;  %v4290_v53 = vld [vmem:[%s5599_s9 + $0x70] ss:$8 sps:$4 sm:$0xff]  }
 0x399   :  { %2478 = vmatprep.mubr.bf16.mxu0 %v4996_v31  ;;  %2930 = vmatpush1.bf16.msra.mxu0 %v5132_v47  ;;  %v4295_v31 = vld [vmem:[%s5599_s9 + $0x84] ss:$8 sps:$4 sm:$0xff]   ;;  %v4293_v47 = vld [vmem:[%s5599_s9 + $0x80] ss:$8 sps:$4 sm:$0xff]  }
 0x39a   :  { %2931 = vmatprep.subr.bf16.mxu0 %v5150_v32  ;;  %3899 = vmatpush1.bf16.msra.mxu1 %v4290_v53  ;;  %v4298_v32 = vld [vmem:[%s5599_s9 + $0x94] ss:$8 sps:$4 sm:$0xff]  }
 0x39b   :  { %3884 = vmatprep.subr.bf16.mxu1 %v4295_v31 }
 0x39d   :  { %2932 = vmatpush1.bf16.msra.mxu0 %v5155_v41  ;;  %v4299_v41 = vld [vmem:[%s5599_s9 + $0xa0] ss:$8 sps:$4 sm:$0xff]  }
 0x39e   :  { %2933 = vmatprep.subr.bf16.mxu0 %v5174_v6  ;;  %3900 = vmatpush1.bf16.msra.mxu1 %v4293_v47  ;;  %v4304_v6 = vld [vmem:[%s5599_s9 + $0xb4] ss:$8 sps:$4 sm:$0xff]  }
 0x39f   :  { %3885 = vmatprep.subr.bf16.mxu1 %v4298_v32 }
 0x3a0   :  { %2479 = vmatmul.mubr.bf16.gmra.mrb[100].mxu0 %v4994_v63  ;;  %v4296_v63 = vld [vmem:[%s5599_s9 + $0x90] ss:$8 sps:$4 sm:$0xff]  }
 0x3a1   :  { %2488 = vmatprep.mubr.bf16.mxu0 %v5008_v0  ;;  %2934 = vmatpush1.bf16.msra.mxu0 %v5179_v43  ;;  %v4301_v0 = vld [vmem:[%s5599_s9 + $0xa4] ss:$8 sps:$4 sm:$0xff]   ;;  %v4305_v43 = vld [vmem:[%s5599_s9 + $0xc0] ss:$8 sps:$4 sm:$0xff]  }
 0x3a2   :  { %2935 = vmatprep.subr.bf16.mxu0 %v4280_v38  ;;  %3901 = vmatpush1.bf16.msra.mxu1 %v4296_v63 }
 0x3a3   :  { %3886 = vmatprep.subr.bf16.mxu1 %v4301_v0 }
 0x3a5   :  { %2936 = vmatpush1.bf16.msra.mxu0 %v4278_v25 }
 0x3a6   :  { %2937 = vmatprep.subr.bf16.mxu0 %v4283_v9  ;;  %3902 = vmatpush1.bf16.msra.mxu1 %v4299_v41 }
 0x3a7   :  { %3887 = vmatprep.subr.bf16.mxu1 %v4304_v6 }
 0x3a8   :  { %2489 = vmatmul.mubr.bf16.gmra.mrb[104].mxu0 %v5006_v58  ;;  %v4302_v58 = vld [vmem:[%s5599_s9 + $0xb0] ss:$8 sps:$4 sm:$0xff]  }
 0x3a9   :  { %2498 = vmatprep.mubr.bf16.mxu0 %v5020_v39  ;;  %2938 = vmatpush1.bf16.msra.mxu0 %v4281_v12  ;;  %v4307_v39 = vld [vmem:[%s5599_s9 + $0xc4] ss:$8 sps:$4 sm:$0xff]  }
 0x3aa   :  { %2939 = vmatprep.subr.bf16.mxu0 %v4286_v11  ;;  %3903 = vmatpush1.bf16.msra.mxu1 %v4302_v58 }
 0x3ab   :  { %3888 = vmatprep.subr.bf16.mxu1 %v4307_v39 }
 0x3ad   :  { %2940 = vmatpush1.bf16.msra.mxu0 %v4284_v16 }
 0x3ae   :  { %2941 = vmatprep.subr.bf16.mxu0 %v4289_v18  ;;  %3904 = vmatpush1.bf16.msra.mxu1 %v4305_v43 }
 0x3af   :  { %3889 = vmatprep.subr.bf16.mxu1 %v4310_v21 }
 0x3b0   :  { %2499 = vmatmul.mubr.bf16.gmra.mrb[108].mxu0 %v5018_v37  ;;  %v4308_v37 = vld [vmem:[%s5599_s9 + $0xd0] ss:$8 sps:$4 sm:$0xff]  }
 0x3b1   :  { %2508 = vmatprep.mubr.bf16.mxu0 %v5032_v15  ;;  %2942 = vmatpush1.bf16.msra.mxu0 %v4287_v55  ;;  %v4313_v15 = vld [vmem:[%s5599_s9 + $0xe4] ss:$8 sps:$4 sm:$0xff]  }
 0x3b2   :  { %2943 = vmatprep.subr.bf16.mxu0 %v4292_v19  ;;  %3905 = vmatpush1.bf16.msra.mxu1 %v4308_v37 }
 0x3b3   :  { %3890 = vmatprep.subr.bf16.mxu1 %v4313_v15 }
 0x3b5   :  { %2944 = vmatpush1.bf16.msra.mxu0 %v4290_v53 }
 0x3b6   :  { %2945 = vmatprep.subr.bf16.mxu0 %v4295_v31  ;;  %3906 = vmatpush1.bf16.msra.mxu1 %v4311_v23 }
 0x3b8   :  { %2509 = vmatmul.mubr.bf16.gmra.mrb[112].mxu0 %v5030_v13  ;;  %v4316_v13 = vld [vmem:[%s5599_s9 + $0xf4] ss:$8 sps:$4 sm:$0xff]  }
 0x3b9   :  { %2518 = vmatprep.mubr.bf16.mxu0 %v5044_v54  ;;  %2946 = vmatpush1.bf16.msra.mxu0 %v4293_v47  ;;  %v1911_v54 = vld [vmem:[#allocation9] sm:$0x3] }
 0x3ba   :  { %2947 = vmatprep.subr.bf16.mxu0 %v4298_v32  ;;  %3891 = vmatprep.subr.bf16.mxu1 %v4316_v13 }
 0x3bd   :  { %2948 = vmatpush1.bf16.msra.mxu0 %v4296_v63 }
 0x3be   :  { %2949 = vmatprep.subr.bf16.mxu0 %v4301_v0 }
 0x3c0   :  { %2519 = vmatmul.mubr.bf16.gmra.mrb[116].mxu0 %v5042_v30  ;;  %v4314_v30 = vld [vmem:[%s5599_s9 + $0xf0] ss:$8 sps:$4 sm:$0xff]  }
 0x3c1   :  { %2528 = vmatprep.mubr.bf16.mxu0 %v5056_v35  ;;  %2950 = vmatpush1.bf16.msra.mxu0 %v4299_v41  ;;  %v5318_v35 = vrot.slane %v1911_v54, %v4890_v62 }
 0x3c2   :  { %2951 = vmatprep.subr.bf16.mxu0 %v4304_v6  ;;  %3907 = vmatpush1.bf16.msra.mxu1 %v4314_v30 }
 0x3c5   :  { %2952 = vmatpush1.bf16.msra.mxu0 %v4302_v58 }
 0x3c6   :  { %2953 = vmatprep.subr.bf16.mxu0 %v4307_v39 }
 0x3c8   :  { %2529 = vmatmul.mubr.bf16.gmra.mrb[120].mxu0 %v5054_v34  ;;  %v5315_v34 = vrot.slane %v1911_v54, %v4884_v60 }
 0x3c9   :  { %2538 = vmatprep.mubr.bf16.mxu0 %v5068_v17  ;;  %2954 = vmatpush1.bf16.msra.mxu0 %v4305_v43 }
 0x3ca   :  { %2955 = vmatprep.subr.bf16.mxu0 %v4310_v21 }
 0x3cd   :  { %2956 = vmatpush1.bf16.msra.mxu0 %v4308_v37 }
 0x3ce   :  { %2957 = vmatprep.subr.bf16.mxu0 %v4313_v15 }
 0x3d0   :  { %2539 = vmatmul.mubr.bf16.gmra.mrb[124].mxu0 %v5066_v14 }
 0x3d1   :  { %2548 = vmatprep.mubr.bf16.mxu0 %v5080_v57  ;;  %2958 = vmatpush1.bf16.msra.mxu0 %v4311_v23 }
 0x3d2   :  { %2959 = vmatprep.subr.bf16.mxu0 %v4316_v13 }
 0x3d5   :  { %2960 = vmatpush1.bf16.msra.mxu0 %v4314_v30 }
 0x3d8   :  { %2549 = vmatmul.mubr.bf16.gmra.mrb[128].mxu0 %v5078_v50 }
 0x3d9   :  { %2558 = vmatprep.mubr.bf16.mxu0 %v5092_v42 }
 0x3e0   :  { %2559 = vmatmul.mubr.bf16.gmra.mrb[132].mxu0 %v5090_v40 }
 0x3e1   :  { %2568 = vmatprep.mubr.bf16.mxu0 %v5104_v22  ;;  %v4317_v22 = vld [vmem:[#allocation10 + $0x40] sm:$0xff]  }
 0x3e2   :  { %3724 = vmatprep.subr.bf16.mxu1 %v4317_v22 }
 0x3e8   :  { %2569 = vmatmul.mubr.bf16.gmra.mrb[136].mxu0 %v5102_v20 }
 0x3e9   :  { %2578 = vmatprep.mubr.bf16.mxu0 %v5116_v8 }
 0x3f0   :  { %2579 = vmatmul.mubr.bf16.gmra.mrb[140].mxu0 %v5114_v3 }
 0x3f1   :  { %2588 = vmatprep.mubr.bf16.mxu0 %v5137_v56 }
 0x3f8   :  { %2589 = vmatmul.mubr.bf16.gmra.mrb[144].mxu0 %v5134_v28 }
 0x3f9   :  { %2598 = vmatprep.mubr.bf16.mxu0 %v5161_v5 }
 0x400   :  { %2599 = vmatmul.mubr.bf16.gmra.mrb[148].mxu0 %v5158_v49 }
 0x401   :  { %2608 = vmatprep.mubr.bf16.mxu0 %v5185_v1 }
 0x408   :  { %2609 = vmatmul.mubr.bf16.gmra.mrb[152].mxu0 %v5182_v52 }
 0x409   :  { %2618 = vmatprep.mubr.bf16.mxu0 %v5203_v10 }
 0x410   :  { %2619 = vmatmul.mubr.bf16.gmra.mrb[156].mxu0 %v5201_v7 }
 0x46b   :  { %v2470_v14 = vpop.f32.mrb[96].mxu0 }
 0x46c   :  { %v3908_v17 = vadd.f32 %v2470_v14, %v5315_v34  ;;  %v2472_v50 = vpop.f32.mrb[97].mxu0 }
 0x46d   :  { %v3909_v57 = vadd.f32 %v2472_v50, %v5318_v35  ;;  %v2474_v40 = vpop.f32.mrb[98].mxu0 }
 0x46e   :  { %v3910_v42 = vadd.f32 %v2474_v40, %v5315_v34  ;;  %v2476_v20 = vpop.f32.mrb[99].mxu0  ;;  %v2629_v8 = vmax.f32 %v3908_v17, 0.0 }
 0x46f   :  { %v3911_v3 = vadd.f32 %v2476_v20, %v5318_v35  ;;  %v2630_v56 = vmax.f32 %v3909_v57, 0.0 }
 0x470   :  { %v2631_v28 = vmax.f32 %v3910_v42, 0.0 }
 0x471   :  { %v2632_v49 = vmax.f32 %v3911_v3, 0.0 }
 0x472   :  { %v2693_v5 = vpack.c.bf16 %v2631_v28, %v2629_v8 }
 0x473   :  { %v2694_v52 = vpack.c.bf16 %v2632_v49, %v2630_v56  ;;  %v2480_v1 = vpop.f32.mrb[100].mxu0 }
 0x474   :  { %v3912_v24 = vadd.f32 %v2480_v1, %v5315_v34  ;;  %v2482_v29 = vpop.f32.mrb[101].mxu0 }
 0x475   :  { %v3913_v33 = vadd.f32 %v2482_v29, %v5318_v35  ;;  %v2484_v59 = vpop.f32.mrb[102].mxu0  ;;  %2961 = vmatprep.mubr.bf16.mxu0 %v2694_v52 }
 0x476   :  { %v3914_v36 = vadd.f32 %v2484_v59, %v5315_v34  ;;  %v2486_v38 = vpop.f32.mrb[103].mxu0  ;;  %2962 = vmatmul.mubr.bf16.vlgmr.msra.gmra.mrb[160].mxu0 %v2693_v5  ;;  %v2633_v45 = vmax.f32 %v3912_v24, 0.0 }
 0x477   :  { %v3915_v44 = vadd.f32 %v2486_v38, %v5318_v35  ;;  %v2634_v48 = vmax.f32 %v3913_v33, 0.0 }
 0x478   :  { %v2635_v46 = vmax.f32 %v3914_v36, 0.0 }
 0x479   :  { %v2636_v25 = vmax.f32 %v3915_v44, 0.0 }
 0x47a   :  { %v2695_v26 = vpack.c.bf16 %v2635_v46, %v2633_v45 }
 0x47b   :  { %v2696_v61 = vpack.c.bf16 %v2636_v25, %v2634_v48  ;;  %v2490_v2 = vpop.f32.mrb[104].mxu0  ;;  %v4318_v25 = vld [vmem:[#allocation10] sm:$0xff]  }
 0x47c   :  { %v3916_v51 = vadd.f32 %v2490_v2, %v5315_v34  ;;  %v2492_v4 = vpop.f32.mrb[105].mxu0  ;;  %v4319_v2 = vld [vmem:[#allocation10 + $0x48] sm:$0xff]  }
 0x47d   :  { %v3917_v7 = vadd.f32 %v2492_v4, %v5318_v35  ;;  %v2494_v27 = vpop.f32.mrb[106].mxu0  ;;  %2971 = vmatprep.mubr.bf16.mxu0 %v2696_v61 }
 0x47e   :  { %v3918_v10 = vadd.f32 %v2494_v27, %v5315_v34  ;;  %v2496_v9 = vpop.f32.mrb[107].mxu0  ;;  %2972 = vmatmul.mubr.bf16.gmra.mrb[164].mxu0 %v2695_v26  ;;  %v2637_v11 = vmax.f32 %v3916_v51, 0.0 }
 0x47f   :  { %v3919_v12 = vadd.f32 %v2496_v9, %v5318_v35  ;;  %v2638_v18 = vmax.f32 %v3917_v7, 0.0  ;;  %v4320_v9 = vld [vmem:[#allocation10 + $0x8] sm:$0xff]  }
 0x480   :  { %v2639_v16 = vmax.f32 %v3918_v10, 0.0 }
 0x481   :  { %v2640_v55 = vmax.f32 %v3919_v12, 0.0 }
 0x482   :  { %v2697_v19 = vpack.c.bf16 %v2639_v16, %v2637_v11  ;;  %v4321_v16 = vld [vmem:[#allocation10 + $0x50] sm:$0xff]  }
 0x483   :  { %v2698_v53 = vpack.c.bf16 %v2640_v55, %v2638_v18  ;;  %v2500_v31 = vpop.f32.mrb[108].mxu0 }
 0x484   :  { %v3920_v47 = vadd.f32 %v2500_v31, %v5315_v34  ;;  %v2502_v32 = vpop.f32.mrb[109].mxu0 }
 0x485   :  { %v3921_v63 = vadd.f32 %v2502_v32, %v5318_v35  ;;  %v2504_v0 = vpop.f32.mrb[110].mxu0  ;;  %2981 = vmatprep.mubr.bf16.mxu0 %v2698_v53 }
 0x486   :  { %v3922_v41 = vadd.f32 %v2504_v0, %v5315_v34  ;;  %v2506_v6 = vpop.f32.mrb[111].mxu0  ;;  %2982 = vmatmul.mubr.bf16.gmra.mrb[168].mxu0 %v2697_v19  ;;  %v2641_v39 = vmax.f32 %v3920_v47, 0.0  ;;  %v4322_v47 = vld [vmem:[#allocation10 + $0x10] sm:$0xff]   ;;  %v4323_v0 = vld [vmem:[#allocation10 + $0x58] sm:$0xff]  }
 0x487   :  { %v3923_v58 = vadd.f32 %v2506_v6, %v5318_v35  ;;  %v2642_v21 = vmax.f32 %v3921_v63, 0.0 }
 0x488   :  { %v2643_v43 = vmax.f32 %v3922_v41, 0.0 }
 0x489   :  { %v2644_v37 = vmax.f32 %v3923_v58, 0.0 }
 0x48a   :  { %v2699_v15 = vpack.c.bf16 %v2643_v43, %v2641_v39 }
 0x48b   :  { %v2700_v23 = vpack.c.bf16 %v2644_v37, %v2642_v21  ;;  %v2510_v13 = vpop.f32.mrb[112].mxu0  ;;  %v4324_v21 = vld [vmem:[#allocation10 + $0x18] sm:$0xff]  }
 0x48c   :  { %v3924_v30 = vadd.f32 %v2510_v13, %v5315_v34  ;;  %v2512_v54 = vpop.f32.mrb[113].mxu0 }
 0x48d   :  { %v3925_v14 = vadd.f32 %v2512_v54, %v5318_v35  ;;  %v2514_v17 = vpop.f32.mrb[114].mxu0  ;;  %2991 = vmatprep.mubr.bf16.mxu0 %v2700_v23  ;;  %v4325_v23 = vld [vmem:[#allocation10 + $0x60] sm:$0xff]  }
 0x48e   :  { %v3926_v50 = vadd.f32 %v2514_v17, %v5315_v34  ;;  %v2516_v57 = vpop.f32.mrb[115].mxu0  ;;  %2992 = vmatmul.mubr.bf16.gmra.mrb[172].mxu0 %v2699_v15  ;;  %v2645_v42 = vmax.f32 %v3924_v30, 0.0 }
 0x48f   :  { %v3927_v40 = vadd.f32 %v2516_v57, %v5318_v35  ;;  %v2646_v22 = vmax.f32 %v3925_v14, 0.0 }
 0x490   :  { %v2647_v20 = vmax.f32 %v3926_v50, 0.0  ;;  %v4326_v50 = vld [vmem:[#allocation10 + $0x20] sm:$0xff]  }
 0x491   :  { %v2648_v3 = vmax.f32 %v3927_v40, 0.0 }
 0x492   :  { %v2701_v8 = vpack.c.bf16 %v2647_v20, %v2645_v42  ;;  %v4327_v42 = vld [vmem:[#allocation10 + $0x68] sm:$0xff]  }
 0x493   :  { %v2702_v28 = vpack.c.bf16 %v2648_v3, %v2646_v22  ;;  %v2520_v56 = vpop.f32.mrb[116].mxu0 }
 0x494   :  { %v3928_v49 = vadd.f32 %v2520_v56, %v5315_v34  ;;  %v2522_v5 = vpop.f32.mrb[117].mxu0  ;;  %v4328_v56 = vld [vmem:[#allocation10 + $0x28] sm:$0xff]  }
 0x495   :  { %v3929_v52 = vadd.f32 %v2522_v5, %v5318_v35  ;;  %v2524_v1 = vpop.f32.mrb[118].mxu0  ;;  %3001 = vmatprep.mubr.bf16.mxu0 %v2702_v28 }
 0x496   :  { %v3930_v24 = vadd.f32 %v2524_v1, %v5315_v34  ;;  %v2526_v29 = vpop.f32.mrb[119].mxu0  ;;  %3002 = vmatmul.mubr.bf16.gmra.mrb[176].mxu0 %v2701_v8  ;;  %v2649_v59 = vmax.f32 %v3928_v49, 0.0 }
 0x497   :  { %v3931_v33 = vadd.f32 %v2526_v29, %v5318_v35  ;;  %v2650_v38 = vmax.f32 %v3929_v52, 0.0  ;;  %v4329_v52 = vld [vmem:[#allocation10 + $0x70] sm:$0xff]  }
 0x498   :  { %v2651_v36 = vmax.f32 %v3930_v24, 0.0 }
 0x499   :  { %v2652_v44 = vmax.f32 %v3931_v33, 0.0 }
 0x49a   :  { %v2703_v45 = vpack.c.bf16 %v2651_v36, %v2649_v59  ;;  %v4330_v36 = vld [vmem:[#allocation10 + $0x30] sm:$0xff]  }
 0x49b   :  { %v2704_v46 = vpack.c.bf16 %v2652_v44, %v2650_v38  ;;  %v2530_v48 = vpop.f32.mrb[120].mxu0 }
 0x49c   :  { %v3932_v26 = vadd.f32 %v2530_v48, %v5315_v34  ;;  %v2532_v61 = vpop.f32.mrb[121].mxu0 }
 0x49d   :  { %v3933_v51 = vadd.f32 %v2532_v61, %v5318_v35  ;;  %v2534_v4 = vpop.f32.mrb[122].mxu0  ;;  %3011 = vmatprep.mubr.bf16.mxu1 %v2704_v46 }
 0x49e   :  { %v3934_v7 = vadd.f32 %v2534_v4, %v5315_v34  ;;  %v2536_v27 = vpop.f32.mrb[123].mxu0  ;;  %3012 = vmatmul.mubr.bf16.vlgmr.msra.gmra.mrb[128].mxu1 %v2703_v45  ;;  %v2653_v12 = vmax.f32 %v3932_v26, 0.0  ;;  %v4331_v45 = vld [vmem:[#allocation10 + $0x78] sm:$0xff]  }
 0x49f   :  { %v3935_v10 = vadd.f32 %v2536_v27, %v5318_v35  ;;  %3725 = vmatpush3.bf16.msra.mxu1 %v4318_v25  ;;  %v2654_v18 = vmax.f32 %v3933_v51, 0.0 }
 0x4a0   :  { %v2655_v11 = vmax.f32 %v3934_v7, 0.0  ;;  %3726 = vmatprep.subr.bf16.mxu1 %v4319_v2  ;;  %v4332_v2 = vld [vmem:[#allocation10 + $0x38] sm:$0xff]  }
 0x4a1   :  { %v2656_v55 = vmax.f32 %v3935_v10, 0.0 }
 0x4a2   :  { %v2705_v19 = vpack.c.bf16 %v2655_v11, %v2653_v12 }
 0x4a3   :  { %v2706_v53 = vpack.c.bf16 %v2656_v55, %v2654_v18  ;;  %v2540_v31 = vpop.f32.mrb[124].mxu0  ;;  %3727 = vmatpush3.bf16.msra.mxu1 %v4320_v9 }
 0x4a4   :  { %v3936_v32 = vadd.f32 %v2540_v31, %v5315_v34  ;;  %v2542_v63 = vpop.f32.mrb[125].mxu0  ;;  %3728 = vmatprep.subr.bf16.mxu1 %v4321_v16 }
 0x4a5   :  { %v3937_v41 = vadd.f32 %v2542_v63, %v5318_v35  ;;  %v2544_v6 = vpop.f32.mrb[126].mxu0  ;;  %3021 = vmatprep.mubr.bf16.mxu1 %v2706_v53 }
 0x4a6   :  { %v3938_v58 = vadd.f32 %v2544_v6, %v5315_v34  ;;  %v2546_v39 = vpop.f32.mrb[127].mxu0  ;;  %3022 = vmatmul.mubr.bf16.gmra.mrb[132].mxu1 %v2705_v19  ;;  %v2657_v37 = vmax.f32 %v3936_v32, 0.0 }
 0x4a7   :  { %v3939_v43 = vadd.f32 %v2546_v39, %v5318_v35  ;;  %3729 = vmatpush3.bf16.msra.mxu1 %v4322_v47  ;;  %v2658_v13 = vmax.f32 %v3937_v41, 0.0 }
 0x4a8   :  { %v2659_v15 = vmax.f32 %v3938_v58, 0.0  ;;  %3730 = vmatprep.subr.bf16.mxu1 %v4323_v0 }
 0x4a9   :  { %v2660_v30 = vmax.f32 %v3939_v43, 0.0 }
 0x4aa   :  { %v2707_v54 = vpack.c.bf16 %v2659_v15, %v2657_v37 }
 0x4ab   :  { %v2708_v14 = vpack.c.bf16 %v2660_v30, %v2658_v13  ;;  %v2550_v17 = vpop.f32.mrb[128].mxu0  ;;  %3731 = vmatpush3.bf16.msra.mxu1 %v4324_v21 }
 0x4ac   :  { %v3940_v57 = vadd.f32 %v2550_v17, %v5315_v34  ;;  %v2552_v40 = vpop.f32.mrb[129].mxu0  ;;  %3732 = vmatprep.subr.bf16.mxu1 %v4325_v23 }
 0x4ad   :  { %v3941_v20 = vadd.f32 %v2552_v40, %v5318_v35  ;;  %v2554_v22 = vpop.f32.mrb[130].mxu0  ;;  %3031 = vmatprep.mubr.bf16.mxu1 %v2708_v14 }
 0x4ae   :  { %v3942_v3 = vadd.f32 %v2554_v22, %v5315_v34  ;;  %v2556_v8 = vpop.f32.mrb[131].mxu0  ;;  %3032 = vmatmul.mubr.bf16.gmra.mrb[136].mxu1 %v2707_v54  ;;  %v2661_v49 = vmax.f32 %v3940_v57, 0.0 }
 0x4af   :  { %v3943_v28 = vadd.f32 %v2556_v8, %v5318_v35  ;;  %3733 = vmatpush3.bf16.msra.mxu1 %v4326_v50  ;;  %v2662_v1 = vmax.f32 %v3941_v20, 0.0 }
 0x4b0   :  { %v2663_v5 = vmax.f32 %v3942_v3, 0.0  ;;  %3734 = vmatprep.subr.bf16.mxu1 %v4327_v42 }
 0x4b1   :  { %v2664_v24 = vmax.f32 %v3943_v28, 0.0 }
 0x4b2   :  { %v2709_v29 = vpack.c.bf16 %v2663_v5, %v2661_v49 }
 0x4b3   :  { %v2710_v33 = vpack.c.bf16 %v2664_v24, %v2662_v1  ;;  %v2560_v59 = vpop.f32.mrb[132].mxu0  ;;  %3735 = vmatpush3.bf16.msra.mxu1 %v4328_v56 }
 0x4b4   :  { %v3944_v38 = vadd.f32 %v2560_v59, %v5315_v34  ;;  %v2562_v44 = vpop.f32.mrb[133].mxu0  ;;  %3736 = vmatprep.subr.bf16.mxu1 %v4329_v52 }
 0x4b5   :  { %v3945_v46 = vadd.f32 %v2562_v44, %v5318_v35  ;;  %v2564_v48 = vpop.f32.mrb[134].mxu0  ;;  %3041 = vmatprep.mubr.bf16.mxu1 %v2710_v33 }
 0x4b6   :  { %v3946_v25 = vadd.f32 %v2564_v48, %v5315_v34  ;;  %v2566_v26 = vpop.f32.mrb[135].mxu0  ;;  %3042 = vmatmul.mubr.bf16.gmra.mrb[140].mxu1 %v2709_v29  ;;  %v2665_v51 = vmax.f32 %v3944_v38, 0.0 }
 0x4b7   :  { %v3947_v61 = vadd.f32 %v2566_v26, %v5318_v35  ;;  %3737 = vmatpush3.bf16.msra.mxu1 %v4330_v36  ;;  %v2666_v7 = vmax.f32 %v3945_v46, 0.0 }
 0x4b8   :  { %v2667_v4 = vmax.f32 %v3946_v25, 0.0  ;;  %3738 = vmatprep.subr.bf16.mxu1 %v4331_v45 }
 0x4b9   :  { %v2668_v27 = vmax.f32 %v3947_v61, 0.0 }
 0x4ba   :  { %v2711_v10 = vpack.c.bf16 %v2667_v4, %v2665_v51 }
 0x4bb   :  { %v2712_v9 = vpack.c.bf16 %v2668_v27, %v2666_v7  ;;  %v2570_v12 = vpop.f32.mrb[136].mxu0  ;;  %3739 = vmatpush3.bf16.msra.mxu1 %v4332_v2 }
 0x4bc   :  { %v3948_v11 = vadd.f32 %v2570_v12, %v5315_v34  ;;  %v2572_v16 = vpop.f32.mrb[137].mxu0 }
 0x4bd   :  { %v3949_v18 = vadd.f32 %v2572_v16, %v5318_v35  ;;  %v2574_v55 = vpop.f32.mrb[138].mxu0  ;;  %3051 = vmatprep.mubr.bf16.mxu1 %v2712_v9 }
 0x4be   :  { %v3950_v19 = vadd.f32 %v2574_v55, %v5315_v34  ;;  %v2576_v53 = vpop.f32.mrb[139].mxu0  ;;  %3052 = vmatmul.mubr.bf16.gmra.mrb[144].mxu1 %v2711_v10  ;;  %v2669_v47 = vmax.f32 %v3948_v11, 0.0 }
 0x4bf   :  { %v3951_v31 = vadd.f32 %v2576_v53, %v5318_v35  ;;  %v2670_v63 = vmax.f32 %v3949_v18, 0.0 }
 0x4c0   :  { %v2671_v32 = vmax.f32 %v3950_v19, 0.0 }
 0x4c1   :  { %v2672_v0 = vmax.f32 %v3951_v31, 0.0 }
 0x4c2   :  { %v2713_v41 = vpack.c.bf16 %v2671_v32, %v2669_v47 }
 0x4c3   :  { %v2714_v6 = vpack.c.bf16 %v2672_v0, %v2670_v63  ;;  %v2580_v58 = vpop.f32.mrb[140].mxu0 }
 0x4c4   :  { %v3952_v39 = vadd.f32 %v2580_v58, %v5315_v34  ;;  %v2582_v43 = vpop.f32.mrb[141].mxu0 }
 0x4c5   :  { %v3953_v21 = vadd.f32 %v2582_v43, %v5318_v35  ;;  %v2584_v37 = vpop.f32.mrb[142].mxu0  ;;  %3061 = vmatprep.mubr.bf16.mxu1 %v2714_v6 }
 0x4c6   :  { %v3954_v15 = vadd.f32 %v2584_v37, %v5315_v34  ;;  %v2586_v23 = vpop.f32.mrb[143].mxu0  ;;  %3062 = vmatmul.mubr.bf16.gmra.mrb[148].mxu1 %v2713_v41  ;;  %v2673_v30 = vmax.f32 %v3952_v39, 0.0 }
 0x4c7   :  { %v3955_v13 = vadd.f32 %v2586_v23, %v5318_v35  ;;  %v2674_v14 = vmax.f32 %v3953_v21, 0.0 }
 0x4c8   :  { %v2675_v54 = vmax.f32 %v3954_v15, 0.0 }
 0x4c9   :  { %v2676_v17 = vmax.f32 %v3955_v13, 0.0 }
 0x4ca   :  { %v2715_v50 = vpack.c.bf16 %v2675_v54, %v2673_v30 }
 0x4cb   :  { %v2716_v57 = vpack.c.bf16 %v2676_v17, %v2674_v14  ;;  %v2590_v40 = vpop.f32.mrb[144].mxu0  ;;  %v2757_v14 = vld [vmem:[%s5600_s10] sm:$0x3] }
 0x4cc   :  { %v3956_v42 = vadd.f32 %v2590_v40, %v5315_v34  ;;  %v2592_v20 = vpop.f32.mrb[145].mxu0  ;;  %v5388_v17 = vrot.slane %v2757_v14, %v4884_v60 }
 0x4cd   :  { %v3957_v22 = vadd.f32 %v2592_v20, %v5318_v35  ;;  %v2594_v3 = vpop.f32.mrb[146].mxu0  ;;  %3071 = vmatprep.mubr.bf16.mxu1 %v2716_v57 }
 0x4ce   :  { %v3958_v8 = vadd.f32 %v2594_v3, %v5315_v34  ;;  %v2596_v28 = vpop.f32.mrb[147].mxu0  ;;  %3072 = vmatmul.mubr.bf16.gmra.mrb[152].mxu1 %v2715_v50  ;;  %v2677_v49 = vmax.f32 %v3956_v42, 0.0  ;;  %v5391_v50 = vrot.slane %v2757_v14, %v4890_v62 }
 0x4cf   :  { %v3959_v56 = vadd.f32 %v2596_v28, %v5318_v35  ;;  %v2678_v52 = vmax.f32 %v3957_v22, 0.0 }
 0x4d0   :  { %v2679_v5 = vmax.f32 %v3958_v8, 0.0 }
 0x4d1   :  { %v2680_v1 = vmax.f32 %v3959_v56, 0.0 }
 0x4d2   :  { %v2717_v24 = vpack.c.bf16 %v2679_v5, %v2677_v49 }
 0x4d3   :  { %v2718_v29 = vpack.c.bf16 %v2680_v1, %v2678_v52  ;;  %v2600_v33 = vpop.f32.mrb[148].mxu0 }
 0x4d4   :  { %v3960_v59 = vadd.f32 %v2600_v33, %v5315_v34  ;;  %v2602_v36 = vpop.f32.mrb[149].mxu0 }
 0x4d5   :  { %v3961_v38 = vadd.f32 %v2602_v36, %v5318_v35  ;;  %v2604_v44 = vpop.f32.mrb[150].mxu0  ;;  %3081 = vmatprep.mubr.bf16.mxu1 %v2718_v29 }
 0x4d6   :  { %v3962_v45 = vadd.f32 %v2604_v44, %v5315_v34  ;;  %v2606_v46 = vpop.f32.mrb[151].mxu0  ;;  %3082 = vmatmul.mubr.bf16.gmra.mrb[156].mxu1 %v2717_v24  ;;  %v2681_v25 = vmax.f32 %v3960_v59, 0.0 }
 0x4d7   :  { %v3963_v48 = vadd.f32 %v2606_v46, %v5318_v35  ;;  %v2682_v61 = vmax.f32 %v3961_v38, 0.0 }
 0x4d8   :  { %v2683_v26 = vmax.f32 %v3962_v45, 0.0 }
 0x4d9   :  { %v2684_v2 = vmax.f32 %v3963_v48, 0.0 }
 0x4da   :  { %v2719_v51 = vpack.c.bf16 %v2683_v26, %v2681_v25 }
 0x4db   :  { %v2720_v4 = vpack.c.bf16 %v2684_v2, %v2682_v61  ;;  %v2610_v7 = vpop.f32.mrb[152].mxu0 }
 0x4dc   :  { %v3964_v27 = vadd.f32 %v2610_v7, %v5315_v34  ;;  %v2612_v10 = vpop.f32.mrb[153].mxu0 }
 0x4dd   :  { %v3965_v9 = vadd.f32 %v2612_v10, %v5318_v35  ;;  %v2614_v12 = vpop.f32.mrb[154].mxu0  ;;  %3091 = vmatprep.mubr.bf16.mxu1 %v2720_v4 }
 0x4de   :  { %v3966_v11 = vadd.f32 %v2614_v12, %v5315_v34  ;;  %v2616_v16 = vpop.f32.mrb[155].mxu0  ;;  %3092 = vmatmul.mubr.bf16.gmra.mrb[160].mxu1 %v2719_v51  ;;  %v2685_v55 = vmax.f32 %v3964_v27, 0.0 }
 0x4df   :  { %v3967_v18 = vadd.f32 %v2616_v16, %v5318_v35  ;;  %v2686_v53 = vmax.f32 %v3965_v9, 0.0 }
 0x4e0   :  { %v2687_v19 = vmax.f32 %v3966_v11, 0.0 }
 0x4e1   :  { %v2688_v31 = vmax.f32 %v3967_v18, 0.0 }
 0x4e2   :  { %v2721_v47 = vpack.c.bf16 %v2687_v19, %v2685_v55 }
 0x4e3   :  { %v2722_v32 = vpack.c.bf16 %v2688_v31, %v2686_v53  ;;  %v2620_v63 = vpop.f32.mrb[156].mxu0 }
 0x4e4   :  { %v3968_v0 = vadd.f32 %v2620_v63, %v5315_v34  ;;  %v2622_v41 = vpop.f32.mrb[157].mxu0 }
 0x4e5   :  { %v3969_v6 = vadd.f32 %v2622_v41, %v5318_v35  ;;  %v2624_v58 = vpop.f32.mrb[158].mxu0  ;;  %3101 = vmatprep.mubr.bf16.mxu1 %v2722_v32 }
 0x4e6   :  { %v3970_v39 = vadd.f32 %v2624_v58, %v5315_v34  ;;  %v2626_v43 = vpop.f32.mrb[159].mxu0  ;;  %3102 = vmatmul.mubr.bf16.gmra.mrb[164].mxu1 %v2721_v47  ;;  %v2689_v37 = vmax.f32 %v3968_v0, 0.0 }
 0x4e7   :  { %v3971_v21 = vadd.f32 %v2626_v43, %v5318_v35  ;;  %v2690_v23 = vmax.f32 %v3969_v6, 0.0 }
 0x4e8   :  { %v2691_v15 = vmax.f32 %v3970_v39, 0.0 }
 0x4e9   :  { %v2692_v13 = vmax.f32 %v3971_v21, 0.0 }
 0x4ea   :  { %v2723_v30 = vpack.c.bf16 %v2691_v15, %v2689_v37 }
 0x4eb   :  { %v2724_v54 = vpack.c.bf16 %v2692_v13, %v2690_v23 }
 0x4ed   :  { %3111 = vmatprep.mubr.bf16.mxu1 %v2724_v54 }
 0x4ee   :  { %3112 = vmatmul.mubr.bf16.gmra.mrb[168].mxu1 %v2723_v30 }
 0x549   :  { %v2963_v34 = vpop.f32.mrb[160].mxu0 }
 0x54a   :  { %v2965_v35 = vpop.f32.mrb[161].mxu0  ;;  %v2964_v40 = vadd.f32 %v2963_v34, %v5388_v17 }
 0x54b   :  { %v2967_v57 = vpop.f32.mrb[162].mxu0  ;;  %v2966_v22 = vadd.f32 %v2965_v35, %v5391_v50 }
 0x54c   :  { %v2968_v42 = vadd.f32 %v2967_v57, %v5388_v17  ;;  %v2969_v20 = vpop.f32.mrb[163].mxu0 }
 0x54d   :  { %v2970_v3 = vadd.f32 %v2969_v20, %v5391_v50 }
 0x54e   :  { %v3122_v8 = vpack.c.bf16 %v2968_v42, %v2964_v40 }
 0x54f   :  { %v3123_v28 = vpack.c.bf16 %v2970_v3, %v2966_v22 }
 0x551   :  { %v2973_v56 = vpop.f32.mrb[164].mxu0  ;;  %3321 = vmatprep.mubr.bf16.mxu1 %v3123_v28 }
 0x552   :  { %v2975_v60 = vpop.f32.mrb[165].mxu0  ;;  %3322 = vmatmul.mubr.bf16.vlgmr.msra.gmra.mrb[172].mxu1 %v3122_v8  ;;  %v2974_v62 = vadd.f32 %v2973_v56, %v5388_v17 }
 0x553   :  { %v2977_v49 = vpop.f32.mrb[166].mxu0  ;;  %v2976_v1 = vadd.f32 %v2975_v60, %v5391_v50 }
 0x554   :  { %v2978_v5 = vadd.f32 %v2977_v49, %v5388_v17  ;;  %v2979_v52 = vpop.f32.mrb[167].mxu0 }
 0x555   :  { %v2980_v24 = vadd.f32 %v2979_v52, %v5391_v50 }
 0x556   :  { %v3124_v29 = vpack.c.bf16 %v2978_v5, %v2974_v62 }
 0x557   :  { %v3125_v33 = vpack.c.bf16 %v2980_v24, %v2976_v1 }
 0x559   :  { %v2983_v59 = vpop.f32.mrb[168].mxu0  ;;  %3329 = vmatprep.mubr.bf16.mxu1 %v3125_v33 }
 0x55a   :  { %v2985_v36 = vpop.f32.mrb[169].mxu0  ;;  %3330 = vmatmul.mubr.bf16.gmra.mrb[176].mxu1 %v3124_v29  ;;  %v2984_v44 = vadd.f32 %v2983_v59, %v5388_v17 }
 0x55b   :  { %v2987_v38 = vpop.f32.mrb[170].mxu0  ;;  %v2986_v48 = vadd.f32 %v2985_v36, %v5391_v50 }
 0x55c   :  { %v2988_v45 = vadd.f32 %v2987_v38, %v5388_v17  ;;  %v2989_v46 = vpop.f32.mrb[171].mxu0 }
 0x55d   :  { %v2990_v25 = vadd.f32 %v2989_v46, %v5391_v50 }
 0x55e   :  { %v3126_v26 = vpack.c.bf16 %v2988_v45, %v2984_v44 }
 0x55f   :  { %v3127_v61 = vpack.c.bf16 %v2990_v25, %v2986_v48 }
 0x561   :  { %v2993_v2 = vpop.f32.mrb[172].mxu0  ;;  %3337 = vmatprep.mubr.bf16.mxu1 %v3127_v61 }
 0x562   :  { %v2995_v51 = vpop.f32.mrb[173].mxu0  ;;  %3338 = vmatmul.mubr.bf16.gmra.mrb[180].mxu1 %v3126_v26  ;;  %v2994_v7 = vadd.f32 %v2993_v2, %v5388_v17 }
 0x563   :  { %v2997_v4 = vpop.f32.mrb[174].mxu0  ;;  %v2996_v9 = vadd.f32 %v2995_v51, %v5391_v50 }
 0x564   :  { %v2998_v27 = vadd.f32 %v2997_v4, %v5388_v17  ;;  %v2999_v10 = vpop.f32.mrb[175].mxu0 }
 0x565   :  { %v3000_v12 = vadd.f32 %v2999_v10, %v5391_v50 }
 0x566   :  { %v3128_v11 = vpack.c.bf16 %v2998_v27, %v2994_v7 }
 0x567   :  { %v3129_v16 = vpack.c.bf16 %v3000_v12, %v2996_v9 }
 0x569   :  { %v3003_v18 = vpop.f32.mrb[176].mxu0  ;;  %3345 = vmatprep.mubr.bf16.mxu1 %v3129_v16 }
 0x56a   :  { %v3005_v55 = vpop.f32.mrb[177].mxu0  ;;  %3346 = vmatmul.mubr.bf16.gmra.mrb[184].mxu1 %v3128_v11  ;;  %v3004_v53 = vadd.f32 %v3003_v18, %v5388_v17 }
 0x56b   :  { %v3007_v19 = vpop.f32.mrb[178].mxu0  ;;  %v3006_v32 = vadd.f32 %v3005_v55, %v5391_v50 }
 0x56c   :  { %v3008_v31 = vadd.f32 %v3007_v19, %v5388_v17  ;;  %v3009_v47 = vpop.f32.mrb[179].mxu0 }
 0x56d   :  { %v3010_v63 = vadd.f32 %v3009_v47, %v5391_v50 }
 0x56e   :  { %v3130_v0 = vpack.c.bf16 %v3008_v31, %v3004_v53 }
 0x56f   :  { %v3131_v41 = vpack.c.bf16 %v3010_v63, %v3006_v32 }
 0x571   :  { %v3013_v6 = vpop.f32.mrb[128].mxu1  ;;  %3353 = vmatprep.mubr.bf16.mxu1 %v3131_v41 }
 0x572   :  { %v3015_v58 = vpop.f32.mrb[129].mxu1  ;;  %3354 = vmatmul.mubr.bf16.gmra.mrb[188].mxu1 %v3130_v0  ;;  %v3014_v43 = vadd.f32 %v3013_v6, %v5388_v17 }
 0x573   :  { %v3017_v39 = vpop.f32.mrb[130].mxu1  ;;  %v3016_v15 = vadd.f32 %v3015_v58, %v5391_v50 }
 0x574   :  { %v3018_v21 = vadd.f32 %v3017_v39, %v5388_v17  ;;  %v3019_v37 = vpop.f32.mrb[131].mxu1 }
 0x575   :  { %v3020_v23 = vadd.f32 %v3019_v37, %v5391_v50 }
 0x576   :  { %v3132_v13 = vpack.c.bf16 %v3018_v21, %v3014_v43 }
 0x577   :  { %v3133_v30 = vpack.c.bf16 %v3020_v23, %v3016_v15 }
 0x579   :  { %v3023_v54 = vpop.f32.mrb[132].mxu1  ;;  %3361 = vmatprep.mubr.bf16.mxu1 %v3133_v30 }
 0x57a   :  { %v3025_v14 = vpop.f32.mrb[133].mxu1  ;;  %3362 = vmatmul.mubr.bf16.gmra.mrb[192].mxu1 %v3132_v13  ;;  %v3024_v35 = vadd.f32 %v3023_v54, %v5388_v17 }
 0x57b   :  { %v3027_v34 = vpop.f32.mrb[134].mxu1  ;;  %v3026_v42 = vadd.f32 %v3025_v14, %v5391_v50 }
 0x57c   :  { %v3028_v57 = vadd.f32 %v3027_v34, %v5388_v17  ;;  %v3029_v40 = vpop.f32.mrb[135].mxu1 }
 0x57d   :  { %v3030_v20 = vadd.f32 %v3029_v40, %v5391_v50 }
 0x57e   :  { %v3134_v22 = vpack.c.bf16 %v3028_v57, %v3024_v35 }
 0x57f   :  { %v3135_v3 = vpack.c.bf16 %v3030_v20, %v3026_v42 }
 0x581   :  { %v3033_v8 = vpop.f32.mrb[136].mxu1  ;;  %3369 = vmatprep.mubr.bf16.mxu1 %v3135_v3 }
 0x582   :  { %v3035_v28 = vpop.f32.mrb[137].mxu1  ;;  %3370 = vmatmul.mubr.bf16.gmra.mrb[196].mxu1 %v3134_v22  ;;  %v3034_v60 = vadd.f32 %v3033_v8, %v5388_v17 }
 0x583   :  { %v3037_v56 = vpop.f32.mrb[138].mxu1  ;;  %v3036_v5 = vadd.f32 %v3035_v28, %v5391_v50 }
 0x584   :  { %v3038_v49 = vadd.f32 %v3037_v56, %v5388_v17  ;;  %v3039_v62 = vpop.f32.mrb[139].mxu1 }
 0x585   :  { %v3040_v52 = vadd.f32 %v3039_v62, %v5391_v50 }
 0x586   :  { %v3136_v1 = vpack.c.bf16 %v3038_v49, %v3034_v60 }
 0x587   :  { %v3137_v24 = vpack.c.bf16 %v3040_v52, %v3036_v5 }
 0x589   :  { %v3043_v29 = vpop.f32.mrb[140].mxu1  ;;  %3377 = vmatprep.mubr.bf16.mxu1 %v3137_v24 }
 0x58a   :  { %v3045_v33 = vpop.f32.mrb[141].mxu1  ;;  %3378 = vmatmul.mubr.bf16.gmra.mrb[200].mxu1 %v3136_v1  ;;  %v3044_v36 = vadd.f32 %v3043_v29, %v5388_v17 }
 0x58b   :  { %v3047_v59 = vpop.f32.mrb[142].mxu1  ;;  %v3046_v45 = vadd.f32 %v3045_v33, %v5391_v50 }
 0x58c   :  { %v3048_v38 = vadd.f32 %v3047_v59, %v5388_v17  ;;  %v3049_v44 = vpop.f32.mrb[143].mxu1 }
 0x58d   :  { %v3050_v46 = vadd.f32 %v3049_v44, %v5391_v50 }
 0x58e   :  { %v3138_v48 = vpack.c.bf16 %v3048_v38, %v3044_v36 }
 0x58f   :  { %v3139_v25 = vpack.c.bf16 %v3050_v46, %v3046_v45 }
 0x591   :  { %v3053_v26 = vpop.f32.mrb[144].mxu1  ;;  %3385 = vmatprep.mubr.bf16.mxu1 %v3139_v25 }
 0x592   :  { %v3055_v61 = vpop.f32.mrb[145].mxu1  ;;  %3386 = vmatmul.mubr.bf16.gmra.mrb[204].mxu1 %v3138_v48  ;;  %v3054_v51 = vadd.f32 %v3053_v26, %v5388_v17 }
 0x593   :  { %v3057_v2 = vpop.f32.mrb[146].mxu1  ;;  %v3056_v27 = vadd.f32 %v3055_v61, %v5391_v50 }
 0x594   :  { %v3058_v4 = vadd.f32 %v3057_v2, %v5388_v17  ;;  %v3059_v7 = vpop.f32.mrb[147].mxu1 }
 0x595   :  { %v3060_v10 = vadd.f32 %v3059_v7, %v5391_v50 }
 0x596   :  { %v3140_v9 = vpack.c.bf16 %v3058_v4, %v3054_v51 }
 0x597   :  { %v3141_v12 = vpack.c.bf16 %v3060_v10, %v3056_v27 }
 0x599   :  { %v3063_v11 = vpop.f32.mrb[148].mxu1  ;;  %3393 = vmatprep.mubr.bf16.mxu1 %v3141_v12  ;;  %v5460_v12 = vld [vmem:[%s5602_s12] ss:$0 sm:$0xff] }
 0x59a   :  { %v3065_v16 = vpop.f32.mrb[149].mxu1  ;;  %3394 = vmatmul.mubr.bf16.gmra.mrb[208].mxu1 %v3140_v9  ;;  %v3064_v55 = vadd.f32 %v3063_v11, %v5388_v17 }
 0x59b   :  { %v3067_v18 = vpop.f32.mrb[150].mxu1  ;;  %v3066_v31 = vadd.f32 %v3065_v16, %v5391_v50 }
 0x59c   :  { %v3068_v19 = vadd.f32 %v3067_v18, %v5388_v17  ;;  %v3069_v53 = vpop.f32.mrb[151].mxu1 }
 0x59d   :  { %v3070_v47 = vadd.f32 %v3069_v53, %v5391_v50 }
 0x59e   :  { %v3142_v32 = vpack.c.bf16 %v3068_v19, %v3064_v55 }
 0x59f   :  { %v3143_v63 = vpack.c.bf16 %v3070_v47, %v3066_v31 }
 0x5a1   :  { %v3073_v0 = vpop.f32.mrb[152].mxu1  ;;  %3401 = vmatprep.mubr.bf16.mxu1 %v3143_v63 }
 0x5a2   :  { %v3075_v41 = vpop.f32.mrb[153].mxu1  ;;  %3402 = vmatmul.mubr.bf16.gmra.mrb[212].mxu1 %v3142_v32  ;;  %v3074_v58 = vadd.f32 %v3073_v0, %v5388_v17 }
 0x5a3   :  { %v3077_v6 = vpop.f32.mrb[154].mxu1  ;;  %v3076_v21 = vadd.f32 %v3075_v41, %v5391_v50 }
 0x5a4   :  { %v3078_v39 = vadd.f32 %v3077_v6, %v5388_v17  ;;  %v3079_v43 = vpop.f32.mrb[155].mxu1 }
 0x5a5   :  { %v3080_v37 = vadd.f32 %v3079_v43, %v5391_v50 }
 0x5a6   :  { %v3144_v15 = vpack.c.bf16 %v3078_v39, %v3074_v58 }
 0x5a7   :  { %v3145_v23 = vpack.c.bf16 %v3080_v37, %v3076_v21 }
 0x5a9   :  { %v3083_v13 = vpop.f32.mrb[156].mxu1  ;;  %3409 = vmatprep.mubr.bf16.mxu1 %v3145_v23 }
 0x5aa   :  { %v3085_v30 = vpop.f32.mrb[157].mxu1  ;;  %3410 = vmatmul.mubr.bf16.gmra.mrb[216].mxu1 %v3144_v15  ;;  %v3084_v14 = vadd.f32 %v3083_v13, %v5388_v17 }
 0x5ab   :  { %v3087_v54 = vpop.f32.mrb[158].mxu1  ;;  %v3086_v57 = vadd.f32 %v3085_v30, %v5391_v50 }
 0x5ac   :  { %v3088_v34 = vadd.f32 %v3087_v54, %v5388_v17  ;;  %v3089_v35 = vpop.f32.mrb[159].mxu1 }
 0x5ad   :  { %v3090_v40 = vadd.f32 %v3089_v35, %v5391_v50 }
 0x5ae   :  { %v3146_v42 = vpack.c.bf16 %v3088_v34, %v3084_v14 }
 0x5af   :  { %v3147_v20 = vpack.c.bf16 %v3090_v40, %v3086_v57 }
 0x5b1   :  { %v3093_v22 = vpop.f32.mrb[160].mxu1  ;;  %3417 = vmatprep.mubr.bf16.mxu1 %v3147_v20 }
 0x5b2   :  { %v3095_v3 = vpop.f32.mrb[161].mxu1  ;;  %3418 = vmatmul.mubr.bf16.gmra.mrb[220].mxu1 %v3146_v42  ;;  %v3094_v28 = vadd.f32 %v3093_v22, %v5388_v17 }
 0x5b3   :  { %v3097_v8 = vpop.f32.mrb[162].mxu1  ;;  %v3096_v49 = vadd.f32 %v3095_v3, %v5391_v50 }
 0x5b4   :  { %v3098_v56 = vadd.f32 %v3097_v8, %v5388_v17  ;;  %v3099_v60 = vpop.f32.mrb[163].mxu1 }
 0x5b5   :  { %v3100_v62 = vadd.f32 %v3099_v60, %v5391_v50 }
 0x5b6   :  { %v3148_v5 = vpack.c.bf16 %v3098_v56, %v3094_v28 }
 0x5b7   :  { %v3149_v52 = vpack.c.bf16 %v3100_v62, %v3096_v49 }
 0x5b9   :  { %v3103_v1 = vpop.f32.mrb[164].mxu1  ;;  %3425 = vmatprep.mubr.bf16.mxu1 %v3149_v52 }
 0x5ba   :  { %v3105_v24 = vpop.f32.mrb[165].mxu1  ;;  %3426 = vmatmul.mubr.bf16.gmra.mrb[224].mxu1 %v3148_v5  ;;  %v3104_v33 = vadd.f32 %v3103_v1, %v5388_v17 }
 0x5bb   :  { %v3107_v29 = vpop.f32.mrb[166].mxu1  ;;  %v3106_v38 = vadd.f32 %v3105_v24, %v5391_v50 }
 0x5bc   :  { %v3108_v59 = vadd.f32 %v3107_v29, %v5388_v17  ;;  %v3109_v36 = vpop.f32.mrb[167].mxu1 }
 0x5bd   :  { %v3110_v44 = vadd.f32 %v3109_v36, %v5391_v50 }
 0x5be   :  { %v3150_v45 = vpack.c.bf16 %v3108_v59, %v3104_v33 }
 0x5bf   :  { %v3151_v46 = vpack.c.bf16 %v3110_v44, %v3106_v38 }
 0x5c1   :  { %v3113_v48 = vpop.f32.mrb[168].mxu1  ;;  %3433 = vmatprep.mubr.bf16.mxu1 %v3151_v46 }
 0x5c2   :  { %v3115_v25 = vpop.f32.mrb[169].mxu1  ;;  %3434 = vmatmul.mubr.bf16.gmra.mrb[228].mxu1 %v3150_v45  ;;  %v3114_v61 = vadd.f32 %v3113_v48, %v5388_v17 }
 0x5c3   :  { %v3117_v26 = vpop.f32.mrb[170].mxu1  ;;  %v3116_v4 = vadd.f32 %v3115_v25, %v5391_v50 }
 0x5c4   :  { %v3118_v2 = vadd.f32 %v3117_v26, %v5388_v17  ;;  %v3119_v51 = vpop.f32.mrb[171].mxu1 }
 0x5c5   :  { %v3120_v7 = vadd.f32 %v3119_v51, %v5391_v50 }
 0x5c6   :  { %v3152_v27 = vpack.c.bf16 %v3118_v2, %v3114_v61 }
 0x5c7   :  { %v3153_v10 = vpack.c.bf16 %v3120_v7, %v3116_v4 }
 0x5c9   :  { %3441 = vmatprep.mubr.bf16.mxu1 %v3153_v10 }
 0x5ca   :  { %3442 = vmatmul.mubr.bf16.gmra.mrb[232].mxu1 %v3152_v27 }
 0x625   :  { %v3740_v9 = vpop.f32.mrb[172].mxu1 }
 0x626   :  { %v3741_v11 = vpop.f32.mrb[173].mxu1 }
 0x627   :  { %v3742_v16 = vadd.f32 %v3741_v11, %v3740_v9  ;;  %v3743_v18 = vpop.f32.mrb[174].mxu1 }
 0x628   :  { %v3744_v55 = vpop.f32.mrb[175].mxu1 }
 0x629   :  { %v3324_v17 = vadd.f32 %v3742_v16, %v5460_v12  ;;  %v3745_v19 = vadd.f32 %v3744_v55, %v3743_v18 }
 0x62b   :  { %3450 = vst [vmem:[%s5603_s13] sm:$0xff] %v3324_v17  ;;  %v3327_v50 = vadd.f32 %v3745_v19, %v5460_v12 }
 0x62d   :  { %3451 = vst [vmem:[%s5603_s13 + $0x8] sm:$0xff] %v3327_v50  ;;  %v3746_v53 = vpop.f32.mrb[176].mxu1 }
 0x62e   :  { %v3747_v31 = vpop.f32.mrb[177].mxu1 }
 0x62f   :  { %v3748_v47 = vadd.f32 %v3747_v31, %v3746_v53  ;;  %v3749_v32 = vpop.f32.mrb[178].mxu1 }
 0x630   :  { %v3750_v63 = vpop.f32.mrb[179].mxu1 }
 0x631   :  { %v3332_v0 = vadd.f32 %v3748_v47, %v5460_v12  ;;  %v3751_v41 = vadd.f32 %v3750_v63, %v3749_v32 }
 0x633   :  { %3452 = vst [vmem:[%s5603_s13 + $0x10] sm:$0xff] %v3332_v0  ;;  %v3335_v6 = vadd.f32 %v3751_v41, %v5460_v12 }
 0x635   :  { %3453 = vst [vmem:[%s5603_s13 + $0x18] sm:$0xff] %v3335_v6  ;;  %v3752_v58 = vpop.f32.mrb[180].mxu1 }
 0x636   :  { %v3753_v39 = vpop.f32.mrb[181].mxu1 }
 0x637   :  { %v3754_v43 = vadd.f32 %v3753_v39, %v3752_v58  ;;  %v3755_v21 = vpop.f32.mrb[182].mxu1 }
 0x638   :  { %v3756_v37 = vpop.f32.mrb[183].mxu1 }
 0x639   :  { %v3340_v15 = vadd.f32 %v3754_v43, %v5460_v12  ;;  %v3757_v23 = vadd.f32 %v3756_v37, %v3755_v21 }
 0x63b   :  { %3454 = vst [vmem:[%s5603_s13 + $0x20] sm:$0xff] %v3340_v15  ;;  %v3343_v13 = vadd.f32 %v3757_v23, %v5460_v12 }
 0x63d   :  { %3455 = vst [vmem:[%s5603_s13 + $0x28] sm:$0xff] %v3343_v13  ;;  %v3758_v30 = vpop.f32.mrb[184].mxu1 }
 0x63e   :  { %v3759_v54 = vpop.f32.mrb[185].mxu1 }
 0x63f   :  { %v3760_v14 = vadd.f32 %v3759_v54, %v3758_v30  ;;  %v3761_v34 = vpop.f32.mrb[186].mxu1 }
 0x640   :  { %v3762_v35 = vpop.f32.mrb[187].mxu1 }
 0x641   :  { %v3348_v57 = vadd.f32 %v3760_v14, %v5460_v12  ;;  %v3763_v40 = vadd.f32 %v3762_v35, %v3761_v34 }
 0x643   :  { %3456 = vst [vmem:[%s5603_s13 + $0x30] sm:$0xff] %v3348_v57  ;;  %v3351_v42 = vadd.f32 %v3763_v40, %v5460_v12 }
 0x645   :  { %3457 = vst [vmem:[%s5603_s13 + $0x38] sm:$0xff] %v3351_v42  ;;  %v3764_v20 = vpop.f32.mrb[188].mxu1 }
 0x646   :  { %v3765_v22 = vpop.f32.mrb[189].mxu1 }
 0x647   :  { %v3766_v3 = vadd.f32 %v3765_v22, %v3764_v20  ;;  %v3767_v8 = vpop.f32.mrb[190].mxu1 }
 0x648   :  { %v3768_v28 = vpop.f32.mrb[191].mxu1 }
 0x649   :  { %v3356_v56 = vadd.f32 %v3766_v3, %v5460_v12  ;;  %v3769_v60 = vadd.f32 %v3768_v28, %v3767_v8 }
 0x64b   :  { %3458 = vst [vmem:[%s5603_s13 + $0x40] sm:$0xff] %v3356_v56  ;;  %v3359_v49 = vadd.f32 %v3769_v60, %v5460_v12 }
 0x64d   :  { %3459 = vst [vmem:[%s5603_s13 + $0x48] sm:$0xff] %v3359_v49  ;;  %v3770_v62 = vpop.f32.mrb[192].mxu1 }
 0x64e   :  { %v3771_v5 = vpop.f32.mrb[193].mxu1 }
 0x64f   :  { %v3772_v52 = vadd.f32 %v3771_v5, %v3770_v62  ;;  %v3773_v1 = vpop.f32.mrb[194].mxu1 }
 0x650   :  { %v3774_v24 = vpop.f32.mrb[195].mxu1 }
 0x651   :  { %v3364_v29 = vadd.f32 %v3772_v52, %v5460_v12  ;;  %v3775_v33 = vadd.f32 %v3774_v24, %v3773_v1 }
 0x653   :  { %3460 = vst [vmem:[%s5603_s13 + $0x50] sm:$0xff] %v3364_v29  ;;  %v3367_v59 = vadd.f32 %v3775_v33, %v5460_v12 }
 0x655   :  { %3461 = vst [vmem:[%s5603_s13 + $0x58] sm:$0xff] %v3367_v59  ;;  %v3776_v36 = vpop.f32.mrb[196].mxu1 }
 0x656   :  { %v3777_v38 = vpop.f32.mrb[197].mxu1 }
 0x657   :  { %v3778_v44 = vadd.f32 %v3777_v38, %v3776_v36  ;;  %v3779_v45 = vpop.f32.mrb[198].mxu1 }
 0x658   :  { %v3780_v46 = vpop.f32.mrb[199].mxu1 }
 0x659   :  { %v3372_v48 = vadd.f32 %v3778_v44, %v5460_v12  ;;  %v3781_v25 = vadd.f32 %v3780_v46, %v3779_v45 }
 0x65b   :  { %3462 = vst [vmem:[%s5603_s13 + $0x60] sm:$0xff] %v3372_v48  ;;  %v3375_v26 = vadd.f32 %v3781_v25, %v5460_v12 }
 0x65d   :  { %3463 = vst [vmem:[%s5603_s13 + $0x68] sm:$0xff] %v3375_v26  ;;  %v3782_v61 = vpop.f32.mrb[200].mxu1 }
 0x65e   :  { %v3783_v2 = vpop.f32.mrb[201].mxu1 }
 0x65f   :  { %v3784_v51 = vadd.f32 %v3783_v2, %v3782_v61  ;;  %v3785_v4 = vpop.f32.mrb[202].mxu1 }
 0x660   :  { %v3786_v7 = vpop.f32.mrb[203].mxu1 }
 0x661   :  { %v3380_v27 = vadd.f32 %v3784_v51, %v5460_v12  ;;  %v3787_v10 = vadd.f32 %v3786_v7, %v3785_v4 }
 0x663   :  { %3464 = vst [vmem:[%s5603_s13 + $0x70] sm:$0xff] %v3380_v27  ;;  %v3383_v9 = vadd.f32 %v3787_v10, %v5460_v12 }
 0x665   :  { %3465 = vst [vmem:[%s5603_s13 + $0x78] sm:$0xff] %v3383_v9  ;;  %v3788_v11 = vpop.f32.mrb[204].mxu1 }
 0x666   :  { %v3789_v16 = vpop.f32.mrb[205].mxu1 }
 0x667   :  { %v3790_v18 = vadd.f32 %v3789_v16, %v3788_v11  ;;  %v3791_v55 = vpop.f32.mrb[206].mxu1 }
 0x668   :  { %v3792_v17 = vpop.f32.mrb[207].mxu1 }
 0x669   :  { %v3388_v19 = vadd.f32 %v3790_v18, %v5460_v12  ;;  %v3793_v50 = vadd.f32 %v3792_v17, %v3791_v55 }
 0x66b   :  { %3466 = vst [vmem:[%s5603_s13 + $0x80] sm:$0xff] %v3388_v19  ;;  %v3391_v53 = vadd.f32 %v3793_v50, %v5460_v12 }
 0x66d   :  { %3467 = vst [vmem:[%s5603_s13 + $0x88] sm:$0xff] %v3391_v53  ;;  %v3794_v31 = vpop.f32.mrb[208].mxu1 }
 0x66e   :  { %v3795_v47 = vpop.f32.mrb[209].mxu1 }
 0x66f   :  { %v3796_v32 = vadd.f32 %v3795_v47, %v3794_v31  ;;  %v3797_v63 = vpop.f32.mrb[210].mxu1 }
 0x670   :  { %v3798_v0 = vpop.f32.mrb[211].mxu1 }
 0x671   :  { %v3396_v41 = vadd.f32 %v3796_v32, %v5460_v12  ;;  %v3799_v6 = vadd.f32 %v3798_v0, %v3797_v63 }
 0x673   :  { %3468 = vst [vmem:[%s5603_s13 + $0x90] sm:$0xff] %v3396_v41  ;;  %v3399_v58 = vadd.f32 %v3799_v6, %v5460_v12 }
 0x675   :  { %3469 = vst [vmem:[%s5603_s13 + $0x98] sm:$0xff] %v3399_v58  ;;  %v3800_v39 = vpop.f32.mrb[212].mxu1 }
 0x676   :  { %v3801_v43 = vpop.f32.mrb[213].mxu1 }
 0x677   :  { %v3802_v21 = vadd.f32 %v3801_v43, %v3800_v39  ;;  %v3803_v37 = vpop.f32.mrb[214].mxu1 }
 0x678   :  { %v3804_v15 = vpop.f32.mrb[215].mxu1 }
 0x679   :  { %v3404_v23 = vadd.f32 %v3802_v21, %v5460_v12  ;;  %v3805_v13 = vadd.f32 %v3804_v15, %v3803_v37 }
 0x67b   :  { %3470 = vst [vmem:[%s5603_s13 + $0xa0] sm:$0xff] %v3404_v23  ;;  %v3407_v30 = vadd.f32 %v3805_v13, %v5460_v12 }
 0x67d   :  { %3471 = vst [vmem:[%s5603_s13 + $0xa8] sm:$0xff] %v3407_v30  ;;  %v3806_v54 = vpop.f32.mrb[216].mxu1 }
 0x67e   :  { %v3807_v14 = vpop.f32.mrb[217].mxu1 }
 0x67f   :  { %v3808_v34 = vadd.f32 %v3807_v14, %v3806_v54  ;;  %v3809_v35 = vpop.f32.mrb[218].mxu1 }
 0x680   :  { %v3810_v57 = vpop.f32.mrb[219].mxu1 }
 0x681   :  { %v3412_v40 = vadd.f32 %v3808_v34, %v5460_v12  ;;  %v3811_v42 = vadd.f32 %v3810_v57, %v3809_v35 }
 0x683   :  { %3472 = vst [vmem:[%s5603_s13 + $0xb0] sm:$0xff] %v3412_v40  ;;  %v3415_v20 = vadd.f32 %v3811_v42, %v5460_v12 }
 0x685   :  { %3473 = vst [vmem:[%s5603_s13 + $0xb8] sm:$0xff] %v3415_v20  ;;  %v3812_v22 = vpop.f32.mrb[220].mxu1 }
 0x686   :  { %v3813_v3 = vpop.f32.mrb[221].mxu1 }
 0x687   :  { %v3814_v8 = vadd.f32 %v3813_v3, %v3812_v22  ;;  %v3815_v28 = vpop.f32.mrb[222].mxu1 }
 0x688   :  { %v3816_v56 = vpop.f32.mrb[223].mxu1 }
 0x689   :  { %v3420_v60 = vadd.f32 %v3814_v8, %v5460_v12  ;;  %v3817_v49 = vadd.f32 %v3816_v56, %v3815_v28 }
 0x68b   :  { %3474 = vst [vmem:[%s5603_s13 + $0xc0] sm:$0xff] %v3420_v60  ;;  %v3423_v62 = vadd.f32 %v3817_v49, %v5460_v12 }
 0x68d   :  { %3475 = vst [vmem:[%s5603_s13 + $0xc8] sm:$0xff] %v3423_v62  ;;  %v3818_v5 = vpop.f32.mrb[224].mxu1 }
 0x68e   :  { %v3819_v52 = vpop.f32.mrb[225].mxu1 }
 0x68f   :  { %v3820_v1 = vadd.f32 %v3819_v52, %v3818_v5  ;;  %v3821_v24 = vpop.f32.mrb[226].mxu1 }
 0x690   :  { %v3822_v29 = vpop.f32.mrb[227].mxu1 }
 0x691   :  { %v3428_v33 = vadd.f32 %v3820_v1, %v5460_v12  ;;  %v3823_v59 = vadd.f32 %v3822_v29, %v3821_v24 }
 0x693   :  { %3476 = vst [vmem:[%s5603_s13 + $0xd0] sm:$0xff] %v3428_v33  ;;  %v3431_v36 = vadd.f32 %v3823_v59, %v5460_v12 }
 0x695   :  { %3477 = vst [vmem:[%s5603_s13 + $0xd8] sm:$0xff] %v3431_v36  ;;  %v3824_v38 = vpop.f32.mrb[228].mxu1 }
 0x696   :  { %v3825_v44 = vpop.f32.mrb[229].mxu1 }
 0x697   :  { %v3826_v45 = vadd.f32 %v3825_v44, %v3824_v38  ;;  %v3827_v46 = vpop.f32.mrb[230].mxu1 }
 0x698   :  { %v3828_v48 = vpop.f32.mrb[231].mxu1 }
 0x699   :  { %v3436_v25 = vadd.f32 %v3826_v45, %v5460_v12  ;;  %v3829_v26 = vadd.f32 %v3828_v48, %v3827_v46 }
 0x69b   :  { %3478 = vst [vmem:[%s5603_s13 + $0xe0] sm:$0xff] %v3436_v25  ;;  %v3439_v61 = vadd.f32 %v3829_v26, %v5460_v12 }
 0x69d   :  { %3479 = vst [vmem:[%s5603_s13 + $0xe8] sm:$0xff] %v3439_v61  ;;  %v3830_v2 = vpop.f32.mrb[232].mxu1 }
 0x69e   :  { %v3831_v51 = vpop.f32.mrb[233].mxu1 }
 0x69f   :  { %v3832_v4 = vadd.f32 %v3831_v51, %v3830_v2  ;;  %v3833_v7 = vpop.f32.mrb[234].mxu1 }
 0x6a0   :  { %v3834_v27 = vpop.f32.mrb[235].mxu1 }
 0x6a1   :  { %v3444_v10 = vadd.f32 %v3832_v4, %v5460_v12  ;;  %v3835_v9 = vadd.f32 %v3834_v27, %v3833_v7 }
 0x6a3   :  { %3480 = vst [vmem:[%s5603_s13 + $0xf0] sm:$0xff] %v3444_v10  ;;  %v3447_v11 = vadd.f32 %v3835_v9, %v5460_v12 }
 0x6a5   :  { %3481 = vst [vmem:[%s5603_s13 + $0xf8] sm:$0xff] %v3447_v11 }
 0x6a6   :  { %3486 = vsyncpa [#allocation3], 1 }
 0x6a7   :  { %3487 = vsyncpa [#allocation5], 1 }
 0x6a8   :  { %3488 = vsyncpa [#allocation8], 1 }
 0x6a9   :  { %3489 = vsyncpa [#allocation11], 1 }

</bundles_post_ra>
